<compile_context>
chip_gen: v7x
topology: tpu7x:2x2x1
jax: 0.10.0
libtpu: 0.0.40
codegen_flags: <defaults>
</compile_context>

<pallas_src>
import math
from functools import partial

import jax
import jax.numpy as jnp
from jax.experimental import pallas as pl
from jax.experimental.pallas import tpu as pltpu

KSIZE = 3  # temporal kernel size; reference Conv2d uses padding=(0, (K-1)//2) -> "same" on T


# ----------------------------------------------------------------------------
# Fused STConv kernel:  temporal-gated-conv -> GCN(+ReLU) -> temporal-gated-conv
# ----------------------------------------------------------------------------
def stconv_pallas(xp_flat, w1, b1, a_big, et_full, gw, gb, w2, b2, *, T, N):
    """xp_flat: (B, (T+K-1)*N, Cin) time-padded, flattened input.
    Returns (B, T*N, Cout)."""
    B, TpN, Cin = xp_flat.shape
    K = w1.shape[0]
    H = gw.shape[0]
    Cout = w2.shape[-1] // 3
    TN = T * N

    def kernel(xp_ref, w1_ref, b1_ref, abig_ref, et_ref, gw_ref, gb_ref,
               w2_ref, b2_ref, o_ref):
        xp = xp_ref[0]                                    # (TpN, Cin)

        # ---- temporal conv 1: K shifted row-windows, 3 branches in one matmul ---
        r = jnp.zeros((TN, 3 * H), jnp.float32)
        for k in range(K):
            tap = xp[k * N:k * N + TN, :]                 # time-shift k (rows aligned to N)
            r = r + jnp.dot(tap, w1_ref[k], preferred_element_type=jnp.float32)
        r = r + b1_ref[0]
        p, q, s = r[:, :H], r[:, H:2 * H], r[:, 2 * H:]
        h1 = jnp.maximum(p * jax.nn.sigmoid(q) + s, 0.0)  # (TN, H)

        # ---- GCN over all T graphs in one MXU pass: (I_T kron A) @ (h1 W + b) ---
        xw = jnp.dot(h1, gw_ref[...], preferred_element_type=jnp.float32) + gb_ref[0]
        agg = jnp.dot(abig_ref[...], xw, preferred_element_type=jnp.float32)
        h2 = jnp.maximum(agg + et_ref[...], 0.0)          # ReLU fused (STConv applies relu)

        # ---- temporal conv 2 (same padding via zero pad rows, kept in VMEM) -----
        zpad = jnp.zeros(((K - 1) // 2 * N, H), jnp.float32)
        hpad = jnp.concatenate([zpad, h2, zpad], axis=0)  # (TpN, H)
        r2 = jnp.zeros((TN, 3 * Cout), jnp.float32)
        for k in range(K):
            tap = hpad[k * N:k * N + TN, :]
            r2 = r2 + jnp.dot(tap, w2_ref[k], preferred_element_type=jnp.float32)
        r2 = r2 + b2_ref[0]
        p2, q2, s2 = r2[:, :Cout], r2[:, Cout:2 * Cout], r2[:, 2 * Cout:]
        o_ref[0] = jnp.maximum(p2 * jax.nn.sigmoid(q2) + s2, 0.0)

    return pl.pallas_call(
        kernel,
        out_shape=jax.ShapeDtypeStruct((B, TN, Cout), jnp.float32),
        grid=(B,),
        in_specs=[
            pl.BlockSpec((1, TpN, Cin), lambda b: (b, 0, 0)),
            pl.BlockSpec(w1.shape, lambda b: (0, 0, 0)),
            pl.BlockSpec(b1.shape, lambda b: (0, 0)),
            pl.BlockSpec(a_big.shape, lambda b: (0, 0)),
            pl.BlockSpec(et_full.shape, lambda b: (0, 0)),
            pl.BlockSpec(gw.shape, lambda b: (0, 0)),
            pl.BlockSpec(gb.shape, lambda b: (0, 0)),
            pl.BlockSpec(w2.shape, lambda b: (0, 0, 0)),
            pl.BlockSpec(b2.shape, lambda b: (0, 0)),
        ],
        out_specs=pl.BlockSpec((1, TN, Cout), lambda b: (b, 0, 0)),
        compiler_params=pltpu.CompilerParams(dimension_semantics=("parallel",)),
    )(xp_flat, w1, b1, a_big, et_full, gw, gb, w2, b2)


# ----------------------------------------------------------------------------
# Graph precompute (glue, XLA): dense normalized adjacency + edge-feature term.
# Scatter ops stay in XLA (data-dependent scatter is not expressible as a BlockSpec).
# ----------------------------------------------------------------------------
def build_adjacency(edge_index, num_nodes):
    src, dst = edge_index[0], edge_index[1]
    deg = jnp.zeros((num_nodes,), jnp.float32).at[dst].add(1.0) + 1.0  # + self-loops
    dinv = 1.0 / jnp.sqrt(deg)
    norm = dinv[src] * dinv[dst]
    a = jnp.zeros((num_nodes, num_nodes), jnp.float32).at[dst, src].add(norm)
    a = a + jnp.diag(dinv * dinv)  # self-loop contribution
    return a, norm


def build_edge_term(edge_index, edge_attr, norm, num_nodes, w_e, b_e):
    dst = edge_index[1]
    edge_emb = edge_attr @ w_e + b_e  # (E, Cout)
    return jnp.zeros((num_nodes, w_e.shape[-1]), jnp.float32).at[dst].add(
        norm[:, None] * edge_emb
    )


# ----------------------------------------------------------------------------
# Parameter init (deterministic, uniform like torch defaults)
# Temporal weights are stored stacked: w: (K, Cin, 3*Cout) with the three gate
# branches (conv_1 / conv_2(sigmoid) / conv_3) concatenated on the output axis.
# ----------------------------------------------------------------------------
def init_temporal_params(key, cin, cout):
    k1, k2 = jax.random.split(key)
    bound = 1.0 / math.sqrt(cin * KSIZE)
    w = jax.random.uniform(k1, (KSIZE, cin, 3 * cout), jnp.float32, -bound, bound)
    b = jax.random.uniform(k2, (1, 3 * cout), jnp.float32, -bound, bound)
    return w, b


def init_gcn_params(key, cin, cin_edge, cout):
    k1, k2, k3, k4 = jax.random.split(key, 4)
    bn = 1.0 / math.sqrt(cin)
    be = 1.0 / math.sqrt(cin_edge)
    w = jax.random.uniform(k1, (cin, cout), jnp.float32, -bn, bn)
    b = jax.random.uniform(k2, (1, cout), jnp.float32, -bn, bn)
    w_e = jax.random.uniform(k3, (cin_edge, cout), jnp.float32, -be, be)
    b_e = jax.random.uniform(k4, (cout,), jnp.float32, -be, be)
    return w, b, w_e, b_e


def init_stconv(key, cin_node, cin_edge, hidden, cout):
    k1, k2, k3 = jax.random.split(key, 3)
    tc1_w, tc1_b = init_temporal_params(k1, cin_node, hidden)
    gcn_w, gcn_b, gcn_we, gcn_be = init_gcn_params(k2, hidden, cin_edge, hidden)
    tc2_w, tc2_b = init_temporal_params(k3, hidden, cout)
    return dict(tc1_w=tc1_w, tc1_b=tc1_b,
                gcn_w=gcn_w, gcn_b=gcn_b, gcn_we=gcn_we, gcn_be=gcn_be,
                tc2_w=tc2_w, tc2_b=tc2_b)


def init_stgcn(key, cin_node, cin_edge, hidden, num_layers):
    keys = jax.random.split(key, num_layers)
    return [init_stconv(keys[layer], cin_node if layer == 0 else hidden,
                        cin_edge, hidden, hidden)
            for layer in range(num_layers)]


# ----------------------------------------------------------------------------
# Forward pass
# ----------------------------------------------------------------------------
@partial(jax.jit, static_argnums=(4,))
def stgcn_forward(params, x, edge_index, edge_attr, num_nodes):
    B, T, N, _ = x.shape
    a_norm, norm = build_adjacency(edge_index, num_nodes)
    # Block-diagonal graph operator over all T timesteps of a batch (computed once).
    a_big = jnp.kron(jnp.eye(T, dtype=jnp.float32), a_norm)      # (T*N, T*N)

    pad = (KSIZE - 1) // 2
    h = x.reshape(B, T * N, -1)                                   # time-major rows
    for p in params:
        edge_term = build_edge_term(edge_index, edge_attr, norm, num_nodes,
                                    p["gcn_we"], p["gcn_be"])     # (N, H)
        et_full = jnp.tile(edge_term, (T, 1))                     # (T*N, H)
        # time-padding = pad*N zero rows on each side of the flattened row axis
        xp = jnp.pad(h, ((0, 0), (pad * N, pad * N), (0, 0)))
        h = stconv_pallas(xp, p["tc1_w"], p["tc1_b"], a_big, et_full,
                          p["gcn_w"], p["gcn_b"], p["tc2_w"], p["tc2_b"],
                          T=T, N=num_nodes)
        # Inter-layer F.relu is a no-op here (gated temporal conv already ends in
        # relu, so outputs are >= 0); F.dropout(p=0) is identity.
    return h.reshape(B, T, N, -1)  # JK == 'last'


# ----------------------------------------------------------------------------
if __name__ == "__main__":
    key = jax.random.PRNGKey(0)
    k_x, k_e, k_p = jax.random.split(key, 3)

    B, T, N = 2, 8, 16
    CIN_NODE, CIN_EDGE, HIDDEN, NUM_LAYERS = 4, 3, 32, 2

    # Input node features (B, T, N, C)
    x = jax.random.normal(k_x, (B, T, N, CIN_NODE), jnp.float32)

    # Small deterministic bidirectional ring graph on N nodes
    src = jnp.arange(N, dtype=jnp.int32)
    dst = (src + 1) % N
    edge_index = jnp.stack([jnp.concatenate([src, dst]),
                            jnp.concatenate([dst, src])], axis=0)  # (2, 2N)
    edge_attr = jax.random.normal(k_e, (edge_index.shape[1], CIN_EDGE), jnp.float32)

    params = init_stgcn(k_p, CIN_NODE, CIN_EDGE, HIDDEN, NUM_LAYERS)

    out = stgcn_forward(params, x, edge_index, edge_attr, N)
    jax.block_until_ready(out)
    assert out.shape == (B, T, N, HIDDEN), out.shape
    assert bool(jnp.all(jnp.isfinite(out)))
    print("KERNEL_OK")
</pallas_src>

<mosaic_0001>
module attributes {stable_mosaic.version = 11 : i64} {
  func.func private @main(%arg0: i32) attributes {dimension_semantics = [#tpu.dimension_semantics<core_parallel>], iteration_bounds = array<i64: 2>, tpu.core_type = #tpu.core_type<sc_scalar_subcore>, window_params = []} {
    return
  }
}

module attributes {stable_mosaic.version = 11 : i64} {
  func.func private @main(%arg0: i32) attributes {dimension_semantics = [#tpu.dimension_semantics<core_parallel>], iteration_bounds = array<i64: 2>, tpu.core_type = #tpu.core_type<sc_scalar_subcore>, window_params = []} {
    return
  }
}

module attributes {stable_mosaic.version = 11 : i64} {
  func.func @kernel(%arg0: i32, %arg1: memref<1x160x32xf32, #tpu.memory_space<vmem>>, %arg2: memref<3x32x96xf32, #tpu.memory_space<vmem>>, %arg3: memref<1x96xf32, #tpu.memory_space<vmem>>, %arg4: memref<128x128xf32, #tpu.memory_space<vmem>>, %arg5: memref<128x32xf32, #tpu.memory_space<vmem>>, %arg6: memref<32x32xf32, #tpu.memory_space<vmem>>, %arg7: memref<1x32xf32, #tpu.memory_space<vmem>>, %arg8: memref<3x32x96xf32, #tpu.memory_space<vmem>>, %arg9: memref<1x96xf32, #tpu.memory_space<vmem>>, %arg10: memref<1x128x32xf32, #tpu.memory_space<vmem>>) attributes {dimension_semantics = [#tpu.dimension_semantics<parallel>], iteration_bounds = array<i64: 2>, scalar_prefetch = 0 : i64, scratch_operands = 0 : i64, tpu.core_type = #tpu.core_type<tc>, window_params = [{transform_indices = @transform_0, window_bounds = array<i64: 1, 160, 32>}, {pipeline_mode = #tpu.pipeline_mode<synchronous>, transform_indices = @transform_1, window_bounds = array<i64: 3, 32, 96>}, {pipeline_mode = #tpu.pipeline_mode<synchronous>, transform_indices = @transform_2, window_bounds = array<i64: 1, 96>}, {pipeline_mode = #tpu.pipeline_mode<synchronous>, transform_indices = @transform_3, window_bounds = array<i64: 128, 128>}, {pipeline_mode = #tpu.pipeline_mode<synchronous>, transform_indices = @transform_4, window_bounds = array<i64: 128, 32>}, {pipeline_mode = #tpu.pipeline_mode<synchronous>, transform_indices = @transform_5, window_bounds = array<i64: 32, 32>}, {pipeline_mode = #tpu.pipeline_mode<synchronous>, transform_indices = @transform_6, window_bounds = array<i64: 1, 32>}, {pipeline_mode = #tpu.pipeline_mode<synchronous>, transform_indices = @transform_7, window_bounds = array<i64: 3, 32, 96>}, {pipeline_mode = #tpu.pipeline_mode<synchronous>, transform_indices = @transform_8, window_bounds = array<i64: 1, 96>}, {transform_indices = @transform_9, window_bounds = array<i64: 1, 128, 32>}]} {
    %c0 = arith.constant 0 : index
    %c0_0 = arith.constant 0 : index
    %c0_1 = arith.constant 0 : index
    %0 = vector.load %arg1[%c0, %c0_0, %c0_1] : memref<1x160x32xf32, #tpu.memory_space<vmem>>, vector<1x160x32xf32>
    %1 = vector.shape_cast %0 : vector<1x160x32xf32> to vector<160x32xf32>
    %cst = arith.constant 0.000000e+00 : f32
    %2 = vector.broadcast %cst : f32 to vector<128x96xf32>
    %3 = vector.extract_strided_slice %1 {offsets = [0, 0], sizes = [128, 32], strides = [1, 1]} : vector<160x32xf32> to vector<128x32xf32>
    %c0_2 = arith.constant 0 : index
    %c0_3 = arith.constant 0 : index
    %c0_4 = arith.constant 0 : index
    %4 = vector.load %arg2[%c0_2, %c0_3, %c0_4] : memref<3x32x96xf32, #tpu.memory_space<vmem>>, vector<1x32x96xf32>
    %5 = vector.shape_cast %4 : vector<1x32x96xf32> to vector<32x96xf32>
    %cst_5 = arith.constant dense<0.000000e+00> : vector<128x96xf32>
    %6 = tpu.matmul %3, %5, %cst_5 {dimension_numbers = #tpu.dot_dimension_numbers<[1], [0], [0], [1], [0, 0, 1, 1], [], []>} : vector<128x32xf32>, vector<32x96xf32>, vector<128x96xf32> -> vector<128x96xf32>
    %7 = arith.addf %2, %6 : vector<128x96xf32>
    %8 = vector.extract_strided_slice %1 {offsets = [16, 0], sizes = [128, 32], strides = [1, 1]} : vector<160x32xf32> to vector<128x32xf32>
    %c1 = arith.constant 1 : index
    %c0_6 = arith.constant 0 : index
    %c0_7 = arith.constant 0 : index
    %9 = vector.load %arg2[%c1, %c0_6, %c0_7] : memref<3x32x96xf32, #tpu.memory_space<vmem>>, vector<1x32x96xf32>
    %10 = vector.shape_cast %9 : vector<1x32x96xf32> to vector<32x96xf32>
    %cst_8 = arith.constant dense<0.000000e+00> : vector<128x96xf32>
    %11 = tpu.matmul %8, %10, %cst_8 {dimension_numbers = #tpu.dot_dimension_numbers<[1], [0], [0], [1], [0, 0, 1, 1], [], []>} : vector<128x32xf32>, vector<32x96xf32>, vector<128x96xf32> -> vector<128x96xf32>
    %12 = arith.addf %7, %11 : vector<128x96xf32>
    %13 = vector.extract_strided_slice %1 {offsets = [32, 0], sizes = [128, 32], strides = [1, 1]} : vector<160x32xf32> to vector<128x32xf32>
    %c2 = arith.constant 2 : index
    %c0_9 = arith.constant 0 : index
    %c0_10 = arith.constant 0 : index
    %14 = vector.load %arg2[%c2, %c0_9, %c0_10] : memref<3x32x96xf32, #tpu.memory_space<vmem>>, vector<1x32x96xf32>
    %15 = vector.shape_cast %14 : vector<1x32x96xf32> to vector<32x96xf32>
    %cst_11 = arith.constant dense<0.000000e+00> : vector<128x96xf32>
    %16 = tpu.matmul %13, %15, %cst_11 {dimension_numbers = #tpu.dot_dimension_numbers<[1], [0], [0], [1], [0, 0, 1, 1], [], []>} : vector<128x32xf32>, vector<32x96xf32>, vector<128x96xf32> -> vector<128x96xf32>
    %17 = arith.addf %12, %16 : vector<128x96xf32>
    %c0_12 = arith.constant 0 : index
    %c0_13 = arith.constant 0 : index
    %18 = vector.load %arg3[%c0_12, %c0_13] : memref<1x96xf32, #tpu.memory_space<vmem>>, vector<1x96xf32>
    %19 = vector.shape_cast %18 : vector<1x96xf32> to vector<96xf32>
    %20 = vector.shape_cast %19 : vector<96xf32> to vector<1x96xf32>
    %21 = vector.broadcast %20 : vector<1x96xf32> to vector<128x96xf32>
    %22 = arith.addf %17, %21 : vector<128x96xf32>
    %23 = vector.extract_strided_slice %22 {offsets = [0, 0], sizes = [128, 32], strides = [1, 1]} : vector<128x96xf32> to vector<128x32xf32>
    %24 = vector.extract_strided_slice %22 {offsets = [0, 32], sizes = [128, 32], strides = [1, 1]} : vector<128x96xf32> to vector<128x32xf32>
    %25 = vector.extract_strided_slice %22 {offsets = [0, 64], sizes = [128, 32], strides = [1, 1]} : vector<128x96xf32> to vector<128x32xf32>
    %26 = arith.negf %24 : vector<128x32xf32>
    %27 = math.exp %26 : vector<128x32xf32>
    %cst_14 = arith.constant 1.000000e+00 : f32
    %28 = vector.broadcast %cst_14 : f32 to vector<128x32xf32>
    %29 = arith.addf %28, %27 : vector<128x32xf32>
    %30 = arith.divf %28, %29 : vector<128x32xf32>
    %31 = arith.mulf %23, %30 : vector<128x32xf32>
    %32 = arith.addf %31, %25 : vector<128x32xf32>
    %cst_15 = arith.constant 0.000000e+00 : f32
    %33 = vector.broadcast %cst_15 : f32 to vector<128x32xf32>
    %34 = arith.maximumf %32, %33 : vector<128x32xf32>
    %c0_16 = arith.constant 0 : index
    %c0_17 = arith.constant 0 : index
    %35 = vector.load %arg6[%c0_16, %c0_17] : memref<32x32xf32, #tpu.memory_space<vmem>>, vector<32x32xf32>
    %cst_18 = arith.constant dense<0.000000e+00> : vector<128x32xf32>
    %36 = tpu.matmul %34, %35, %cst_18 {dimension_numbers = #tpu.dot_dimension_numbers<[1], [0], [0], [1], [0, 0, 1, 1], [], []>} : vector<128x32xf32>, vector<32x32xf32>, vector<128x32xf32> -> vector<128x32xf32>
    %c0_19 = arith.constant 0 : index
    %c0_20 = arith.constant 0 : index
    %37 = vector.load %arg7[%c0_19, %c0_20] : memref<1x32xf32, #tpu.memory_space<vmem>>, vector<1x32xf32>
    %38 = vector.shape_cast %37 : vector<1x32xf32> to vector<32xf32>
    %39 = vector.shape_cast %38 : vector<32xf32> to vector<1x32xf32>
    %40 = vector.broadcast %39 : vector<1x32xf32> to vector<128x32xf32>
    %41 = arith.addf %36, %40 : vector<128x32xf32>
    %c0_21 = arith.constant 0 : index
    %c0_22 = arith.constant 0 : index
    %42 = vector.load %arg4[%c0_21, %c0_22] : memref<128x128xf32, #tpu.memory_space<vmem>>, vector<128x128xf32>
    %cst_23 = arith.constant dense<0.000000e+00> : vector<128x32xf32>
    %43 = tpu.matmul %42, %41, %cst_23 {dimension_numbers = #tpu.dot_dimension_numbers<[1], [0], [0], [1], [0, 0, 1, 1], [], []>} : vector<128x128xf32>, vector<128x32xf32>, vector<128x32xf32> -> vector<128x32xf32>
    %c0_24 = arith.constant 0 : index
    %c0_25 = arith.constant 0 : index
    %44 = vector.load %arg5[%c0_24, %c0_25] : memref<128x32xf32, #tpu.memory_space<vmem>>, vector<128x32xf32>
    %45 = arith.addf %43, %44 : vector<128x32xf32>
    %cst_26 = arith.constant 0.000000e+00 : f32
    %46 = vector.broadcast %cst_26 : f32 to vector<128x32xf32>
    %47 = arith.maximumf %45, %46 : vector<128x32xf32>
    %cst_27 = arith.constant 0.000000e+00 : f32
    %48 = vector.broadcast %cst_27 : f32 to vector<16x32xf32>
    %49 = tpu.concatenate %48, %47, %48 in 0 : vector<16x32xf32>, vector<128x32xf32>, vector<16x32xf32> -> vector<160x32xf32>
    %cst_28 = arith.constant 0.000000e+00 : f32
    %50 = vector.broadcast %cst_28 : f32 to vector<128x96xf32>
    %51 = vector.extract_strided_slice %49 {offsets = [0, 0], sizes = [128, 32], strides = [1, 1]} : vector<160x32xf32> to vector<128x32xf32>
    %c0_29 = arith.constant 0 : index
    %c0_30 = arith.constant 0 : index
    %c0_31 = arith.constant 0 : index
    %52 = vector.load %arg8[%c0_29, %c0_30, %c0_31] : memref<3x32x96xf32, #tpu.memory_space<vmem>>, vector<1x32x96xf32>
    %53 = vector.shape_cast %52 : vector<1x32x96xf32> to vector<32x96xf32>
    %cst_32 = arith.constant dense<0.000000e+00> : vector<128x96xf32>
    %54 = tpu.matmul %51, %53, %cst_32 {dimension_numbers = #tpu.dot_dimension_numbers<[1], [0], [0], [1], [0, 0, 1, 1], [], []>} : vector<128x32xf32>, vector<32x96xf32>, vector<128x96xf32> -> vector<128x96xf32>
    %55 = arith.addf %50, %54 : vector<128x96xf32>
    %56 = vector.extract_strided_slice %49 {offsets = [16, 0], sizes = [128, 32], strides = [1, 1]} : vector<160x32xf32> to vector<128x32xf32>
    %c1_33 = arith.constant 1 : index
    %c0_34 = arith.constant 0 : index
    %c0_35 = arith.constant 0 : index
    %57 = vector.load %arg8[%c1_33, %c0_34, %c0_35] : memref<3x32x96xf32, #tpu.memory_space<vmem>>, vector<1x32x96xf32>
    %58 = vector.shape_cast %57 : vector<1x32x96xf32> to vector<32x96xf32>
    %cst_36 = arith.constant dense<0.000000e+00> : vector<128x96xf32>
    %59 = tpu.matmul %56, %58, %cst_36 {dimension_numbers = #tpu.dot_dimension_numbers<[1], [0], [0], [1], [0, 0, 1, 1], [], []>} : vector<128x32xf32>, vector<32x96xf32>, vector<128x96xf32> -> vector<128x96xf32>
    %60 = arith.addf %55, %59 : vector<128x96xf32>
    %61 = vector.extract_strided_slice %49 {offsets = [32, 0], sizes = [128, 32], strides = [1, 1]} : vector<160x32xf32> to vector<128x32xf32>
    %c2_37 = arith.constant 2 : index
    %c0_38 = arith.constant 0 : index
    %c0_39 = arith.constant 0 : index
    %62 = vector.load %arg8[%c2_37, %c0_38, %c0_39] : memref<3x32x96xf32, #tpu.memory_space<vmem>>, vector<1x32x96xf32>
    %63 = vector.shape_cast %62 : vector<1x32x96xf32> to vector<32x96xf32>
    %cst_40 = arith.constant dense<0.000000e+00> : vector<128x96xf32>
    %64 = tpu.matmul %61, %63, %cst_40 {dimension_numbers = #tpu.dot_dimension_numbers<[1], [0], [0], [1], [0, 0, 1, 1], [], []>} : vector<128x32xf32>, vector<32x96xf32>, vector<128x96xf32> -> vector<128x96xf32>
    %65 = arith.addf %60, %64 : vector<128x96xf32>
    %c0_41 = arith.constant 0 : index
    %c0_42 = arith.constant 0 : index
    %66 = vector.load %arg9[%c0_41, %c0_42] : memref<1x96xf32, #tpu.memory_space<vmem>>, vector<1x96xf32>
    %67 = vector.shape_cast %66 : vector<1x96xf32> to vector<96xf32>
    %68 = vector.shape_cast %67 : vector<96xf32> to vector<1x96xf32>
    %69 = vector.broadcast %68 : vector<1x96xf32> to vector<128x96xf32>
    %70 = arith.addf %65, %69 : vector<128x96xf32>
    %71 = vector.extract_strided_slice %70 {offsets = [0, 0], sizes = [128, 32], strides = [1, 1]} : vector<128x96xf32> to vector<128x32xf32>
    %72 = vector.extract_strided_slice %70 {offsets = [0, 32], sizes = [128, 32], strides = [1, 1]} : vector<128x96xf32> to vector<128x32xf32>
    %73 = vector.extract_strided_slice %70 {offsets = [0, 64], sizes = [128, 32], strides = [1, 1]} : vector<128x96xf32> to vector<128x32xf32>
    %74 = arith.negf %72 : vector<128x32xf32>
    %75 = math.exp %74 : vector<128x32xf32>
    %cst_43 = arith.constant 1.000000e+00 : f32
    %76 = vector.broadcast %cst_43 : f32 to vector<128x32xf32>
    %77 = arith.addf %76, %75 : vector<128x32xf32>
    %78 = arith.divf %76, %77 : vector<128x32xf32>
    %79 = arith.mulf %71, %78 : vector<128x32xf32>
    %80 = arith.addf %79, %73 : vector<128x32xf32>
    %cst_44 = arith.constant 0.000000e+00 : f32
    %81 = vector.broadcast %cst_44 : f32 to vector<128x32xf32>
    %82 = arith.maximumf %80, %81 : vector<128x32xf32>
    %c0_45 = arith.constant 0 : index
    %c0_46 = arith.constant 0 : index
    %c0_47 = arith.constant 0 : index
    %83 = vector.load %arg10[%c0_45, %c0_46, %c0_47] : memref<1x128x32xf32, #tpu.memory_space<vmem>>, vector<1x128x32xf32>
    %84 = vector.shape_cast %83 : vector<1x128x32xf32> to vector<128x32xf32>
    %85 = vector.shape_cast %82 : vector<128x32xf32> to vector<1x128x32xf32>
    tpu.vector_store %arg10[%c0_45, %c0_46, %c0_47], %85 {strides = array<i32>} : memref<1x128x32xf32, #tpu.memory_space<vmem>>, vector<1x128x32xf32>,
    return
  }
  func.func @transform_0(%arg0: i32) -> (i32, i32, i32) {
    %c0_i32 = arith.constant 0 : i32
    %c0_i32_0 = arith.constant 0 : i32
    %c0_i32_1 = arith.constant 0 : i32
    return %arg0, %c0_i32, %c0_i32_0 : i32, i32, i32
  }
  func.func @transform_1(%arg0: i32) -> (i32, i32, i32) {
    %c0_i32 = arith.constant 0 : i32
    %c0_i32_0 = arith.constant 0 : i32
    %c0_i32_1 = arith.constant 0 : i32
    %c0_i32_2 = arith.constant 0 : i32
    return %c0_i32, %c0_i32_0, %c0_i32_1 : i32, i32, i32
  }
  func.func @transform_2(%arg0: i32) -> (i32, i32) {
    %c0_i32 = arith.constant 0 : i32
    %c0_i32_0 = arith.constant 0 : i32
    %c0_i32_1 = arith.constant 0 : i32
    return %c0_i32, %c0_i32_0 : i32, i32
  }
  func.func @transform_3(%arg0: i32) -> (i32, i32) {
    %c0_i32 = arith.constant 0 : i32
    %c0_i32_0 = arith.constant 0 : i32
    %c0_i32_1 = arith.constant 0 : i32
    return %c0_i32, %c0_i32_0 : i32, i32
  }
  func.func @transform_4(%arg0: i32) -> (i32, i32) {
    %c0_i32 = arith.constant 0 : i32
    %c0_i32_0 = arith.constant 0 : i32
    %c0_i32_1 = arith.constant 0 : i32
    return %c0_i32, %c0_i32_0 : i32, i32
  }
  func.func @transform_5(%arg0: i32) -> (i32, i32) {
    %c0_i32 = arith.constant 0 : i32
    %c0_i32_0 = arith.constant 0 : i32
    %c0_i32_1 = arith.constant 0 : i32
    return %c0_i32, %c0_i32_0 : i32, i32
  }
  func.func @transform_6(%arg0: i32) -> (i32, i32) {
    %c0_i32 = arith.constant 0 : i32
    %c0_i32_0 = arith.constant 0 : i32
    %c0_i32_1 = arith.constant 0 : i32
    return %c0_i32, %c0_i32_0 : i32, i32
  }
  func.func @transform_7(%arg0: i32) -> (i32, i32, i32) {
    %c0_i32 = arith.constant 0 : i32
    %c0_i32_0 = arith.constant 0 : i32
    %c0_i32_1 = arith.constant 0 : i32
    %c0_i32_2 = arith.constant 0 : i32
    return %c0_i32, %c0_i32_0, %c0_i32_1 : i32, i32, i32
  }
  func.func @transform_8(%arg0: i32) -> (i32, i32) {
    %c0_i32 = arith.constant 0 : i32
    %c0_i32_0 = arith.constant 0 : i32
    %c0_i32_1 = arith.constant 0 : i32
    return %c0_i32, %c0_i32_0 : i32, i32
  }
  func.func @transform_9(%arg0: i32) -> (i32, i32, i32) {
    %c0_i32 = arith.constant 0 : i32
    %c0_i32_0 = arith.constant 0 : i32
    %c0_i32_1 = arith.constant 0 : i32
    return %arg0, %c0_i32, %c0_i32_0 : i32, i32, i32
  }
}

module attributes {stable_mosaic.version = 11 : i64} {
  func.func @kernel(%arg0: i32, %arg1: memref<1x160x4xf32, #tpu.memory_space<vmem>>, %arg2: memref<3x4x96xf32, #tpu.memory_space<vmem>>, %arg3: memref<1x96xf32, #tpu.memory_space<vmem>>, %arg4: memref<128x128xf32, #tpu.memory_space<vmem>>, %arg5: memref<128x32xf32, #tpu.memory_space<vmem>>, %arg6: memref<32x32xf32, #tpu.memory_space<vmem>>, %arg7: memref<1x32xf32, #tpu.memory_space<vmem>>, %arg8: memref<3x32x96xf32, #tpu.memory_space<vmem>>, %arg9: memref<1x96xf32, #tpu.memory_space<vmem>>, %arg10: memref<1x128x32xf32, #tpu.memory_space<vmem>>) attributes {dimension_semantics = [#tpu.dimension_semantics<parallel>], iteration_bounds = array<i64: 2>, scalar_prefetch = 0 : i64, scratch_operands = 0 : i64, tpu.core_type = #tpu.core_type<tc>, window_params = [{transform_indices = @transform_0, window_bounds = array<i64: 1, 160, 4>}, {pipeline_mode = #tpu.pipeline_mode<synchronous>, transform_indices = @transform_1, window_bounds = array<i64: 3, 4, 96>}, {pipeline_mode = #tpu.pipeline_mode<synchronous>, transform_indices = @transform_2, window_bounds = array<i64: 1, 96>}, {pipeline_mode = #tpu.pipeline_mode<synchronous>, transform_indices = @transform_3, window_bounds = array<i64: 128, 128>}, {pipeline_mode = #tpu.pipeline_mode<synchronous>, transform_indices = @transform_4, window_bounds = array<i64: 128, 32>}, {pipeline_mode = #tpu.pipeline_mode<synchronous>, transform_indices = @transform_5, window_bounds = array<i64: 32, 32>}, {pipeline_mode = #tpu.pipeline_mode<synchronous>, transform_indices = @transform_6, window_bounds = array<i64: 1, 32>}, {pipeline_mode = #tpu.pipeline_mode<synchronous>, transform_indices = @transform_7, window_bounds = array<i64: 3, 32, 96>}, {pipeline_mode = #tpu.pipeline_mode<synchronous>, transform_indices = @transform_8, window_bounds = array<i64: 1, 96>}, {transform_indices = @transform_9, window_bounds = array<i64: 1, 128, 32>}]} {
    %c0 = arith.constant 0 : index
    %c0_0 = arith.constant 0 : index
    %c0_1 = arith.constant 0 : index
    %0 = vector.load %arg1[%c0, %c0_0, %c0_1] : memref<1x160x4xf32, #tpu.memory_space<vmem>>, vector<1x160x4xf32>
    %1 = vector.shape_cast %0 : vector<1x160x4xf32> to vector<160x4xf32>
    %cst = arith.constant 0.000000e+00 : f32
    %2 = vector.broadcast %cst : f32 to vector<128x96xf32>
    %3 = vector.extract_strided_slice %1 {offsets = [0, 0], sizes = [128, 4], strides = [1, 1]} : vector<160x4xf32> to vector<128x4xf32>
    %c0_2 = arith.constant 0 : index
    %c0_3 = arith.constant 0 : index
    %c0_4 = arith.constant 0 : index
    %4 = vector.load %arg2[%c0_2, %c0_3, %c0_4] : memref<3x4x96xf32, #tpu.memory_space<vmem>>, vector<1x4x96xf32>
    %5 = vector.shape_cast %4 : vector<1x4x96xf32> to vector<4x96xf32>
    %cst_5 = arith.constant dense<0.000000e+00> : vector<128x96xf32>
    %6 = tpu.matmul %3, %5, %cst_5 {dimension_numbers = #tpu.dot_dimension_numbers<[1], [0], [0], [1], [0, 0, 1, 1], [], []>} : vector<128x4xf32>, vector<4x96xf32>, vector<128x96xf32> -> vector<128x96xf32>
    %7 = arith.addf %2, %6 : vector<128x96xf32>
    %8 = vector.extract_strided_slice %1 {offsets = [16, 0], sizes = [128, 4], strides = [1, 1]} : vector<160x4xf32> to vector<128x4xf32>
    %c1 = arith.constant 1 : index
    %c0_6 = arith.constant 0 : index
    %c0_7 = arith.constant 0 : index
    %9 = vector.load %arg2[%c1, %c0_6, %c0_7] : memref<3x4x96xf32, #tpu.memory_space<vmem>>, vector<1x4x96xf32>
    %10 = vector.shape_cast %9 : vector<1x4x96xf32> to vector<4x96xf32>
    %cst_8 = arith.constant dense<0.000000e+00> : vector<128x96xf32>
    %11 = tpu.matmul %8, %10, %cst_8 {dimension_numbers = #tpu.dot_dimension_numbers<[1], [0], [0], [1], [0, 0, 1, 1], [], []>} : vector<128x4xf32>, vector<4x96xf32>, vector<128x96xf32> -> vector<128x96xf32>
    %12 = arith.addf %7, %11 : vector<128x96xf32>
    %13 = vector.extract_strided_slice %1 {offsets = [32, 0], sizes = [128, 4], strides = [1, 1]} : vector<160x4xf32> to vector<128x4xf32>
    %c2 = arith.constant 2 : index
    %c0_9 = arith.constant 0 : index
    %c0_10 = arith.constant 0 : index
    %14 = vector.load %arg2[%c2, %c0_9, %c0_10] : memref<3x4x96xf32, #tpu.memory_space<vmem>>, vector<1x4x96xf32>
    %15 = vector.shape_cast %14 : vector<1x4x96xf32> to vector<4x96xf32>
    %cst_11 = arith.constant dense<0.000000e+00> : vector<128x96xf32>
    %16 = tpu.matmul %13, %15, %cst_11 {dimension_numbers = #tpu.dot_dimension_numbers<[1], [0], [0], [1], [0, 0, 1, 1], [], []>} : vector<128x4xf32>, vector<4x96xf32>, vector<128x96xf32> -> vector<128x96xf32>
    %17 = arith.addf %12, %16 : vector<128x96xf32>
    %c0_12 = arith.constant 0 : index
    %c0_13 = arith.constant 0 : index
    %18 = vector.load %arg3[%c0_12, %c0_13] : memref<1x96xf32, #tpu.memory_space<vmem>>, vector<1x96xf32>
    %19 = vector.shape_cast %18 : vector<1x96xf32> to vector<96xf32>
    %20 = vector.shape_cast %19 : vector<96xf32> to vector<1x96xf32>
    %21 = vector.broadcast %20 : vector<1x96xf32> to vector<128x96xf32>
    %22 = arith.addf %17, %21 : vector<128x96xf32>
    %23 = vector.extract_strided_slice %22 {offsets = [0, 0], sizes = [128, 32], strides = [1, 1]} : vector<128x96xf32> to vector<128x32xf32>
    %24 = vector.extract_strided_slice %22 {offsets = [0, 32], sizes = [128, 32], strides = [1, 1]} : vector<128x96xf32> to vector<128x32xf32>
    %25 = vector.extract_strided_slice %22 {offsets = [0, 64], sizes = [128, 32], strides = [1, 1]} : vector<128x96xf32> to vector<128x32xf32>
    %26 = arith.negf %24 : vector<128x32xf32>
    %27 = math.exp %26 : vector<128x32xf32>
    %cst_14 = arith.constant 1.000000e+00 : f32
    %28 = vector.broadcast %cst_14 : f32 to vector<128x32xf32>
    %29 = arith.addf %28, %27 : vector<128x32xf32>
    %30 = arith.divf %28, %29 : vector<128x32xf32>
    %31 = arith.mulf %23, %30 : vector<128x32xf32>
    %32 = arith.addf %31, %25 : vector<128x32xf32>
    %cst_15 = arith.constant 0.000000e+00 : f32
    %33 = vector.broadcast %cst_15 : f32 to vector<128x32xf32>
    %34 = arith.maximumf %32, %33 : vector<128x32xf32>
    %c0_16 = arith.constant 0 : index
    %c0_17 = arith.constant 0 : index
    %35 = vector.load %arg6[%c0_16, %c0_17] : memref<32x32xf32, #tpu.memory_space<vmem>>, vector<32x32xf32>
    %cst_18 = arith.constant dense<0.000000e+00> : vector<128x32xf32>
    %36 = tpu.matmul %34, %35, %cst_18 {dimension_numbers = #tpu.dot_dimension_numbers<[1], [0], [0], [1], [0, 0, 1, 1], [], []>} : vector<128x32xf32>, vector<32x32xf32>, vector<128x32xf32> -> vector<128x32xf32>
    %c0_19 = arith.constant 0 : index
    %c0_20 = arith.constant 0 : index
    %37 = vector.load %arg7[%c0_19, %c0_20] : memref<1x32xf32, #tpu.memory_space<vmem>>, vector<1x32xf32>
    %38 = vector.shape_cast %37 : vector<1x32xf32> to vector<32xf32>
    %39 = vector.shape_cast %38 : vector<32xf32> to vector<1x32xf32>
    %40 = vector.broadcast %39 : vector<1x32xf32> to vector<128x32xf32>
    %41 = arith.addf %36, %40 : vector<128x32xf32>
    %c0_21 = arith.constant 0 : index
    %c0_22 = arith.constant 0 : index
    %42 = vector.load %arg4[%c0_21, %c0_22] : memref<128x128xf32, #tpu.memory_space<vmem>>, vector<128x128xf32>
    %cst_23 = arith.constant dense<0.000000e+00> : vector<128x32xf32>
    %43 = tpu.matmul %42, %41, %cst_23 {dimension_numbers = #tpu.dot_dimension_numbers<[1], [0], [0], [1], [0, 0, 1, 1], [], []>} : vector<128x128xf32>, vector<128x32xf32>, vector<128x32xf32> -> vector<128x32xf32>
    %c0_24 = arith.constant 0 : index
    %c0_25 = arith.constant 0 : index
    %44 = vector.load %arg5[%c0_24, %c0_25] : memref<128x32xf32, #tpu.memory_space<vmem>>, vector<128x32xf32>
    %45 = arith.addf %43, %44 : vector<128x32xf32>
    %cst_26 = arith.constant 0.000000e+00 : f32
    %46 = vector.broadcast %cst_26 : f32 to vector<128x32xf32>
    %47 = arith.maximumf %45, %46 : vector<128x32xf32>
    %cst_27 = arith.constant 0.000000e+00 : f32
    %48 = vector.broadcast %cst_27 : f32 to vector<16x32xf32>
    %49 = tpu.concatenate %48, %47, %48 in 0 : vector<16x32xf32>, vector<128x32xf32>, vector<16x32xf32> -> vector<160x32xf32>
    %cst_28 = arith.constant 0.000000e+00 : f32
    %50 = vector.broadcast %cst_28 : f32 to vector<128x96xf32>
    %51 = vector.extract_strided_slice %49 {offsets = [0, 0], sizes = [128, 32], strides = [1, 1]} : vector<160x32xf32> to vector<128x32xf32>
    %c0_29 = arith.constant 0 : index
    %c0_30 = arith.constant 0 : index
    %c0_31 = arith.constant 0 : index
    %52 = vector.load %arg8[%c0_29, %c0_30, %c0_31] : memref<3x32x96xf32, #tpu.memory_space<vmem>>, vector<1x32x96xf32>
    %53 = vector.shape_cast %52 : vector<1x32x96xf32> to vector<32x96xf32>
    %cst_32 = arith.constant dense<0.000000e+00> : vector<128x96xf32>
    %54 = tpu.matmul %51, %53, %cst_32 {dimension_numbers = #tpu.dot_dimension_numbers<[1], [0], [0], [1], [0, 0, 1, 1], [], []>} : vector<128x32xf32>, vector<32x96xf32>, vector<128x96xf32> -> vector<128x96xf32>
    %55 = arith.addf %50, %54 : vector<128x96xf32>
    %56 = vector.extract_strided_slice %49 {offsets = [16, 0], sizes = [128, 32], strides = [1, 1]} : vector<160x32xf32> to vector<128x32xf32>
    %c1_33 = arith.constant 1 : index
    %c0_34 = arith.constant 0 : index
    %c0_35 = arith.constant 0 : index
    %57 = vector.load %arg8[%c1_33, %c0_34, %c0_35] : memref<3x32x96xf32, #tpu.memory_space<vmem>>, vector<1x32x96xf32>
    %58 = vector.shape_cast %57 : vector<1x32x96xf32> to vector<32x96xf32>
    %cst_36 = arith.constant dense<0.000000e+00> : vector<128x96xf32>
    %59 = tpu.matmul %56, %58, %cst_36 {dimension_numbers = #tpu.dot_dimension_numbers<[1], [0], [0], [1], [0, 0, 1, 1], [], []>} : vector<128x32xf32>, vector<32x96xf32>, vector<128x96xf32> -> vector<128x96xf32>
    %60 = arith.addf %55, %59 : vector<128x96xf32>
    %61 = vector.extract_strided_slice %49 {offsets = [32, 0], sizes = [128, 32], strides = [1, 1]} : vector<160x32xf32> to vector<128x32xf32>
    %c2_37 = arith.constant 2 : index
    %c0_38 = arith.constant 0 : index
    %c0_39 = arith.constant 0 : index
    %62 = vector.load %arg8[%c2_37, %c0_38, %c0_39] : memref<3x32x96xf32, #tpu.memory_space<vmem>>, vector<1x32x96xf32>
    %63 = vector.shape_cast %62 : vector<1x32x96xf32> to vector<32x96xf32>
    %cst_40 = arith.constant dense<0.000000e+00> : vector<128x96xf32>
    %64 = tpu.matmul %61, %63, %cst_40 {dimension_numbers = #tpu.dot_dimension_numbers<[1], [0], [0], [1], [0, 0, 1, 1], [], []>} : vector<128x32xf32>, vector<32x96xf32>, vector<128x96xf32> -> vector<128x96xf32>
    %65 = arith.addf %60, %64 : vector<128x96xf32>
    %c0_41 = arith.constant 0 : index
    %c0_42 = arith.constant 0 : index
    %66 = vector.load %arg9[%c0_41, %c0_42] : memref<1x96xf32, #tpu.memory_space<vmem>>, vector<1x96xf32>
    %67 = vector.shape_cast %66 : vector<1x96xf32> to vector<96xf32>
    %68 = vector.shape_cast %67 : vector<96xf32> to vector<1x96xf32>
    %69 = vector.broadcast %68 : vector<1x96xf32> to vector<128x96xf32>
    %70 = arith.addf %65, %69 : vector<128x96xf32>
    %71 = vector.extract_strided_slice %70 {offsets = [0, 0], sizes = [128, 32], strides = [1, 1]} : vector<128x96xf32> to vector<128x32xf32>
    %72 = vector.extract_strided_slice %70 {offsets = [0, 32], sizes = [128, 32], strides = [1, 1]} : vector<128x96xf32> to vector<128x32xf32>
    %73 = vector.extract_strided_slice %70 {offsets = [0, 64], sizes = [128, 32], strides = [1, 1]} : vector<128x96xf32> to vector<128x32xf32>
    %74 = arith.negf %72 : vector<128x32xf32>
    %75 = math.exp %74 : vector<128x32xf32>
    %cst_43 = arith.constant 1.000000e+00 : f32
    %76 = vector.broadcast %cst_43 : f32 to vector<128x32xf32>
    %77 = arith.addf %76, %75 : vector<128x32xf32>
    %78 = arith.divf %76, %77 : vector<128x32xf32>
    %79 = arith.mulf %71, %78 : vector<128x32xf32>
    %80 = arith.addf %79, %73 : vector<128x32xf32>
    %cst_44 = arith.constant 0.000000e+00 : f32
    %81 = vector.broadcast %cst_44 : f32 to vector<128x32xf32>
    %82 = arith.maximumf %80, %81 : vector<128x32xf32>
    %c0_45 = arith.constant 0 : index
    %c0_46 = arith.constant 0 : index
    %c0_47 = arith.constant 0 : index
    %83 = vector.load %arg10[%c0_45, %c0_46, %c0_47] : memref<1x128x32xf32, #tpu.memory_space<vmem>>, vector<1x128x32xf32>
    %84 = vector.shape_cast %83 : vector<1x128x32xf32> to vector<128x32xf32>
    %85 = vector.shape_cast %82 : vector<128x32xf32> to vector<1x128x32xf32>
    tpu.vector_store %arg10[%c0_45, %c0_46, %c0_47], %85 {strides = array<i32>} : memref<1x128x32xf32, #tpu.memory_space<vmem>>, vector<1x128x32xf32>,
    return
  }
  func.func @transform_0(%arg0: i32) -> (i32, i32, i32) {
    %c0_i32 = arith.constant 0 : i32
    %c0_i32_0 = arith.constant 0 : i32
    %c0_i32_1 = arith.constant 0 : i32
    return %arg0, %c0_i32, %c0_i32_0 : i32, i32, i32
  }
  func.func @transform_1(%arg0: i32) -> (i32, i32, i32) {
    %c0_i32 = arith.constant 0 : i32
    %c0_i32_0 = arith.constant 0 : i32
    %c0_i32_1 = arith.constant 0 : i32
    %c0_i32_2 = arith.constant 0 : i32
    return %c0_i32, %c0_i32_0, %c0_i32_1 : i32, i32, i32
  }
  func.func @transform_2(%arg0: i32) -> (i32, i32) {
    %c0_i32 = arith.constant 0 : i32
    %c0_i32_0 = arith.constant 0 : i32
    %c0_i32_1 = arith.constant 0 : i32
    return %c0_i32, %c0_i32_0 : i32, i32
  }
  func.func @transform_3(%arg0: i32) -> (i32, i32) {
    %c0_i32 = arith.constant 0 : i32
    %c0_i32_0 = arith.constant 0 : i32
    %c0_i32_1 = arith.constant 0 : i32
    return %c0_i32, %c0_i32_0 : i32, i32
  }
  func.func @transform_4(%arg0: i32) -> (i32, i32) {
    %c0_i32 = arith.constant 0 : i32
    %c0_i32_0 = arith.constant 0 : i32
    %c0_i32_1 = arith.constant 0 : i32
    return %c0_i32, %c0_i32_0 : i32, i32
  }
  func.func @transform_5(%arg0: i32) -> (i32, i32) {
    %c0_i32 = arith.constant 0 : i32
    %c0_i32_0 = arith.constant 0 : i32
    %c0_i32_1 = arith.constant 0 : i32
    return %c0_i32, %c0_i32_0 : i32, i32
  }
  func.func @transform_6(%arg0: i32) -> (i32, i32) {
    %c0_i32 = arith.constant 0 : i32
    %c0_i32_0 = arith.constant 0 : i32
    %c0_i32_1 = arith.constant 0 : i32
    return %c0_i32, %c0_i32_0 : i32, i32
  }
  func.func @transform_7(%arg0: i32) -> (i32, i32, i32) {
    %c0_i32 = arith.constant 0 : i32
    %c0_i32_0 = arith.constant 0 : i32
    %c0_i32_1 = arith.constant 0 : i32
    %c0_i32_2 = arith.constant 0 : i32
    return %c0_i32, %c0_i32_0, %c0_i32_1 : i32, i32, i32
  }
  func.func @transform_8(%arg0: i32) -> (i32, i32) {
    %c0_i32 = arith.constant 0 : i32
    %c0_i32_0 = arith.constant 0 : i32
    %c0_i32_1 = arith.constant 0 : i32
    return %c0_i32, %c0_i32_0 : i32, i32
  }
  func.func @transform_9(%arg0: i32) -> (i32, i32, i32) {
    %c0_i32 = arith.constant 0 : i32
    %c0_i32_0 = arith.constant 0 : i32
    %c0_i32_1 = arith.constant 0 : i32
    return %arg0, %c0_i32, %c0_i32_0 : i32, i32, i32
  }
}

</mosaic_0001>

<bundles_post_ra>
// kernel: mul.24
= control target key start
LH: loop header
LB: loop body
LE: loop exit
PB: predicated region body
PF: predicated region fallthrough
CT: control target
= control target key end

     0   :  { %s34_s0 = inlined_call_operand.vmem [shape: f32[32], index: 0, kind: input, shape index: {}]   ;;  %s35_s1 = inlined_call_operand.vmem [shape: f32[32], index: 1, kind: input, shape index: {}]   ;;  %s36_s2 = inlined_call_operand.vmem [shape: f32[32], index: 2, kind: output, shape index: {}]  }
   0x1   :  { %v3_v0 = vld [vmem:[%s34_s0] sm:$0x1] }
   0x2   :  { %v4_v1 = vld [vmem:[%s35_s1] sm:$0x1] }
   0x3   :  { %v7_v2 = vmul.f32 %v4_v1, %v3_v0 }
   0x5   :  { %9 = vst [vmem:[%s36_s2] sm:$0x1] %v7_v2 }

// kernel: stgcn_forward.2
= control target key start
LH: loop header
LB: loop body
LE: loop exit
PB: predicated region body
PF: predicated region fallthrough
CT: control target
= control target key end

     0   :  { %s3376_s30 = smov 0   ;;  %s4049_s0 = inlined_call_operand.vmem [shape: f32[2,160,4], index: 0, kind: input, shape index: {}]   ;;  %s4050_s1 = inlined_call_operand.vmem [shape: f32[3,4,96], index: 1, kind: input, shape index: {}]   ;;  %s4051_s2 = inlined_call_operand.vmem [shape: f32[1,96], index: 2, kind: input, shape index: {}]   ;;  %s4052_s3 = inlined_call_operand.vmem [shape: f32[128,128], index: 3, kind: input, shape index: {}]   ;;  %s4053_s4 = inlined_call_operand.vmem [shape: f32[128,32], index: 4, kind: input, shape index: {}]   ;;  %s4054_s5 = inlined_call_operand.vmem [shape: f32[32,32], index: 5, kind: input, shape index: {}]   ;;  %s4055_s6 = inlined_call_operand.vmem [shape: f32[1,32], index: 6, kind: input, shape index: {}]   ;;  %s4056_s7 = inlined_call_operand.vmem [shape: f32[3,32,96], index: 7, kind: input, shape index: {}]   ;;  %s4057_s8 = inlined_call_operand.vmem [shape: f32[1,96], index: 8, kind: input, shape index: {}]   ;;  %s4058_s9 = inlined_call_operand.vmem [shape: f32[2,128,32], index: 9, kind: output, shape index: {}]  }
   0x1 LB: > { %s2455_s10 = sadd.s32 4294967295, %s3321_s30   ;;  %p2459_p0 = scmp.ge.s32.totalorder %s3321_s30, 1  ;;  %s3321_s30 = sphi %s3376_s30, %s19_s30  }
   0x2   : > { %p287_p1 = scmp.lt.s32.totalorder %s3321_s30, 3 }
   0x4   : > { %p288_p2 = pnand %p2459_p0, %p287_p1 }
   0x5   : > { %v2463_v0 = vld [vmem:[%s4050_s1 + $0x4] sm:$0xf] (!%p288_p2)  ;;  %vm405_vm0 = vcmask (!%p288_p2), 1043456   ;;  %p323_p3 = scmp.lt.s32.totalorder (!%p288_p2), %s2455_s10, 1  ;;  %v353_v1 = vld [vmem:[%s4050_s1] sm:$0xf] (!%p288_p2) }
   0x6   : > { %291 = sbr.rel (%p288_p2) target bundleno = 1380 (0x564), region = 56  ;;  %2785 = vmatprep.subr.msk.mxu0 (!%p288_p2), %vm405_vm0, %v2463_v0  ;;  %vm356_vm1 = vcmask (!%p288_p2), 31744   ;;  %v2498_v5 = vld [vmem:[%s4050_s1 + $0x8] sm:$0xf] (!%p288_p2)  ;;  %v3478_v23 = vld [vmem:[%s4051_s2] ss:$0 sm:$0xff] (!%p288_p2) }
   0x7   : > { %2786 = vmatpush3.msk.msra.mxu0 (!%p288_p2), %vm405_vm0, %v2463_v0  ;;  %s3323_s23 = smov (!%p288_p2), 64   ;;  %v1175_v0 = vld [vmem:[%s4054_s5] sm:$0xff] (!%p288_p2)  ;;  %s3324_s13 = smov (!%p288_p2), 96   ;;  %vm1186_vm2 = vcmask (!%p288_p2), 261120  }
   0x8   : > { %2811 = vmatprep.subr.msk.mxu0 (!%p288_p2), %vm405_vm0, %v353_v1 }
   0xd   : > { %s4060_s10 = smov (!%p323_p3, %s2455_s10), 1 }
   0xe   : > { %s3175_s15 = smul.u32 160, %s4060_s10 }
  0x10   : > { %s3399_s18 = scalar_lea.vmem %s4049_s0, %s3175_s15 }
  0x11   : > { %v335_v2 = vld [vmem:[%s3399_s18 + $0x10] sm:$0xff]  ;;  %v336_v3 = vld [vmem:[%s3399_s18 + $0x18] sm:$0xff]  ;;  %v337_v4 = vld [vmem:[%s3399_s18 + $0x20] sm:$0xff] }
  0x12   : > { %2787 = vmatprep.mubr.msk.f32.mxu0 %vm356_vm1, %v335_v2  ;;  %v338_v6 = vld [vmem:[%s3399_s18 + $0x28] sm:$0xff]  ;;  %v339_v7 = vld [vmem:[%s3399_s18 + $0x30] sm:$0xff]  ;;  %v340_v8 = vld [vmem:[%s3399_s18 + $0x38] sm:$0xff] }
  0x13   : > { %2788 = vmatmul.mubr.msk.f32.vlgmr.msra.gmra.mrb[0].mxu0 %vm356_vm1, %v336_v3  ;;  %v341_v9 = vld [vmem:[%s3399_s18 + $0x40] sm:$0xff]  ;;  %v342_v10 = vld [vmem:[%s3399_s18 + $0x48] sm:$0xff]  ;;  %v343_v11 = vld [vmem:[%s3399_s18 + $0x50] sm:$0xff] }
  0x14   : > { %2812 = vmatpush3.msk.msra.mxu0 %vm405_vm0, %v353_v1  ;;  %2790 = vmatprep.mubr.msk.f32.mxu0 %vm356_vm1, %v337_v4  ;;  %v344_v12 = vld [vmem:[%s3399_s18 + $0x58] sm:$0xff]  ;;  %v345_v13 = vld [vmem:[%s3399_s18 + $0x60] sm:$0xff]  ;;  %v346_v14 = vld [vmem:[%s3399_s18 + $0x68] sm:$0xff] }
  0x15   : > { %2837 = vmatprep.subr.msk.mxu0 %vm405_vm0, %v2498_v5  ;;  %v347_v15 = vld [vmem:[%s3399_s18 + $0x70] sm:$0xff]  ;;  %v348_v16 = vld [vmem:[%s3399_s18 + $0x78] sm:$0xff]  ;;  %v349_v17 = vld [vmem:[%s3399_s18 + $0x80] sm:$0xff] }
  0x16   : > { %v350_v18 = vld [vmem:[%s3399_s18 + $0x88] sm:$0xff]  ;;  %v333_v19 = vld [vmem:[%s3399_s18] sm:$0xff]  ;;  %v351_v21 = vld [vmem:[%s3399_s18 + $0x90] sm:$0xff] }
  0x17   : > { %2791 = vmatmul.mubr.msk.f32.gmra.mrb[2].mxu0 %vm356_vm1, %v338_v6  ;;  %v334_v20 = vld [vmem:[%s3399_s18 + $0x8] sm:$0xff]  ;;  %v352_v22 = vld [vmem:[%s3399_s18 + $0x98] sm:$0xff] }
  0x18   : > { %2793 = vmatprep.mubr.msk.f32.mxu0 %vm356_vm1, %v339_v7  ;;  %v1176_v1 = vld [vmem:[%s4054_s5 + $0x8] sm:$0xff] }
  0x1b   : > { %2794 = vmatmul.mubr.msk.f32.gmra.mrb[4].mxu0 %vm356_vm1, %v340_v8 }
  0x1c   : > { %2796 = vmatprep.mubr.msk.f32.mxu0 %vm356_vm1, %v341_v9 }
  0x1f   : > { %2797 = vmatmul.mubr.msk.f32.gmra.mrb[6].mxu0 %vm356_vm1, %v342_v10 }
  0x20   : > { %2799 = vmatprep.mubr.msk.f32.mxu0 %vm356_vm1, %v343_v11 }
  0x23   : > { %2800 = vmatmul.mubr.msk.f32.gmra.mrb[8].mxu0 %vm356_vm1, %v344_v12 }
  0x24   : > { %2802 = vmatprep.mubr.msk.f32.mxu0 %vm356_vm1, %v345_v13 }
  0x27   : > { %2803 = vmatmul.mubr.msk.f32.gmra.mrb[10].mxu0 %vm356_vm1, %v346_v14 }
  0x28   : > { %2805 = vmatprep.mubr.msk.f32.mxu0 %vm356_vm1, %v347_v15 }
  0x2b   : > { %2806 = vmatmul.mubr.msk.f32.gmra.mrb[12].mxu0 %vm356_vm1, %v348_v16 }
  0x2c   : > { %2808 = vmatprep.mubr.msk.f32.mxu0 %vm356_vm1, %v349_v17 }
  0x2f   : > { %2809 = vmatmul.mubr.msk.f32.gmra.mrb[14].mxu0 %vm356_vm1, %v350_v18 }
  0x30   : > { %2813 = vmatprep.mubr.msk.f32.mxu0 %vm356_vm1, %v333_v19 }
  0x33   : > { %2814 = vmatmul.mubr.msk.f32.vlgmr.msra.gmra.mrb[0].mxu0 %vm356_vm1, %v334_v20 }
  0x34   : > { %2838 = vmatpush3.msk.msra.mxu0 %vm405_vm0, %v2498_v5  ;;  %2816 = vmatprep.mubr.msk.f32.mxu0 %vm356_vm1, %v335_v2 }
  0x37   : > { %2817 = vmatmul.mubr.msk.f32.gmra.mrb[2].mxu0 %vm356_vm1, %v336_v3 }
  0x38   : > { %2819 = vmatprep.mubr.msk.f32.mxu0 %vm356_vm1, %v337_v4 }
  0x3b   : > { %2820 = vmatmul.mubr.msk.f32.gmra.mrb[4].mxu0 %vm356_vm1, %v338_v6 }
  0x3c   : > { %2822 = vmatprep.mubr.msk.f32.mxu0 %vm356_vm1, %v339_v7 }
  0x3f   : > { %2823 = vmatmul.mubr.msk.f32.gmra.mrb[6].mxu0 %vm356_vm1, %v340_v8 }
  0x40   : > { %2825 = vmatprep.mubr.msk.f32.mxu0 %vm356_vm1, %v341_v9 }
  0x43   : > { %2826 = vmatmul.mubr.msk.f32.gmra.mrb[8].mxu0 %vm356_vm1, %v342_v10 }
  0x44   : > { %2828 = vmatprep.mubr.msk.f32.mxu0 %vm356_vm1, %v343_v11 }
  0x47   : > { %2829 = vmatmul.mubr.msk.f32.gmra.mrb[10].mxu0 %vm356_vm1, %v344_v12 }
  0x48   : > { %2831 = vmatprep.mubr.msk.f32.mxu0 %vm356_vm1, %v345_v13 }
  0x4b   : > { %2832 = vmatmul.mubr.msk.f32.gmra.mrb[12].mxu0 %vm356_vm1, %v346_v14 }
  0x4c   : > { %2834 = vmatprep.mubr.msk.f32.mxu0 %vm356_vm1, %v347_v15 }
  0x4f   : > { %2835 = vmatmul.mubr.msk.f32.gmra.mrb[14].mxu0 %vm356_vm1, %v348_v16 }
  0x50   : > { %2839 = vmatprep.mubr.msk.f32.mxu0 %vm356_vm1, %v337_v4  ;;  %v3047_v4 = vpack.c.bf16 %v1176_v1, %v1175_v0 }
  0x52   : > { %3048 = vmatprep.subr.bf16.mxu1 %v3047_v4 }
  0x53   : > { %2840 = vmatmul.mubr.msk.f32.vlgmr.msra.gmra.mrb[0].mxu0 %vm356_vm1, %v338_v6  ;;  %3050 = vmatpush3.bf16.msra.mxu1 %v3047_v4 }
  0x54   : > { %2842 = vmatprep.mubr.msk.f32.mxu0 %vm356_vm1, %v339_v7 }
  0x57   : > { %2843 = vmatmul.mubr.msk.f32.gmra.mrb[2].mxu0 %vm356_vm1, %v340_v8 }
  0x58   : > { %2845 = vmatprep.mubr.msk.f32.mxu0 %vm356_vm1, %v341_v9 }
  0x5b   : > { %2846 = vmatmul.mubr.msk.f32.gmra.mrb[4].mxu0 %vm356_vm1, %v342_v10 }
  0x5c   : > { %2848 = vmatprep.mubr.msk.f32.mxu0 %vm356_vm1, %v343_v11 }
  0x5f   : > { %2849 = vmatmul.mubr.msk.f32.gmra.mrb[6].mxu0 %vm356_vm1, %v344_v12  ;;  %v1177_v12 = vld [vmem:[%s4054_s5 + $0x10] sm:$0xff] }
  0x60   : > { %2851 = vmatprep.mubr.msk.f32.mxu0 %vm356_vm1, %v345_v13  ;;  %v1178_v13 = vld [vmem:[%s4054_s5 + $0x18] sm:$0xff] }
  0x63   : > { %2852 = vmatmul.mubr.msk.f32.gmra.mrb[8].mxu0 %vm356_vm1, %v346_v14 }
  0x64   : > { %2854 = vmatprep.mubr.msk.f32.mxu0 %vm356_vm1, %v347_v15 }
  0x67   : > { %2855 = vmatmul.mubr.msk.f32.gmra.mrb[10].mxu0 %vm356_vm1, %v348_v16  ;;  %v3051_v16 = vpack.c.bf16 %v1178_v13, %v1177_v12 }
  0x68   : > { %2857 = vmatprep.mubr.msk.f32.mxu0 %vm356_vm1, %v349_v17 }
  0x69   : > { %3052 = vmatprep.subr.bf16.mxu1 %v3051_v16 }
  0x6a   : > { %3054 = vmatpush3.bf16.msra.mxu1 %v3051_v16 }
  0x6b   : > { %2858 = vmatmul.mubr.msk.f32.gmra.mrb[12].mxu0 %vm356_vm1, %v350_v18 }
  0x6c   : > { %2860 = vmatprep.mubr.msk.f32.mxu0 %vm356_vm1, %v351_v21 }
  0x6f   : > { %2861 = vmatmul.mubr.msk.f32.gmra.mrb[14].mxu0 %vm356_vm1, %v352_v22 }
 0x126   : > { %v2841_v24 = vpop.f32.mrb[0].mxu0 }
 0x127   : > { %v3481_v25 = vadd.f32 %v2841_v24, %v3478_v23  ;;  %v785_v26 = vpop.f32.mrb[1].mxu0 }
 0x128   : > { %v3484_v27 = vadd.f32 %v3478_v23, %v785_v26 }
 0x129   : > { %v2518_v28 = vmul.f32 -1.442695, %v3481_v25  ;;  %1097 = vrot.lane.b32.xlu1 %v3481_v25, %s3323_s23 }
 0x12a   : > { %v2517_v29 = vmul.f32 -1.442695, %v3484_v27  ;;  %v2844_v30 = vpop.f32.mrb[2].mxu0 }
 0x12b   : > { %3187 = vpow2.f32 %v2518_v28  ;;  %v3491_v31 = vadd.f32 %v2844_v30, %v3478_v23  ;;  %v795_v32 = vpop.f32.mrb[3].mxu0 }
 0x12c   : > { %3189 = vpow2.f32 %v2517_v29  ;;  %v3494_v33 = vadd.f32 %v3478_v23, %v795_v32 }
 0x12d   : > { %v2520_v34 = vmul.f32 -1.442695, %v3491_v31  ;;  %1095 = vrot.lane.b32.xlu1 %v3484_v27, %s3323_s23 }
 0x12e   : > { %v2519_v35 = vmul.f32 -1.442695, %v3494_v33  ;;  %1099 = vrot.lane.b32.xlu0 %v3494_v33, %s3323_s23  ;;  %v2847_v36 = vpop.f32.mrb[4].mxu0 }
 0x12f   : > { %3191 = vpow2.f32 %v2520_v34  ;;  %v3503_v37 = vadd.f32 %v2847_v36, %v3478_v23  ;;  %v805_v38 = vpop.f32.mrb[5].mxu0 }
 0x130   : > { %3193 = vpow2.f32 %v2519_v35  ;;  %v3506_v39 = vadd.f32 %v3478_v23, %v805_v38 }
 0x131   : > { %v2522_v40 = vmul.f32 -1.442695, %v3503_v37  ;;  %1101 = vrot.lane.b32.xlu1 %v3491_v31, %s3323_s23 }
 0x132   : > { %v2521_v41 = vmul.f32 -1.442695, %v3506_v39  ;;  %1103 = vrot.lane.b32.xlu0 %v3506_v39, %s3323_s23  ;;  %v2850_v42 = vpop.f32.mrb[6].mxu0 }
 0x133   : > { %3195 = vpow2.f32 %v2522_v40  ;;  %v3515_v43 = vadd.f32 %v2850_v42, %v3478_v23  ;;  %v815_v44 = vpop.f32.mrb[7].mxu0 }
 0x134   : > { %v3518_v45 = vadd.f32 %v3478_v23, %v815_v44  ;;  %3197 = vpow2.f32 %v2521_v41 }
 0x135   : > { %v3188_v46 = vpop.eup %3187  ;;  %v2524_v47 = vmul.f32 -1.442695, %v3515_v43  ;;  %1105 = vrot.lane.b32.xlu1 %v3503_v37, %s3323_s23 }
 0x136   : > { %v3190_v48 = vpop.eup %3189  ;;  %v952_v49 = vadd.f32 1.0, %v3188_v46  ;;  %v2523_v50 = vmul.f32 -1.442695, %v3518_v45  ;;  %1107 = vrot.lane.b32.xlu0 %v3518_v45, %s3323_s23  ;;  %v2853_v51 = vpop.f32.mrb[8].mxu0 }
 0x137   : > { %3199 = vpow2.f32 %v2524_v47  ;;  %v3527_v52 = vadd.f32 %v2853_v51, %v3478_v23  ;;  %v825_v53 = vpop.f32.mrb[9].mxu0  ;;  %v951_v54 = vadd.f32 1.0, %v3190_v48 }
 0x138   : > { %v3530_v55 = vadd.f32 %v3478_v23, %v825_v53  ;;  %3201 = vrcp.f32 %v952_v49 }
 0x139   : > { %v3192_v56 = vpop.eup %3191  ;;  %v2526_v57 = vmul.f32 -1.442695, %v3527_v52  ;;  %1109 = vrot.lane.b32.xlu1 %v3515_v43, %s3323_s23  ;;  %3203 = vpow2.f32 %v2523_v50 }
 0x13a   : > { %v3194_v58 = vpop.eup %3193  ;;  %v954_v59 = vadd.f32 1.0, %v3192_v56  ;;  %v2525_v60 = vmul.f32 -1.442695, %v3530_v55  ;;  %1111 = vrot.lane.b32.xlu0 %v3530_v55, %s3323_s23  ;;  %v2856_v61 = vpop.f32.mrb[10].mxu0 }
 0x13b   : > { %3205 = vpow2.f32 %v2526_v57  ;;  %v3539_v62 = vadd.f32 %v2856_v61, %v3478_v23  ;;  %v835_v63 = vpop.f32.mrb[11].mxu0  ;;  %v953_v2 = vadd.f32 1.0, %v3194_v58 }
 0x13c   : > { %3207 = vrcp.f32 %v951_v54  ;;  %v3548_v3 = vadd.f32 %v3478_v23, %v835_v63 }
 0x13d   : > { %v3196_v5 = vpop.eup %3195  ;;  %3209 = vrcp.f32 %v954_v59  ;;  %v2528_v6 = vmul.f32 -1.442695, %v3539_v62  ;;  %1113 = vrot.lane.b32.xlu1 %v3527_v52, %s3323_s23 }
 0x13e   : > { %v956_v7 = vadd.f32 1.0, %v3196_v5  ;;  %3211 = vpow2.f32 %v2525_v60  ;;  %v2527_v8 = vmul.f32 -1.442695, %v3548_v3  ;;  %1115 = vrot.lane.b32.xlu0 %v3548_v3, %s3323_s23  ;;  %v2859_v9 = vpop.f32.mrb[12].mxu0  ;;  %v3198_v14 = vpop.eup %3197 }
 0x13f   : > { %3213 = vpow2.f32 %v2528_v6  ;;  %v3557_v10 = vadd.f32 %v2859_v9, %v3478_v23  ;;  %v845_v11 = vpop.f32.mrb[13].mxu0  ;;  %v955_v24 = vadd.f32 1.0, %v3198_v14 }
 0x140   : > { %3215 = vrcp.f32 %v953_v2  ;;  %v3566_v15 = vadd.f32 %v3478_v23, %v845_v11 }
 0x141   : > { %v3200_v17 = vpop.eup %3199  ;;  %3217 = vrcp.f32 %v956_v7  ;;  %v2530_v18 = vmul.f32 -1.442695, %v3557_v10  ;;  %1117 = vrot.lane.b32.xlu1 %v3539_v62, %s3323_s23 }
 0x142   : > { %v958_v19 = vadd.f32 1.0, %v3200_v17  ;;  %3219 = vpow2.f32 %v2527_v8  ;;  %v2529_v20 = vmul.f32 -1.442695, %v3566_v15  ;;  %1119 = vrot.lane.b32.xlu0 %v3566_v15, %s3323_s23  ;;  %v2862_v21 = vpop.f32.mrb[14].mxu0  ;;  %v3202_v22 = vpop.eup %3201 }
 0x143   : > { %3221 = vpow2.f32 %v2530_v18  ;;  %v3575_v26 = vadd.f32 %v2862_v21, %v3478_v23  ;;  %v855_v28 = vpop.f32.mrb[15].mxu0  ;;  %v3204_v29 = vpop.eup %3203 }
 0x144   : > { %v3578_v30 = vadd.f32 %v3478_v23, %v855_v28  ;;  %3223 = vrcp.f32 %v958_v19  ;;  %v957_v41 = vadd.f32 1.0, %v3204_v29 }
 0x145   : > { %v3206_v32 = vpop.eup %3205  ;;  %v2532_v34 = vmul.f32 -1.442695, %v3575_v26  ;;  %1121 = vrot.lane.b32.xlu1 %v3557_v10, %s3323_s23  ;;  %3225 = vpow2.f32 %v2529_v20 }
 0x146   : > { %v3208_v35 = vpop.eup %3207  ;;  %v960_v36 = vadd.f32 1.0, %v3206_v32  ;;  %v2531_v38 = vmul.f32 -1.442695, %v3578_v30  ;;  %1017 = vrot.lane.b32.xlu0 %v3202_v22, %s3324_s13  ;;  %3227 = vrcp.f32 %v955_v24 }
 0x147   : > { %v3210_v40 = vpop.eup %3209 }
 0x148   : > { %v3212_v23 = vpop.eup %3211  ;;  %3229 = vrcp.f32 %v960_v36 }
 0x149   : > { %v3214_v42 = vpop.eup %3213  ;;  %3231 = vpow2.f32 %v2532_v34  ;;  %1021 = vrot.lane.b32.xlu1 %v3210_v40, %s3324_s13  ;;  %v959_v48 = vadd.f32 1.0, %v3212_v23 }
 0x14a   : > { %v3216_v44 = vpop.eup %3215  ;;  %v962_v46 = vadd.f32 1.0, %v3214_v42  ;;  %3233 = vpow2.f32 %v2531_v38  ;;  %1015 = vrot.lane.b32.xlu0 %v3208_v35, %s3324_s13 }
 0x14b   : > { %v3218_v47 = vpop.eup %3217  ;;  %3235 = vrcp.f32 %v957_v41 }
 0x14c   : > { %v3220_v49 = vpop.eup %3219  ;;  %3237 = vrcp.f32 %v962_v46 }
 0x14d   : > { %v3222_v50 = vpop.eup %3221  ;;  %1025 = vrot.lane.b32.xlu1 %v3218_v47, %s3324_s13  ;;  %3239 = vrcp.f32 %v959_v48  ;;  %v961_v54 = vadd.f32 1.0, %v3220_v49 }
 0x14e   : > { %v964_v51 = vadd.f32 1.0, %v3222_v50  ;;  %1019 = vrot.lane.b32.xlu0 %v3216_v44, %s3324_s13  ;;  %v3224_v53 = vpop.eup %3223 }
 0x14f   : > { %v3226_v56 = vpop.eup %3225 }
 0x150   : > { %v3228_v57 = vpop.eup %3227  ;;  %3241 = vrcp.f32 %v964_v51  ;;  %v963_v60 = vadd.f32 1.0, %v3226_v56 }
 0x151   : > { %1029 = vrot.lane.b32.xlu1 %v3224_v53, %s3324_s13  ;;  %3243 = vrcp.f32 %v961_v54 }
 0x152   : > { %v3230_v58 = vpop.eup %3229  ;;  %1023 = vrot.lane.b32.xlu0 %v3228_v57, %s3324_s13 }
 0x153   : > { %v3232_v59 = vpop.eup %3231 }
 0x154   : > { %v3234_v61 = vpop.eup %3233  ;;  %v966_v63 = vadd.f32 1.0, %v3232_v59 }
 0x155   : > { %v3236_v0 = vpop.eup %3235  ;;  %1033 = vrot.lane.b32.xlu1 %v3230_v58, %s3324_s13  ;;  %v965_v1 = vadd.f32 1.0, %v3234_v61 }
 0x156   : > { %3245 = vrcp.f32 %v966_v63  ;;  %1027 = vrot.lane.b32.xlu0 %v3236_v0, %s3324_s13  ;;  %v3238_v2 = vpop.eup %3237 }
 0x157   : > { %3247 = vrcp.f32 %v963_v60  ;;  %v3240_v4 = vpop.eup %3239 }
 0x158   : > { %3249 = vrcp.f32 %v965_v1 }
 0x159   : > { %1037 = vrot.lane.b32.xlu1 %v3238_v2, %s3324_s13 }
 0x15a   : > { %1031 = vrot.lane.b32.xlu0 %v3240_v4, %s3324_s13  ;;  %v3242_v5 = vpop.eup %3241 }
 0x15b   : > { %v3244_v6 = vpop.eup %3243 }
 0x15d   : > { %1041 = vrot.lane.b32.xlu1 %v3242_v5, %s3324_s13 }
 0x15e   : > { %1035 = vrot.lane.b32.xlu0 %v3244_v6, %s3324_s13 }
 0x160   : > { %v3246_v7 = vpop.eup %3245 }
 0x161   : > { %v3248_v8 = vpop.eup %3247  ;;  %1045 = vrot.lane.b32.xlu1 %v3246_v7, %s3324_s13 }
 0x162   : > { %1039 = vrot.lane.b32.xlu0 %v3248_v8, %s3324_s13  ;;  %v3250_v9 = vpop.eup %3249 }
 0x165   : > { %1125 = vrot.lane.b32.xlu1 %v3575_v26, %s3323_s23 }
 0x166   : > { %1043 = vrot.lane.b32.xlu0 %v3250_v9, %s3324_s13 }
 0x16a   : > { %1123 = vrot.lane.b32.xlu0 %v3578_v30, %s3323_s23 }
 0x19b   : > { %v1098_v11 = vpop.permute.xlu1 %1097 }
 0x19f   : > { %v1096_v12 = vpop.permute.xlu1 %1095 }
 0x1a0   : > { %v1100_v13 = vpop.permute.xlu0 %1099 }
 0x1a3   : > { %v1102_v14 = vpop.permute.xlu1 %1101 }
 0x1a4   : > { %v1104_v16 = vpop.permute.xlu0 %1103 }
 0x1a7   : > { %v1106_v17 = vpop.permute.xlu1 %1105 }
 0x1a8   : > { %v1108_v18 = vpop.permute.xlu0 %1107 }
 0x1ab   : > { %v1110_v19 = vpop.permute.xlu1 %1109 }
 0x1ac   : > { %v1112_v20 = vpop.permute.xlu0 %1111 }
 0x1af   : > { %v1114_v21 = vpop.permute.xlu1 %1113 }
 0x1b0   : > { %v1116_v22 = vpop.permute.xlu0 %1115 }
 0x1b3   : > { %v1118_v24 = vpop.permute.xlu1 %1117 }
 0x1b4   : > { %v3604_v28 = vpop.permute.xlu0 %1119 }
 0x1b7   : > { %v3606_v29 = vpop.permute.xlu1 %1121 }
 0x1b8   : > { %v1018_v32 = vpop.permute.xlu0 %1017 }
 0x1b9   : > { %v1064_v34 = vmul.f32 %v1018_v32, %v3481_v25 }
 0x1bb   : > { %v1022_v35 = vpop.permute.xlu1 %1021  ;;  %v1144_v40 = vadd.f32 %v1098_v11, %v1064_v34 }
 0x1bc   : > { %v1016_v36 = vpop.permute.xlu0 %1015  ;;  %v1066_v41 = vmul.f32 %v1022_v35, %v3491_v31 }
 0x1bd   : > { %v1063_v38 = vmul.f32 %v1016_v36, %v3484_v27  ;;  %v1160_v48 = vmax.f32 %v1144_v40, 0.0  ;;  %v2552_v40 = vld [vmem:[%s4056_s7 + $0x30] sm:$0xff] }
 0x1be   : > { %v1146_v49 = vadd.f32 %v1102_v14, %v1066_v41 }
 0x1bf   : > { %v1026_v23 = vpop.permute.xlu1 %1025  ;;  %v1143_v42 = vadd.f32 %v1096_v12, %v1063_v38  ;;  %v1380_v38 = vld [vmem:[%s4052_s3] sm:$0xff] }
 0x1c0   : > { %v1020_v44 = vpop.permute.xlu0 %1019  ;;  %v1068_v50 = vmul.f32 %v1026_v23, %v3503_v37  ;;  %v1162_v54 = vmax.f32 %v1146_v49, 0.0  ;;  %2927 = vmatprep.mubr.f32.mxu0 %v1380_v38  ;;  %v2553_v23 = vld [vmem:[%s4056_s7 + $0x38] sm:$0xff]  ;;  %v1574_v38 = vld [vmem:[%s4056_s7 + $0x8] sm:$0xff] }
 0x1c1   : > { %v1065_v46 = vmul.f32 %v1020_v44, %v3494_v33  ;;  %v1159_v47 = vmax.f32 %v1143_v42, 0.0  ;;  %v3091_v42 = vpack.c.bf16 %v2553_v23, %v2552_v40  ;;  %v2533_v44 = vld [vmem:[%s4055_s6] ss:$0 sm:$0xff] }
 0x1c2   : > { %v1148_v56 = vadd.f32 %v1106_v17, %v1068_v50  ;;  %v1396_v40 = vld [vmem:[%s4053_s4] sm:$0xff] }
 0x1c3   : > { %v1145_v51 = vadd.f32 %v1100_v13, %v1065_v46  ;;  %v1030_v25 = vpop.permute.xlu1 %1029  ;;  %2871 = vmatprep.mubr.msk.f32.mxu1 %vm1186_vm2, %v1159_v47 }
 0x1c4   : > { %2872 = vmatmul.mubr.msk.f32.vlgmr.msra.gmra.mrb[0].mxu1 %vm1186_vm2, %v1160_v48  ;;  %v1024_v27 = vpop.permute.xlu0 %1023  ;;  %v1070_v57 = vmul.f32 %v1030_v25, %v3515_v43  ;;  %v1164_v61 = vmax.f32 %v1148_v56, 0.0 }
 0x1c5   : > { %v1161_v53 = vmax.f32 %v1145_v51, 0.0  ;;  %v1067_v31 = vmul.f32 %v1024_v27, %v3506_v39 }
 0x1c6   : > { %v1150_v63 = vadd.f32 %v1110_v19, %v1070_v57 }
 0x1c7   : > { %v1147_v33 = vadd.f32 %v1104_v16, %v1067_v31  ;;  %v1034_v58 = vpop.permute.xlu1 %1033  ;;  %2874 = vmatprep.mubr.msk.f32.mxu1 %vm1186_vm2, %v1161_v53 }
 0x1c8   : > { %2875 = vmatmul.mubr.msk.f32.gmra.mrb[2].mxu1 %vm1186_vm2, %v1162_v54  ;;  %v1028_v37 = vpop.permute.xlu0 %1027  ;;  %v1072_v0 = vmul.f32 %v1034_v58, %v3527_v52  ;;  %v1166_v5 = vmax.f32 %v1150_v63, 0.0 }
 0x1c9   : > { %v1163_v59 = vmax.f32 %v1147_v33, 0.0  ;;  %v1069_v60 = vmul.f32 %v1028_v37, %v3518_v45 }
 0x1ca   : > { %v1152_v6 = vadd.f32 %v1114_v21, %v1072_v0 }
 0x1cb   : > { %v1149_v1 = vadd.f32 %v1108_v18, %v1069_v60  ;;  %v1038_v39 = vpop.permute.xlu1 %1037  ;;  %2877 = vmatprep.mubr.msk.f32.mxu1 %vm1186_vm2, %v1163_v59 }
 0x1cc   : > { %2878 = vmatmul.mubr.msk.f32.gmra.mrb[4].mxu1 %vm1186_vm2, %v1164_v61  ;;  %v1032_v43 = vpop.permute.xlu0 %1031  ;;  %v1074_v7 = vmul.f32 %v1038_v39, %v3539_v62  ;;  %v1168_v12 = vmax.f32 %v1152_v6, 0.0 }
 0x1cd   : > { %v1165_v2 = vmax.f32 %v1149_v1, 0.0  ;;  %v1071_v4 = vmul.f32 %v1032_v43, %v3530_v55 }
 0x1ce   : > { %v1154_v13 = vadd.f32 %v1118_v24, %v1074_v7 }
 0x1cf   : > { %v1151_v8 = vadd.f32 %v1112_v20, %v1071_v4  ;;  %v1042_v45 = vpop.permute.xlu1 %1041  ;;  %2880 = vmatprep.mubr.msk.f32.mxu1 %vm1186_vm2, %v1165_v2 }
 0x1d0   : > { %2881 = vmatmul.mubr.msk.f32.gmra.mrb[6].mxu1 %vm1186_vm2, %v1166_v5  ;;  %v1036_v52 = vpop.permute.xlu0 %1035  ;;  %v1076_v14 = vmul.f32 %v1042_v45, %v3557_v10  ;;  %v1170_v19 = vmax.f32 %v1154_v13, 0.0 }
 0x1d1   : > { %v1167_v9 = vmax.f32 %v1151_v8, 0.0  ;;  %v1073_v11 = vmul.f32 %v1036_v52, %v3548_v3 }
 0x1d2   : > { %v1156_v20 = vadd.f32 %v3606_v29, %v1076_v14 }
 0x1d3   : > { %v1153_v16 = vadd.f32 %v1116_v22, %v1073_v11  ;;  %2883 = vmatprep.mubr.msk.f32.mxu1 %vm1186_vm2, %v1167_v9  ;;  %v1046_v55 = vpop.permute.xlu1 %1045 }
 0x1d4   : > { %2884 = vmatmul.mubr.msk.f32.gmra.mrb[8].mxu1 %vm1186_vm2, %v1168_v12  ;;  %v1040_v62 = vpop.permute.xlu0 %1039  ;;  %v1172_v24 = vmax.f32 %v1156_v20, 0.0  ;;  %v1078_v32 = vmul.f32 %v1046_v55, %v3575_v26  ;;  %v2550_v26 = vld [vmem:[%s4056_s7 + $0x20] sm:$0xff] }
 0x1d5   : > { %v1169_v17 = vmax.f32 %v1153_v16, 0.0  ;;  %v1075_v18 = vmul.f32 %v1040_v62, %v3566_v15  ;;  %v1384_v20 = vld [vmem:[%s4052_s3 + $0x20] sm:$0xff] }
 0x1d7   : > { %v1155_v21 = vadd.f32 %v3604_v28, %v1075_v18  ;;  %2886 = vmatprep.mubr.msk.f32.mxu1 %vm1186_vm2, %v1169_v17  ;;  %v1126_v22 = vpop.permute.xlu1 %1125  ;;  %v1381_v17 = vld [vmem:[%s4052_s3 + $0x8] sm:$0xff]  ;;  %v1382_v18 = vld [vmem:[%s4052_s3 + $0x10] sm:$0xff] }
 0x1d8   : > { %2887 = vmatmul.mubr.msk.f32.gmra.mrb[10].mxu1 %vm1186_vm2, %v1170_v19  ;;  %v1044_v3 = vpop.permute.xlu0 %1043  ;;  %v1158_v15 = vadd.f32 %v1126_v22, %v1078_v32  ;;  %v1383_v19 = vld [vmem:[%s4052_s3 + $0x18] sm:$0xff]  ;;  %v1388_v22 = vld [vmem:[%s4052_s3 + $0x40] sm:$0xff]  ;;  %v1390_v32 = vld [vmem:[%s4052_s3 + $0x50] sm:$0xff] }
 0x1d9   : > { %v1171_v10 = vmax.f32 %v1155_v21, 0.0  ;;  %v1077_v34 = vmul.f32 %v1044_v3, %v3578_v30  ;;  %v2551_v30 = vld [vmem:[%s4056_s7 + $0x28] sm:$0xff]  ;;  %v1386_v3 = vld [vmem:[%s4052_s3 + $0x30] sm:$0xff] }
 0x1da   : > { %v1174_v36 = vmax.f32 %v1158_v15, 0.0  ;;  %v3087_v41 = vpack.c.bf16 %v2551_v30, %v2550_v26  ;;  %v1385_v21 = vld [vmem:[%s4052_s3 + $0x28] sm:$0xff]  ;;  %v1392_v15 = vld [vmem:[%s4052_s3 + $0x60] sm:$0xff] }
 0x1db   : > { %2889 = vmatprep.mubr.msk.f32.mxu1 %vm1186_vm2, %v1171_v10  ;;  %v1387_v10 = vld [vmem:[%s4052_s3 + $0x38] sm:$0xff]  ;;  %v1397_v30 = vld [vmem:[%s4053_s4 + $0x8] sm:$0xff] }
 0x1dc   : > { %2890 = vmatmul.mubr.msk.f32.gmra.mrb[12].mxu1 %vm1186_vm2, %v1172_v24  ;;  %v1124_v29 = vpop.permute.xlu0 %1123  ;;  %3088 = vmatprep.subr.bf16.mxu1 %v3087_v41  ;;  %v1389_v24 = vld [vmem:[%s4052_s3 + $0x48] sm:$0xff] }
 0x1dd   : > { %v1157_v35 = vadd.f32 %v1124_v29, %v1077_v34  ;;  %3090 = vmatpush3.bf16.msra.mxu1 %v3087_v41  ;;  %v1391_v34 = vld [vmem:[%s4052_s3 + $0x58] sm:$0xff]  ;;  %v1393_v29 = vld [vmem:[%s4052_s3 + $0x68] sm:$0xff] }
 0x1de   : > { %3092 = vmatprep.subr.bf16.mxu1 %v3091_v42 }
 0x1df   : > { %v1173_v28 = vmax.f32 %v1157_v35, 0.0  ;;  %v1394_v35 = vld [vmem:[%s4052_s3 + $0x70] sm:$0xff] }
 0x1e1   : > { %2892 = vmatprep.mubr.msk.f32.mxu1 %vm1186_vm2, %v1173_v28  ;;  %3094 = vmatpush3.bf16.msra.mxu1 %v3091_v42  ;;  %v1395_v28 = vld [vmem:[%s4052_s3 + $0x78] sm:$0xff] }
 0x1e2   : > { %2893 = vmatmul.mubr.msk.f32.gmra.mrb[14].mxu1 %vm1186_vm2, %v1174_v36  ;;  %v1573_v36 = vld [vmem:[%s4056_s7] sm:$0xff] }
 0x1e3   : > { %v3095_v26 = vpack.c.bf16 %v1574_v38, %v1573_v36  ;;  %v1410_v36 = vld [vmem:[%s4053_s4 + $0x70] sm:$0xff] }
 0x1e5   : > { %3096 = vmatprep.subr.bf16.mxu1 %v3095_v26 }
 0x297   : > { %v2873_v46 = vpop.f32.mrb[0].mxu1 }
 0x298   : > { %v1307_v47 = vadd.f32 %v2873_v46, %v2533_v44  ;;  %v1301_v48 = vpop.f32.mrb[1].mxu1  ;;  %v1399_v46 = vld [vmem:[%s4053_s4 + $0x18] sm:$0xff] }
 0x299   : > { %v1302_v49 = vadd.f32 %v2533_v44, %v1301_v48  ;;  %v1576_v48 = vld [vmem:[%s4056_s7 + $0x18] sm:$0xff] }
 0x29b   : > { %v3055_v50 = vpack.c.bf16 %v1307_v47, %v1302_v49  ;;  %v2876_v51 = vpop.f32.mrb[2].mxu1  ;;  %v1575_v47 = vld [vmem:[%s4056_s7 + $0x10] sm:$0xff] }
 0x29c   : > { %v1317_v25 = vadd.f32 %v2876_v51, %v2533_v44  ;;  %v1311_v27 = vpop.f32.mrb[3].mxu1  ;;  %v1398_v49 = vld [vmem:[%s4053_s4 + $0x10] sm:$0xff] }
 0x29d   : > { %v1312_v53 = vadd.f32 %v2533_v44, %v1311_v27  ;;  %3056 = vmatprep.subr.bf16.mxu0 %v3055_v50 }
 0x29e   : > { %3058 = vmatpush3.bf16.msra.mxu0 %v3055_v50 }
 0x29f   : > { %v3059_v31 = vpack.c.bf16 %v1317_v25, %v1312_v53  ;;  %v2879_v54 = vpop.f32.mrb[4].mxu1 }
 0x2a0   : > { %v1327_v56 = vadd.f32 %v2879_v54, %v2533_v44  ;;  %v1321_v57 = vpop.f32.mrb[5].mxu1 }
 0x2a1   : > { %v1322_v33 = vadd.f32 %v2533_v44, %v1321_v57  ;;  %3060 = vmatprep.subr.bf16.mxu0 %v3059_v31  ;;  %v2584_v57 = vld [vmem:[%s4056_s7 + $0x40] sm:$0xff] }
 0x2a2   : > { %3062 = vmatpush3.bf16.msra.mxu0 %v3059_v31  ;;  %v3099_v31 = vpack.c.bf16 %v1576_v48, %v1575_v47  ;;  %v2586_v48 = vld [vmem:[%s4056_s7 + $0x50] sm:$0xff] }
 0x2a3   : > { %v3063_v58 = vpack.c.bf16 %v1327_v56, %v1322_v33  ;;  %v2882_v37 = vpop.f32.mrb[6].mxu1  ;;  %v1401_v56 = vld [vmem:[%s4053_s4 + $0x28] sm:$0xff] }
 0x2a4   : > { %v1337_v59 = vadd.f32 %v2882_v37, %v2533_v44  ;;  %v1331_v60 = vpop.f32.mrb[7].mxu1  ;;  %v2585_v33 = vld [vmem:[%s4056_s7 + $0x48] sm:$0xff] }
 0x2a5   : > { %v1332_v61 = vadd.f32 %v2533_v44, %v1331_v60  ;;  %3064 = vmatprep.subr.bf16.mxu0 %v3063_v58 }
 0x2a6   : > { %3066 = vmatpush3.bf16.msra.mxu0 %v3063_v58  ;;  %v1400_v58 = vld [vmem:[%s4053_s4 + $0x20] sm:$0xff] }
 0x2a7   : > { %v3067_v63 = vpack.c.bf16 %v1337_v59, %v1332_v61  ;;  %v2885_v0 = vpop.f32.mrb[8].mxu1 }
 0x2a8   : > { %v1347_v1 = vadd.f32 %v2885_v0, %v2533_v44  ;;  %v1341_v39 = vpop.f32.mrb[9].mxu1  ;;  %v3757_v0 = vpack.c.bf16 %v2585_v33, %v2584_v57 }
 0x2a9   : > { %v1342_v43 = vadd.f32 %v2533_v44, %v1341_v39  ;;  %3068 = vmatprep.subr.bf16.mxu0 %v3067_v63  ;;  %v1403_v39 = vld [vmem:[%s4053_s4 + $0x38] sm:$0xff] }
 0x2aa   : > { %3070 = vmatpush3.bf16.msra.mxu0 %v3067_v63 }
 0x2ab   : > { %v3071_v2 = vpack.c.bf16 %v1347_v1, %v1342_v43  ;;  %v2888_v4 = vpop.f32.mrb[10].mxu1  ;;  %v1402_v43 = vld [vmem:[%s4053_s4 + $0x30] sm:$0xff] }
 0x2ac   : > { %v1357_v5 = vadd.f32 %v2888_v4, %v2533_v44  ;;  %v1351_v6 = vpop.f32.mrb[11].mxu1 }
 0x2ad   : > { %v1352_v7 = vadd.f32 %v2533_v44, %v1351_v6  ;;  %3072 = vmatprep.subr.bf16.mxu0 %v3071_v2 }
 0x2ae   : > { %3074 = vmatpush3.bf16.msra.mxu0 %v3071_v2 }
 0x2af   : > { %v3075_v8 = vpack.c.bf16 %v1357_v5, %v1352_v7  ;;  %v2891_v45 = vpop.f32.mrb[12].mxu1 }
 0x2b0   : > { %v1367_v52 = vadd.f32 %v2891_v45, %v2533_v44  ;;  %v1361_v9 = vpop.f32.mrb[13].mxu1  ;;  %v1405_v45 = vld [vmem:[%s4053_s4 + $0x48] sm:$0xff] }
 0x2b1   : > { %v1362_v11 = vadd.f32 %v2533_v44, %v1361_v9  ;;  %3076 = vmatprep.subr.bf16.mxu0 %v3075_v8 }
 0x2b2   : > { %3078 = vmatpush3.bf16.msra.mxu0 %v3075_v8 }
 0x2b3   : > { %v3079_v12 = vpack.c.bf16 %v1367_v52, %v1362_v11  ;;  %v1404_v52 = vld [vmem:[%s4053_s4 + $0x40] sm:$0xff] }
 0x2b5   : > { %v2894_v13 = vpop.f32.mrb[14].mxu1  ;;  %3080 = vmatprep.subr.bf16.mxu0 %v3079_v12 }
 0x2b6   : > { %v1377_v14 = vadd.f32 %v2894_v13, %v2533_v44  ;;  %v1371_v16 = vpop.f32.mrb[15].mxu1  ;;  %3082 = vmatpush3.bf16.msra.mxu0 %v3079_v12 }
 0x2b7   : > { %v1372_v55 = vadd.f32 %v2533_v44, %v1371_v16 }
 0x2b9   : > { %v3083_v62 = vpack.c.bf16 %v1377_v14, %v1372_v55  ;;  %v1407_v55 = vld [vmem:[%s4053_s4 + $0x58] sm:$0xff] }
 0x2bb   : > { %3084 = vmatprep.subr.bf16.mxu0 %v3083_v62 }
 0x2bc   : > { %3086 = vmatpush3.bf16.msra.mxu0 %v3083_v62  ;;  %v1406_v62 = vld [vmem:[%s4053_s4 + $0x50] sm:$0xff] }
 0x2bf   : > { %2928 = vmatmul.mubr.f32.vlgmr.msra.gmra.mrb[16].mxu0 %v1381_v17 }
 0x2c0   : > { %2930 = vmatprep.mubr.f32.mxu0 %v1382_v18 }
 0x2c3   : > { %2931 = vmatmul.mubr.f32.gmra.mrb[18].mxu0 %v1383_v19 }
 0x2c4   : > { %2933 = vmatprep.mubr.f32.mxu0 %v1384_v20 }
 0x2c7   : > { %2934 = vmatmul.mubr.f32.gmra.mrb[20].mxu0 %v1385_v21 }
 0x2c8   : > { %2936 = vmatprep.mubr.f32.mxu0 %v1386_v3 }
 0x2cb   : > { %2937 = vmatmul.mubr.f32.gmra.mrb[22].mxu0 %v1387_v10  ;;  %v1409_v10 = vld [vmem:[%s4053_s4 + $0x68] sm:$0xff] }
 0x2cc   : > { %2939 = vmatprep.mubr.f32.mxu0 %v1388_v22  ;;  %v1408_v22 = vld [vmem:[%s4053_s4 + $0x60] sm:$0xff] }
 0x2cf   : > { %2940 = vmatmul.mubr.f32.gmra.mrb[24].mxu0 %v1389_v24 }
 0x2d0   : > { %2942 = vmatprep.mubr.f32.mxu0 %v1390_v32 }
 0x2d3   : > { %2943 = vmatmul.mubr.f32.gmra.mrb[26].mxu0 %v1391_v34 }
 0x2d4   : > { %2945 = vmatprep.mubr.f32.mxu0 %v1392_v15 }
 0x2d7   : > { %2946 = vmatmul.mubr.f32.gmra.mrb[28].mxu0 %v1393_v29 }
 0x2d8   : > { %2948 = vmatprep.mubr.f32.mxu0 %v1394_v35 }
 0x2db   : > { %2949 = vmatmul.mubr.f32.gmra.mrb[30].mxu0 %v1395_v28  ;;  %v1411_v28 = vld [vmem:[%s4053_s4 + $0x78] sm:$0xff] }
 0x392   : > { %v2929_v41 = vpop.f32.mrb[16].mxu0 }
 0x393   : > { %v3717_v23 = vadd.f32 %v2929_v41, %v1397_v30  ;;  %v1478_v42 = vpop.f32.mrb[17].mxu0 }
 0x394   : > { %v3719_v44 = vadd.f32 %v1478_v42, %v1396_v40 }
 0x395   : > { %v1558_v25 = vmax.f32 %v3717_v23, 0.0  ;;  %v3872_v23 = vld [vmem:[%s4057_s8] ss:$0 sm:$0xff] }
 0x396   : > { %v1557_v50 = vmax.f32 %v3719_v44, 0.0  ;;  %v2932_v51 = vpop.f32.mrb[18].mxu0 }
 0x397   : > { %v1494_v27 = vadd.f32 %v2932_v51, %v1399_v46  ;;  %v1488_v53 = vpop.f32.mrb[19].mxu0  ;;  %v3325_v51 = vmov 0.0  }
 0x398   : > { %v1489_v54 = vadd.f32 %v1488_v53, %v1398_v49  ;;  %2959 = vmatprep.mubr.msk.f32.mxu1 %vm1186_vm2, %v1557_v50  ;;  %v2587_v49 = vld [vmem:[%s4056_s7 + $0x58] sm:$0xff] }
 0x399   : > { %2960 = vmatmul.mubr.msk.f32.vlgmr.msra.gmra.mrb[16].mxu1 %vm1186_vm2, %v1558_v25  ;;  %v3755_v60 = vmax.f32 %v1494_v27, 0.0  ;;  %v3107_v27 = vpack.c.bf16 %v2587_v49, %v2586_v48 }
 0x39a   : > { %v3753_v37 = vmax.f32 %v1489_v54, 0.0  ;;  %v2935_v59 = vpop.f32.mrb[20].mxu0  ;;  %3098 = vmatpush3.bf16.msra.mxu1 %v3095_v26 }
 0x39b   : > { %v1504_v61 = vadd.f32 %v2935_v59, %v1401_v56  ;;  %v1498_v63 = vpop.f32.mrb[21].mxu0  ;;  %3100 = vmatprep.subr.bf16.mxu1 %v3099_v31 }
 0x39c   : > { %v1499_v1 = vadd.f32 %v1498_v63, %v1400_v58  ;;  %2962 = vmatprep.mubr.msk.f32.mxu1 %vm1186_vm2, %v3753_v37 }
 0x39d   : > { %2963 = vmatmul.mubr.msk.f32.gmra.mrb[18].mxu1 %vm1186_vm2, %v3755_v60  ;;  %v3771_v5 = vmax.f32 %v1504_v61, 0.0 }
 0x39e   : > { %v3769_v2 = vmax.f32 %v1499_v1, 0.0  ;;  %v2938_v4 = vpop.f32.mrb[22].mxu0  ;;  %3102 = vmatpush3.bf16.msra.mxu1 %v3099_v31 }
 0x39f   : > { %v1514_v6 = vadd.f32 %v2938_v4, %v1403_v39  ;;  %v1508_v7 = vpop.f32.mrb[23].mxu0  ;;  %3104 = vmatprep.subr.bf16.mxu1 %v3757_v0 }
 0x3a0   : > { %v1509_v8 = vadd.f32 %v1508_v7, %v1402_v43  ;;  %2965 = vmatprep.mubr.msk.f32.mxu1 %vm1186_vm2, %v3769_v2 }
 0x3a1   : > { %2966 = vmatmul.mubr.msk.f32.gmra.mrb[20].mxu1 %vm1186_vm2, %v3771_v5  ;;  %v3786_v12 = vmax.f32 %v1514_v6, 0.0 }
 0x3a2   : > { %v3784_v9 = vmax.f32 %v1509_v8, 0.0  ;;  %v2941_v11 = vpop.f32.mrb[24].mxu0 }
 0x3a3   : > { %v1524_v13 = vadd.f32 %v2941_v11, %v1405_v45  ;;  %v1518_v14 = vpop.f32.mrb[25].mxu0 }
 0x3a4   : > { %v1519_v16 = vadd.f32 %v1518_v14, %v1404_v52  ;;  %2968 = vmatprep.mubr.msk.f32.mxu1 %vm1186_vm2, %v3784_v9 }
 0x3a5   : > { %2969 = vmatmul.mubr.msk.f32.gmra.mrb[22].mxu1 %vm1186_vm2, %v3786_v12  ;;  %v1566_v19 = vmax.f32 %v1524_v13, 0.0 }
 0x3a6   : > { %v1565_v17 = vmax.f32 %v1519_v16, 0.0  ;;  %v2944_v18 = vpop.f32.mrb[26].mxu0 }
 0x3a7   : > { %v1534_v20 = vadd.f32 %v2944_v18, %v1407_v55  ;;  %v1528_v21 = vpop.f32.mrb[27].mxu0 }
 0x3a8   : > { %v1529_v3 = vadd.f32 %v1528_v21, %v1406_v62  ;;  %2971 = vmatprep.mubr.msk.f32.mxu1 %vm1186_vm2, %v1565_v17 }
 0x3a9   : > { %2972 = vmatmul.mubr.msk.f32.gmra.mrb[24].mxu1 %vm1186_vm2, %v1566_v19  ;;  %v1568_v34 = vmax.f32 %v1534_v20, 0.0 }
 0x3aa   : > { %v1567_v24 = vmax.f32 %v1529_v3, 0.0  ;;  %v2947_v32 = vpop.f32.mrb[28].mxu0 }
 0x3ab   : > { %v1544_v15 = vadd.f32 %v2947_v32, %v1409_v10  ;;  %v1538_v29 = vpop.f32.mrb[29].mxu0 }
 0x3ac   : > { %v1539_v35 = vadd.f32 %v1538_v29, %v1408_v22  ;;  %2974 = vmatprep.mubr.msk.f32.mxu1 %vm1186_vm2, %v1567_v24 }
 0x3ad   : > { %2975 = vmatmul.mubr.msk.f32.gmra.mrb[26].mxu1 %vm1186_vm2, %v1568_v34  ;;  %v1570_v30 = vmax.f32 %v1544_v15, 0.0 }
 0x3ae   : > { %v1569_v38 = vmax.f32 %v1539_v35, 0.0  ;;  %v2950_v26 = vpop.f32.mrb[30].mxu0 }
 0x3af   : > { %v1554_v40 = vadd.f32 %v2950_v26, %v1411_v28  ;;  %v1548_v41 = vpop.f32.mrb[31].mxu0 }
 0x3b0   : > { %v1549_v42 = vadd.f32 %v1548_v41, %v1410_v36  ;;  %2977 = vmatprep.mubr.msk.f32.mxu1 %vm1186_vm2, %v1569_v38 }
 0x3b1   : > { %2978 = vmatmul.mubr.msk.f32.gmra.mrb[28].mxu1 %vm1186_vm2, %v1570_v30  ;;  %v1572_v47 = vmax.f32 %v1554_v40, 0.0 }
 0x3b2   : > { %v1571_v46 = vmax.f32 %v1549_v42, 0.0 }
 0x3b4   : > { %2980 = vmatprep.mubr.msk.f32.mxu1 %vm1186_vm2, %v1571_v46 }
 0x3b5   : > { %2981 = vmatmul.mubr.msk.f32.gmra.mrb[30].mxu1 %vm1186_vm2, %v1572_v47 }
 0x3b6   : > { %2991 = vmatprep.mubr.f32.mxu1 %v3325_v51 }
 0x3b9   : > { %2992 = vmatmul.mubr.f32.vlgmr.msra.gmra.mrb[16].mxu1 %v3325_v51 }
 0x3ba   : > { %2994 = vmatprep.mubr.msk.f32.mxu1 %vm1186_vm2, %v1557_v50  ;;  %3106 = vmatpush3.bf16.msra.mxu1 %v3757_v0 }
 0x3bb   : > { %3108 = vmatprep.subr.bf16.mxu1 %v3107_v27 }
 0x3bd   : > { %2995 = vmatmul.mubr.msk.f32.gmra.mrb[18].mxu1 %vm1186_vm2, %v1558_v25 }
 0x3be   : > { %2997 = vmatprep.mubr.msk.f32.mxu1 %vm1186_vm2, %v3753_v37  ;;  %3110 = vmatpush3.bf16.msra.mxu1 %v3107_v27 }
 0x3c1   : > { %2998 = vmatmul.mubr.msk.f32.gmra.mrb[20].mxu1 %vm1186_vm2, %v3755_v60 }
 0x3c2   : > { %3000 = vmatprep.mubr.msk.f32.mxu1 %vm1186_vm2, %v3769_v2 }
 0x3c5   : > { %3001 = vmatmul.mubr.msk.f32.gmra.mrb[22].mxu1 %vm1186_vm2, %v3771_v5 }
 0x3c6   : > { %3003 = vmatprep.mubr.msk.f32.mxu1 %vm1186_vm2, %v3784_v9 }
 0x3c9   : > { %3004 = vmatmul.mubr.msk.f32.gmra.mrb[24].mxu1 %vm1186_vm2, %v3786_v12 }
 0x3ca   : > { %3006 = vmatprep.mubr.msk.f32.mxu1 %vm1186_vm2, %v1565_v17 }
 0x3cd   : > { %3007 = vmatmul.mubr.msk.f32.gmra.mrb[26].mxu1 %vm1186_vm2, %v1566_v19 }
 0x3ce   : > { %3009 = vmatprep.mubr.msk.f32.mxu1 %vm1186_vm2, %v1567_v24 }
 0x3d1   : > { %3010 = vmatmul.mubr.msk.f32.gmra.mrb[28].mxu1 %vm1186_vm2, %v1568_v34 }
 0x3d2   : > { %3012 = vmatprep.mubr.msk.f32.mxu1 %vm1186_vm2, %v1569_v38 }
 0x3d5   : > { %3013 = vmatmul.mubr.msk.f32.gmra.mrb[30].mxu1 %vm1186_vm2, %v1570_v30 }
 0x3d6   : > { %3023 = vmatprep.mubr.msk.f32.mxu1 %vm1186_vm2, %v3753_v37 }
 0x3d9   : > { %3024 = vmatmul.mubr.msk.f32.vlgmr.msra.gmra.mrb[16].mxu1 %vm1186_vm2, %v3755_v60 }
 0x3da   : > { %3026 = vmatprep.mubr.msk.f32.mxu1 %vm1186_vm2, %v3769_v2 }
 0x3dd   : > { %3027 = vmatmul.mubr.msk.f32.gmra.mrb[18].mxu1 %vm1186_vm2, %v3771_v5 }
 0x3de   : > { %3029 = vmatprep.mubr.msk.f32.mxu1 %vm1186_vm2, %v3784_v9 }
 0x3e1   : > { %3030 = vmatmul.mubr.msk.f32.gmra.mrb[20].mxu1 %vm1186_vm2, %v3786_v12 }
 0x3e2   : > { %3032 = vmatprep.mubr.msk.f32.mxu1 %vm1186_vm2, %v1565_v17 }
 0x3e5   : > { %3033 = vmatmul.mubr.msk.f32.gmra.mrb[22].mxu1 %vm1186_vm2, %v1566_v19 }
 0x3e6   : > { %3035 = vmatprep.mubr.msk.f32.mxu1 %vm1186_vm2, %v1567_v24 }
 0x3e9   : > { %3036 = vmatmul.mubr.msk.f32.gmra.mrb[24].mxu1 %vm1186_vm2, %v1568_v34 }
 0x3ea   : > { %3038 = vmatprep.mubr.msk.f32.mxu1 %vm1186_vm2, %v1569_v38 }
 0x3ed   : > { %3039 = vmatmul.mubr.msk.f32.gmra.mrb[26].mxu1 %vm1186_vm2, %v1570_v30 }
 0x3ee   : > { %3041 = vmatprep.mubr.msk.f32.mxu1 %vm1186_vm2, %v1571_v46 }
 0x3f1   : > { %3042 = vmatmul.mubr.msk.f32.gmra.mrb[28].mxu1 %vm1186_vm2, %v1572_v47 }
 0x3f2   : > { %3044 = vmatprep.mubr.f32.mxu1 %v3325_v51 }
 0x3f5   : > { %3045 = vmatmul.mubr.f32.gmra.mrb[30].mxu1 %v3325_v51 }
 0x4ac   : > { %v3025_v44 = vpop.f32.mrb[16].mxu1 }
 0x4ad   : > { %v3875_v50 = vadd.f32 %v3025_v44, %v3872_v23  ;;  %v1994_v25 = vpop.f32.mrb[17].mxu1 }
 0x4ae   : > { %v3878_v53 = vadd.f32 %v3872_v23, %v1994_v25 }
 0x4af   : > { %v2604_v31 = vmul.f32 -1.442695, %v3875_v50  ;;  %2306 = vrot.lane.b32.xlu1 %v3875_v50, %s3323_s23 }
 0x4b0   : > { %v2603_v54 = vmul.f32 -1.442695, %v3878_v53  ;;  %2304 = vrot.lane.b32.xlu0 %v3878_v53, %s3323_s23  ;;  %v3028_v56 = vpop.f32.mrb[18].mxu1 }
 0x4b1   : > { %3251 = vpow2.f32 %v2604_v31  ;;  %v3887_v57 = vadd.f32 %v3028_v56, %v3872_v23  ;;  %v2004_v33 = vpop.f32.mrb[19].mxu1 }
 0x4b2   : > { %3253 = vpow2.f32 %v2603_v54  ;;  %v3890_v58 = vadd.f32 %v3872_v23, %v2004_v33 }
 0x4b3   : > { %v2606_v37 = vmul.f32 -1.442695, %v3887_v57  ;;  %2310 = vrot.lane.b32.xlu1 %v3887_v57, %s3323_s23 }
 0x4b4   : > { %v2605_v59 = vmul.f32 -1.442695, %v3890_v58  ;;  %2308 = vrot.lane.b32.xlu0 %v3890_v58, %s3323_s23  ;;  %v3031_v60 = vpop.f32.mrb[20].mxu1 }
 0x4b5   : > { %3255 = vpow2.f32 %v2606_v37  ;;  %v3899_v61 = vadd.f32 %v3031_v60, %v3872_v23  ;;  %v2014_v63 = vpop.f32.mrb[21].mxu1 }
 0x4b6   : > { %3257 = vpow2.f32 %v2605_v59  ;;  %v3902_v0 = vadd.f32 %v3872_v23, %v2014_v63 }
 0x4b7   : > { %v2608_v1 = vmul.f32 -1.442695, %v3899_v61  ;;  %2314 = vrot.lane.b32.xlu1 %v3899_v61, %s3323_s23 }
 0x4b8   : > { %v2607_v39 = vmul.f32 -1.442695, %v3902_v0  ;;  %2312 = vrot.lane.b32.xlu0 %v3902_v0, %s3323_s23  ;;  %v3034_v43 = vpop.f32.mrb[22].mxu1 }
 0x4b9   : > { %3259 = vpow2.f32 %v2608_v1  ;;  %v3911_v2 = vadd.f32 %v3034_v43, %v3872_v23  ;;  %v2024_v4 = vpop.f32.mrb[23].mxu1 }
 0x4ba   : > { %3261 = vpow2.f32 %v2607_v39  ;;  %v3914_v5 = vadd.f32 %v3872_v23, %v2024_v4 }
 0x4bb   : > { %v3252_v6 = vpop.eup %3251  ;;  %v2610_v7 = vmul.f32 -1.442695, %v3911_v2  ;;  %2318 = vrot.lane.b32.xlu1 %v3911_v2, %s3323_s23 }
 0x4bc   : > { %v3254_v8 = vpop.eup %3253  ;;  %v2161_v45 = vadd.f32 1.0, %v3252_v6  ;;  %v2609_v52 = vmul.f32 -1.442695, %v3914_v5  ;;  %2316 = vrot.lane.b32.xlu0 %v3914_v5, %s3323_s23  ;;  %v3037_v9 = vpop.f32.mrb[24].mxu1 }
 0x4bd   : > { %v2160_v11 = vadd.f32 1.0, %v3254_v8  ;;  %3263 = vpow2.f32 %v2610_v7  ;;  %v3923_v12 = vadd.f32 %v3037_v9, %v3872_v23  ;;  %v2034_v13 = vpop.f32.mrb[25].mxu1 }
 0x4be   : > { %3265 = vrcp.f32 %v2161_v45  ;;  %v3926_v14 = vadd.f32 %v3872_v23, %v2034_v13 }
 0x4bf   : > { %v3256_v16 = vpop.eup %3255  ;;  %3267 = vrcp.f32 %v2160_v11  ;;  %v2612_v55 = vmul.f32 -1.442695, %v3923_v12  ;;  %2322 = vrot.lane.b32.xlu1 %v3923_v12, %s3323_s23 }
 0x4c0   : > { %v3258_v62 = vpop.eup %3257  ;;  %v2163_v17 = vadd.f32 1.0, %v3256_v16  ;;  %3269 = vpow2.f32 %v2609_v52  ;;  %v2611_v18 = vmul.f32 -1.442695, %v3926_v14  ;;  %2320 = vrot.lane.b32.xlu0 %v3926_v14, %s3323_s23  ;;  %v3040_v19 = vpop.f32.mrb[26].mxu1 }
 0x4c1   : > { %v2162_v20 = vadd.f32 1.0, %v3258_v62  ;;  %3271 = vpow2.f32 %v2612_v55  ;;  %v3935_v21 = vadd.f32 %v3040_v19, %v3872_v23  ;;  %v2044_v3 = vpop.f32.mrb[27].mxu1 }
 0x4c2   : > { %3273 = vrcp.f32 %v2163_v17  ;;  %v3938_v10 = vadd.f32 %v3872_v23, %v2044_v3 }
 0x4c3   : > { %v3260_v22 = vpop.eup %3259  ;;  %3275 = vrcp.f32 %v2162_v20  ;;  %v2614_v24 = vmul.f32 -1.442695, %v3935_v21  ;;  %2326 = vrot.lane.b32.xlu1 %v3935_v21, %s3323_s23 }
 0x4c4   : > { %v3262_v32 = vpop.eup %3261  ;;  %v2165_v34 = vadd.f32 1.0, %v3260_v22  ;;  %3277 = vpow2.f32 %v2611_v18  ;;  %v2613_v15 = vmul.f32 -1.442695, %v3938_v10  ;;  %2324 = vrot.lane.b32.xlu0 %v3938_v10, %s3323_s23  ;;  %v3043_v29 = vpop.f32.mrb[28].mxu1 }
 0x4c5   : > { %v2164_v35 = vadd.f32 1.0, %v3262_v32  ;;  %3279 = vpow2.f32 %v2614_v24  ;;  %v3947_v28 = vadd.f32 %v3043_v29, %v3872_v23  ;;  %v2054_v36 = vpop.f32.mrb[29].mxu1 }
 0x4c6   : > { %3281 = vrcp.f32 %v2165_v34  ;;  %v3950_v38 = vadd.f32 %v3872_v23, %v2054_v36 }
 0x4c7   : > { %v3264_v26 = vpop.eup %3263  ;;  %3283 = vrcp.f32 %v2164_v35  ;;  %v2616_v30 = vmul.f32 -1.442695, %v3947_v28  ;;  %2330 = vrot.lane.b32.xlu1 %v3947_v28, %s3323_s23 }
 0x4c8   : > { %v3266_v40 = vpop.eup %3265  ;;  %v2167_v41 = vadd.f32 1.0, %v3264_v26  ;;  %3285 = vpow2.f32 %v2613_v15  ;;  %v2615_v42 = vmul.f32 -1.442695, %v3950_v38  ;;  %2328 = vrot.lane.b32.xlu0 %v3950_v38, %s3323_s23  ;;  %v3046_v46 = vpop.f32.mrb[30].mxu1 }
 0x4c9   : > { %v3268_v47 = vpop.eup %3267  ;;  %3287 = vpow2.f32 %v2616_v30  ;;  %v3959_v48 = vadd.f32 %v3046_v46, %v3872_v23  ;;  %v2064_v49 = vpop.f32.mrb[31].mxu1 }
 0x4ca   : > { %v3270_v51 = vpop.eup %3269  ;;  %v3962_v27 = vadd.f32 %v3872_v23, %v2064_v49  ;;  %3289 = vpow2.f32 %v2615_v42 }
 0x4cb   : > { %v3272_v44 = vpop.eup %3271  ;;  %v2166_v25 = vadd.f32 1.0, %v3270_v51  ;;  %v2618_v31 = vmul.f32 -1.442695, %v3959_v48  ;;  %2226 = vrot.lane.b32.xlu1 %v3266_v40, %s3324_s13  ;;  %3291 = vrcp.f32 %v2167_v41 }
 0x4cc   : > { %v3274_v54 = vpop.eup %3273  ;;  %v2169_v56 = vadd.f32 1.0, %v3272_v44  ;;  %v2617_v33 = vmul.f32 -1.442695, %v3962_v27  ;;  %2224 = vrot.lane.b32.xlu0 %v3268_v47, %s3324_s13 }
 0x4cd   : > { %v3276_v37 = vpop.eup %3275  ;;  %3293 = vrcp.f32 %v2166_v25 }
 0x4ce   : > { %v3278_v59 = vpop.eup %3277  ;;  %3295 = vrcp.f32 %v2169_v56 }
 0x4cf   : > { %v3280_v23 = vpop.eup %3279  ;;  %v2168_v60 = vadd.f32 1.0, %v3278_v59  ;;  %3297 = vpow2.f32 %v2618_v31  ;;  %2230 = vrot.lane.b32.xlu1 %v3274_v54, %s3324_s13 }
 0x4d0   : > { %v3282_v63 = vpop.eup %3281  ;;  %v2171_v1 = vadd.f32 1.0, %v3280_v23  ;;  %3299 = vpow2.f32 %v2617_v33  ;;  %2228 = vrot.lane.b32.xlu0 %v3276_v37, %s3324_s13 }
 0x4d1   : > { %v3284_v39 = vpop.eup %3283  ;;  %3301 = vrcp.f32 %v2168_v60 }
 0x4d2   : > { %v3286_v43 = vpop.eup %3285  ;;  %3303 = vrcp.f32 %v2171_v1 }
 0x4d3   : > { %v3288_v4 = vpop.eup %3287  ;;  %v2170_v6 = vadd.f32 1.0, %v3286_v43  ;;  %2234 = vrot.lane.b32.xlu1 %v3282_v63, %s3324_s13 }
 0x4d4   : > { %v2173_v7 = vadd.f32 1.0, %v3288_v4  ;;  %2232 = vrot.lane.b32.xlu0 %v3284_v39, %s3324_s13  ;;  %v3290_v8 = vpop.eup %3289 }
 0x4d5   : > { %3305 = vrcp.f32 %v2170_v6  ;;  %v3292_v45 = vpop.eup %3291  ;;  %v2172_v52 = vadd.f32 1.0, %v3290_v8 }
 0x4d6   : > { %3307 = vrcp.f32 %v2173_v7 }
 0x4d7   : > { %v3294_v9 = vpop.eup %3293  ;;  %2238 = vrot.lane.b32.xlu1 %v3292_v45, %s3324_s13  ;;  %3309 = vrcp.f32 %v2172_v52 }
 0x4d8   : > { %v3296_v11 = vpop.eup %3295  ;;  %2236 = vrot.lane.b32.xlu0 %v3294_v9, %s3324_s13 }
 0x4d9   : > { %v3298_v13 = vpop.eup %3297 }
 0x4da   : > { %v3300_v16 = vpop.eup %3299  ;;  %v2175_v55 = vadd.f32 1.0, %v3298_v13 }
 0x4db   : > { %v3302_v62 = vpop.eup %3301  ;;  %v2174_v17 = vadd.f32 1.0, %v3300_v16  ;;  %2242 = vrot.lane.b32.xlu1 %v3296_v11, %s3324_s13 }
 0x4dc   : > { %3311 = vrcp.f32 %v2175_v55  ;;  %2240 = vrot.lane.b32.xlu0 %v3302_v62, %s3324_s13  ;;  %v3304_v18 = vpop.eup %3303 }
 0x4dd   : > { %3313 = vrcp.f32 %v2174_v17 }
 0x4df   : > { %v3306_v19 = vpop.eup %3305  ;;  %2246 = vrot.lane.b32.xlu1 %v3304_v18, %s3324_s13 }
 0x4e0   : > { %2244 = vrot.lane.b32.xlu0 %v3306_v19, %s3324_s13  ;;  %v3308_v20 = vpop.eup %3307 }
 0x4e1   : > { %v3310_v3 = vpop.eup %3309 }
 0x4e3   : > { %2250 = vrot.lane.b32.xlu1 %v3308_v20, %s3324_s13 }
 0x4e4   : > { %2248 = vrot.lane.b32.xlu0 %v3310_v3, %s3324_s13 }
 0x4e6   : > { %v3312_v22 = vpop.eup %3311 }
 0x4e7   : > { %v3314_v24 = vpop.eup %3313  ;;  %2254 = vrot.lane.b32.xlu1 %v3312_v22, %s3324_s13 }
 0x4e8   : > { %2252 = vrot.lane.b32.xlu0 %v3314_v24, %s3324_s13  ;;  %s2621_s13 = sshll.u32 %s4060_s10, 7 }
 0x4e9   : > { %s3996_s22 = scalar_lea.vmem %s4058_s9, %s2621_s13 }
 0x4eb   : > { %2334 = vrot.lane.b32.xlu1 %v3959_v48, %s3323_s23 }
 0x4ec   : > { %2332 = vrot.lane.b32.xlu0 %v3962_v27, %s3323_s23 }
 0x521   : > { %v2307_v32 = vpop.permute.xlu1 %2306 }
 0x522   : > { %v2305_v34 = vpop.permute.xlu0 %2304 }
 0x525   : > { %v2311_v15 = vpop.permute.xlu1 %2310 }
 0x526   : > { %v2309_v29 = vpop.permute.xlu0 %2308 }
 0x529   : > { %v2315_v35 = vpop.permute.xlu1 %2314 }
 0x52a   : > { %v2313_v36 = vpop.permute.xlu0 %2312 }
 0x52d   : > { %v2319_v26 = vpop.permute.xlu1 %2318 }
 0x52e   : > { %v2317_v30 = vpop.permute.xlu0 %2316 }
 0x531   : > { %v2323_v40 = vpop.permute.xlu1 %2322 }
 0x532   : > { %v2321_v41 = vpop.permute.xlu0 %2320 }
 0x535   : > { %v2327_v42 = vpop.permute.xlu1 %2326 }
 0x536   : > { %v2325_v46 = vpop.permute.xlu0 %2324 }
 0x539   : > { %v3986_v47 = vpop.permute.xlu1 %2330 }
 0x53a   : > { %v3988_v49 = vpop.permute.xlu0 %2328 }
 0x53d   : > { %v2227_v51 = vpop.permute.xlu1 %2226 }
 0x53e   : > { %v2273_v44 = vmul.f32 %v2227_v51, %v3875_v50  ;;  %v2225_v25 = vpop.permute.xlu0 %2224 }
 0x53f   : > { %v2272_v31 = vmul.f32 %v2225_v25, %v3878_v53 }
 0x540   : > { %v2353_v54 = vadd.f32 %v2307_v32, %v2273_v44 }
 0x541   : > { %v2352_v56 = vadd.f32 %v2305_v34, %v2272_v31  ;;  %v2231_v33 = vpop.permute.xlu1 %2230 }
 0x542   : > { %v2369_v37 = vmax.f32 %v2353_v54, 0.0  ;;  %v2275_v59 = vmul.f32 %v2231_v33, %v3887_v57  ;;  %v2229_v23 = vpop.permute.xlu0 %2228 }
 0x543   : > { %v2368_v50 = vmax.f32 %v2352_v56, 0.0  ;;  %v2274_v60 = vmul.f32 %v2229_v23, %v3890_v58 }
 0x544   : > { %2385 = vst.msk [vmem:[%s3996_s22 + $0x8] sm:$0xff] %vm1186_vm2, %v2369_v37  ;;  %v2355_v53 = vadd.f32 %v2311_v15, %v2275_v59 }
 0x545   : > { %2384 = vst.msk [vmem:[%s3996_s22] sm:$0xff] %vm1186_vm2, %v2368_v50  ;;  %v2354_v63 = vadd.f32 %v2309_v29, %v2274_v60  ;;  %v2235_v1 = vpop.permute.xlu1 %2234 }
 0x546   : > { %v2371_v39 = vmax.f32 %v2355_v53, 0.0  ;;  %v2277_v43 = vmul.f32 %v2235_v1, %v3899_v61  ;;  %v2233_v4 = vpop.permute.xlu0 %2232 }
 0x547   : > { %v2370_v6 = vmax.f32 %v2354_v63, 0.0  ;;  %v2276_v57 = vmul.f32 %v2233_v4, %v3902_v0 }
 0x548   : > { %2387 = vst.msk [vmem:[%s3996_s22 + $0x18] sm:$0xff] %vm1186_vm2, %v2371_v39  ;;  %v2357_v7 = vadd.f32 %v2315_v35, %v2277_v43 }
 0x549   : > { %2386 = vst.msk [vmem:[%s3996_s22 + $0x10] sm:$0xff] %vm1186_vm2, %v2370_v6  ;;  %v2356_v58 = vadd.f32 %v2313_v36, %v2276_v57  ;;  %v2239_v8 = vpop.permute.xlu1 %2238 }
 0x54a   : > { %v2373_v45 = vmax.f32 %v2357_v7, 0.0  ;;  %v2279_v52 = vmul.f32 %v2239_v8, %v3911_v2  ;;  %v2237_v9 = vpop.permute.xlu0 %2236 }
 0x54b   : > { %v2372_v11 = vmax.f32 %v2356_v58, 0.0  ;;  %v2278_v61 = vmul.f32 %v2237_v9, %v3914_v5 }
 0x54c   : > { %2389 = vst.msk [vmem:[%s3996_s22 + $0x28] sm:$0xff] %vm1186_vm2, %v2373_v45  ;;  %v2359_v13 = vadd.f32 %v2319_v26, %v2279_v52 }
 0x54d   : > { %2388 = vst.msk [vmem:[%s3996_s22 + $0x20] sm:$0xff] %vm1186_vm2, %v2372_v11  ;;  %v2358_v0 = vadd.f32 %v2317_v30, %v2278_v61  ;;  %v2243_v16 = vpop.permute.xlu1 %2242 }
 0x54e   : > { %v2375_v55 = vmax.f32 %v2359_v13, 0.0  ;;  %v2281_v62 = vmul.f32 %v2243_v16, %v3923_v12  ;;  %v2241_v17 = vpop.permute.xlu0 %2240 }
 0x54f   : > { %v2374_v18 = vmax.f32 %v2358_v0, 0.0  ;;  %v2280_v2 = vmul.f32 %v2241_v17, %v3926_v14 }
 0x550   : > { %2391 = vst.msk [vmem:[%s3996_s22 + $0x38] sm:$0xff] %vm1186_vm2, %v2375_v55  ;;  %v2361_v19 = vadd.f32 %v2323_v40, %v2281_v62 }
 0x551   : > { %2390 = vst.msk [vmem:[%s3996_s22 + $0x30] sm:$0xff] %vm1186_vm2, %v2374_v18  ;;  %v2360_v5 = vadd.f32 %v2321_v41, %v2280_v2  ;;  %v2247_v20 = vpop.permute.xlu1 %2246 }
 0x552   : > { %v2377_v3 = vmax.f32 %v2361_v19, 0.0  ;;  %v2283_v22 = vmul.f32 %v2247_v20, %v3935_v21  ;;  %v2245_v24 = vpop.permute.xlu0 %2244 }
 0x553   : > { %v2376_v32 = vmax.f32 %v2360_v5, 0.0  ;;  %v2282_v12 = vmul.f32 %v2245_v24, %v3938_v10 }
 0x554   : > { %2393 = vst.msk [vmem:[%s3996_s22 + $0x48] sm:$0xff] %vm1186_vm2, %v2377_v3  ;;  %v2363_v34 = vadd.f32 %v2327_v42, %v2283_v22 }
 0x555   : > { %2392 = vst.msk [vmem:[%s3996_s22 + $0x40] sm:$0xff] %vm1186_vm2, %v2376_v32  ;;  %v2362_v14 = vadd.f32 %v2325_v46, %v2282_v12  ;;  %v2251_v15 = vpop.permute.xlu1 %2250 }
 0x556   : > { %v2379_v29 = vmax.f32 %v2363_v34, 0.0  ;;  %v2285_v35 = vmul.f32 %v2251_v15, %v3947_v28  ;;  %v2249_v36 = vpop.permute.xlu0 %2248 }
 0x557   : > { %v2378_v26 = vmax.f32 %v2362_v14, 0.0  ;;  %v2284_v21 = vmul.f32 %v2249_v36, %v3950_v38 }
 0x558   : > { %2395 = vst.msk [vmem:[%s3996_s22 + $0x58] sm:$0xff] %vm1186_vm2, %v2379_v29  ;;  %v2365_v10 = vadd.f32 %v3986_v47, %v2285_v35 }
 0x559   : > { %2394 = vst.msk [vmem:[%s3996_s22 + $0x50] sm:$0xff] %vm1186_vm2, %v2378_v26  ;;  %v2364_v30 = vadd.f32 %v3988_v49, %v2284_v21  ;;  %v2255_v40 = vpop.permute.xlu1 %2254 }
 0x55a   : > { %v2381_v41 = vmax.f32 %v2365_v10, 0.0  ;;  %v2253_v42 = vpop.permute.xlu0 %2252  ;;  %v2287_v28 = vmul.f32 %v2255_v40, %v3959_v48 }
 0x55b   : > { %v2380_v46 = vmax.f32 %v2364_v30, 0.0  ;;  %v2286_v38 = vmul.f32 %v2253_v42, %v3962_v27 }
 0x55c   : > { %2397 = vst.msk [vmem:[%s3996_s22 + $0x68] sm:$0xff] %vm1186_vm2, %v2381_v41 }
 0x55d   : > { %2396 = vst.msk [vmem:[%s3996_s22 + $0x60] sm:$0xff] %vm1186_vm2, %v2380_v46  ;;  %v2335_v51 = vpop.permute.xlu1 %2334 }
 0x55e   : > { %v2367_v47 = vadd.f32 %v2335_v51, %v2287_v28  ;;  %v2333_v44 = vpop.permute.xlu0 %2332 }
 0x55f   : > { %v2366_v25 = vadd.f32 %v2333_v44, %v2286_v38 }
 0x560   : > { %v2383_v31 = vmax.f32 %v2367_v47, 0.0 }
 0x561   : > { %v2382_v54 = vmax.f32 %v2366_v25, 0.0 }
 0x562   : > { %2399 = vst.msk [vmem:[%s3996_s22 + $0x78] sm:$0xff] %vm1186_vm2, %v2383_v31 }
 0x563   : > { %2398 = vst.msk [vmem:[%s3996_s22 + $0x70] sm:$0xff] %vm1186_vm2, %v2382_v54 }
 0x564 PF: > { %s19_s30 = sadd.s32 1, %s3321_s30  }
 0x565   : > { %p16_p4 = scmp.ge.s32.totalorder %s19_s30, 4  }
 0x567   :  { %18 = sbr.rel (!%p16_p4) target bundleno = 1 (0x1), region = 90 }

// kernel: stgcn_forward.3
= control target key start
LH: loop header
LB: loop body
LE: loop exit
PB: predicated region body
PF: predicated region fallthrough
CT: control target
= control target key end

     0   :  { %14 = vsyncpa [#allocation3], 0  ;;  %s4321_s0 = inlined_call_operand.vmem [shape: f32[2,160,32], index: 0, kind: input, shape index: {}]   ;;  %s4322_s1 = inlined_call_operand.vmem [shape: f32[3,32,96], index: 1, kind: input, shape index: {}]   ;;  %s4323_s2 = inlined_call_operand.vmem [shape: f32[1,96], index: 2, kind: input, shape index: {}]   ;;  %s4324_s3 = inlined_call_operand.vmem [shape: f32[128,128], index: 3, kind: input, shape index: {}]   ;;  %s4325_s4 = inlined_call_operand.vmem [shape: f32[128,32], index: 4, kind: input, shape index: {}]   ;;  %s4326_s5 = inlined_call_operand.vmem [shape: f32[32,32], index: 5, kind: input, shape index: {}]   ;;  %s4327_s6 = inlined_call_operand.vmem [shape: f32[1,32], index: 6, kind: input, shape index: {}]   ;;  %s4328_s7 = inlined_call_operand.vmem [shape: f32[3,32,96], index: 7, kind: input, shape index: {}]   ;;  %s4329_s8 = inlined_call_operand.vmem [shape: f32[1,96], index: 8, kind: input, shape index: {}]   ;;  %s4330_s9 = inlined_call_operand.hbm [shape: f32[2,128,32], index: 9, kind: output, shape index: {}]  }
   0x1   :  { %16 = vsyncpa [#allocation3 + $0x1], 0  ;;  %s3540_s30 = smov 0   ;;  %s3542_s10 = smov 0  }
   0x2   :  { %s3544_s11 = smov 0   ;;  %s3546_s12 = smov 0  }
   0x3 LB: > { %s3561_s13 = sadd.s32 4294967295, %s3482_s12   ;;  %s2472_s14 = sadd.s32 4294967294, %s3482_s12   ;;  %s3482_s12 = sphi %s3546_s12, %s4336_s12   ;;  %s3478_s11 = sphi %s3544_s11, %s4335_s11   ;;  %s3474_s10 = sphi %s3542_s10, %s4334_s10   ;;  %s3470_s30 = sphi %s3540_s30, %s4333_s30  }
   0x4   : > { %s3565_s15 = sadd.s32 1, %s3482_s12   ;;  %s223_s16 = sadd.s32 1, %s3478_s11 }
   0x5   : > { %s220_s17 = ssub.s32 %s3482_s12, %s3565_s15  ;;  %p233_p0 = scmp.ne.s32.totalorder %s3478_s11, %s3474_s10 }
   0x6   : > { %p221_p1 = scmp.eq.s32.totalorder %s220_s17, 0  ;;  %p234_p2 = scmp.eq.s32.totalorder %s3561_s13, 1 }
   0x7   : > { %p239_p3 = scmp.ne.s32.totalorder %s3474_s10, %s3470_s30  ;;  %p240_p4 = scmp.eq.s32.totalorder %s2472_s14, 1 }
   0x8   : > { %s3576_s18 = scalar_select %p221_p1, %s3478_s11, %s223_s16  }
   0x9   : > { %p3578_p5 = por %p234_p2, %p233_p0  ;;  %p3582_p6 = por %p240_p4, %p239_p3 }
   0xa   : > { %p2475_p7 = scmp.ge.s32.totalorder %s3482_s12, 1  ;;  %p290_p8 = scmp.lt.s32.totalorder %s3482_s12, 3 }
   0xc   : > { %p291_p9 = pnand %p2475_p7, %p290_p8 }
   0xd   : > { %v2478_v0 = vld [vmem:[%s4322_s1 + $0x20] sm:$0xff] (!%p291_p9)  ;;  %v2479_v1 = vld [vmem:[%s4322_s1 + $0x28] sm:$0xff] (!%p291_p9)  ;;  %v2480_v2 = vld [vmem:[%s4322_s1 + $0x30] sm:$0xff] (!%p291_p9)  ;;  %p326_p10 = scmp.lt.s32.totalorder (!%p291_p9), %s3561_s13, 1  ;;  %vm360_vm0 = vcmask (!%p291_p9), 261120   ;;  %s3484_s14 = smov (!%p291_p9), 64  }
   0xe   : > { %294 = sbr.rel (%p291_p9) target bundleno = 1403 (0x57b), region = 56  ;;  %v3095_v3 = vpack.c.bf16 (!%p291_p9), %v2479_v1, %v2478_v0  ;;  %v2481_v4 = vld [vmem:[%s4322_s1 + $0x38] sm:$0xff] (!%p291_p9)  ;;  %v351_v6 = vld [vmem:[%s4322_s1] sm:$0xff] (!%p291_p9)  ;;  %v352_v7 = vld [vmem:[%s4322_s1 + $0x8] sm:$0xff] (!%p291_p9)  ;;  %s3485_s26 = smov (!%p291_p9), 96  }
   0xf   : > { %v3099_v5 = vpack.c.bf16 (!%p291_p9), %v2481_v4, %v2480_v2  ;;  %v3103_v8 = vpack.c.bf16 (!%p291_p9), %v352_v7, %v351_v6  ;;  %v353_v9 = vld [vmem:[%s4322_s1 + $0x10] sm:$0xff] (!%p291_p9)  ;;  %v354_v10 = vld [vmem:[%s4322_s1 + $0x18] sm:$0xff] (!%p291_p9)  ;;  %v2514_v15 = vld [vmem:[%s4322_s1 + $0x40] sm:$0xff] (!%p291_p9)  ;;  %s3487_s24 = smov (!%p291_p9), [#allocation2]  }
  0x10   : > { %3096 = vmatprep.subr.bf16.mxu0 (!%p291_p9), %v3095_v3  ;;  %v3107_v14 = vpack.c.bf16 (!%p291_p9), %v354_v10, %v353_v9  ;;  %v2515_v16 = vld [vmem:[%s4322_s1 + $0x48] sm:$0xff] (!%p291_p9)  ;;  %v2516_v32 = vld [vmem:[%s4322_s1 + $0x50] sm:$0xff] (!%p291_p9)  ;;  %v2517_v33 = vld [vmem:[%s4322_s1 + $0x58] sm:$0xff] (!%p291_p9)  ;;  %s3424_s27 = sshll.u32 (!%p291_p9), %s3487_s24, 4  ;;  %s3425_s27 = int_to_ptr.vmem [resolvable:$false] %s3424_s27 }
  0x11   : > { %3098 = vmatpush3.bf16.msra.mxu0 (!%p291_p9), %v3095_v3  ;;  %v3111_v19 = vpack.c.bf16 (!%p291_p9), %v2515_v16, %v2514_v15  ;;  %v3115_v35 = vpack.c.bf16 (!%p291_p9), %v2517_v33, %v2516_v32  ;;  %v3702_v38 = vld [vmem:[%s4323_s2] ss:$0 sm:$0xff] (!%p291_p9)  ;;  %v1173_v16 = vld [vmem:[%s4326_s5 + $0x8] sm:$0xff] (!%p291_p9)  ;;  %s3426_s28 = scalar_lea.vmem (!%p291_p9), %s3425_s27, 4096 }
  0x12   : > { %3100 = vmatprep.subr.bf16.mxu0 (!%p291_p9), %v3099_v5  ;;  %v1172_v15 = vld [vmem:[%s4326_s5] sm:$0xff] (!%p291_p9) }
  0x15   : > { %s327_s29 = scalar_select %p326_p10, %s3561_s13, 1  ;;  %3102 = vmatpush3.bf16.msra.mxu0 %v3099_v5 }
  0x16   : > { %3104 = vmatprep.subr.bf16.mxu0 %v3103_v8 }
  0x17   : > { %s3247_s22 = smul.u32 160, %s327_s29  ;;  %s2642_s29 = sshll.u32 %s3561_s13, 11 }
  0x19   : > { %s3611_s25 = scalar_lea.vmem %s4321_s0, %s3247_s22  ;;  %s4270_s22 = scalar_lea.hbm %s4330_s9, %s2642_s29 }
  0x1a   : > { %v333_v11 = vld [vmem:[%s3611_s25 + $0x10] sm:$0xff]  ;;  %v334_v12 = vld [vmem:[%s3611_s25 + $0x18] sm:$0xff]  ;;  %v335_v13 = vld [vmem:[%s3611_s25 + $0x20] sm:$0xff] }
  0x1b   : > { %2823 = vmatprep.mubr.msk.f32.mxu0 %vm360_vm0, %v333_v11  ;;  %v336_v17 = vld [vmem:[%s3611_s25 + $0x28] sm:$0xff]  ;;  %v337_v18 = vld [vmem:[%s3611_s25 + $0x30] sm:$0xff]  ;;  %v338_v20 = vld [vmem:[%s3611_s25 + $0x38] sm:$0xff] }
  0x1c   : > { %2824 = vmatmul.mubr.msk.f32.vlgmr.msra.gmra.mrb[0].mxu0 %vm360_vm0, %v334_v12  ;;  %v339_v21 = vld [vmem:[%s3611_s25 + $0x40] sm:$0xff]  ;;  %v340_v22 = vld [vmem:[%s3611_s25 + $0x48] sm:$0xff]  ;;  %v341_v23 = vld [vmem:[%s3611_s25 + $0x50] sm:$0xff] }
  0x1d   : > { %3106 = vmatpush3.bf16.msra.mxu0 %v3103_v8  ;;  %2826 = vmatprep.mubr.msk.f32.mxu0 %vm360_vm0, %v335_v13  ;;  %v342_v24 = vld [vmem:[%s3611_s25 + $0x58] sm:$0xff]  ;;  %v343_v25 = vld [vmem:[%s3611_s25 + $0x60] sm:$0xff]  ;;  %v344_v26 = vld [vmem:[%s3611_s25 + $0x68] sm:$0xff] }
  0x1e   : > { %3108 = vmatprep.subr.bf16.mxu0 %v3107_v14  ;;  %v345_v27 = vld [vmem:[%s3611_s25 + $0x70] sm:$0xff]  ;;  %v346_v28 = vld [vmem:[%s3611_s25 + $0x78] sm:$0xff]  ;;  %v347_v29 = vld [vmem:[%s3611_s25 + $0x80] sm:$0xff] }
  0x1f   : > { %v348_v30 = vld [vmem:[%s3611_s25 + $0x88] sm:$0xff]  ;;  %v331_v31 = vld [vmem:[%s3611_s25] sm:$0xff]  ;;  %v349_v36 = vld [vmem:[%s3611_s25 + $0x90] sm:$0xff] }
  0x20   : > { %2827 = vmatmul.mubr.msk.f32.gmra.mrb[2].mxu0 %vm360_vm0, %v336_v17  ;;  %v332_v34 = vld [vmem:[%s3611_s25 + $0x8] sm:$0xff]  ;;  %v350_v37 = vld [vmem:[%s3611_s25 + $0x98] sm:$0xff] }
  0x21   : > { %2829 = vmatprep.mubr.msk.f32.mxu0 %vm360_vm0, %v337_v18  ;;  %3110 = vmatpush3.bf16.msra.mxu0 %v3107_v14 }
  0x22   : > { %3112 = vmatprep.subr.bf16.mxu0 %v3111_v19 }
  0x24   : > { %2830 = vmatmul.mubr.msk.f32.gmra.mrb[4].mxu0 %vm360_vm0, %v338_v20 }
  0x25   : > { %2832 = vmatprep.mubr.msk.f32.mxu0 %vm360_vm0, %v339_v21 }
  0x28   : > { %2833 = vmatmul.mubr.msk.f32.gmra.mrb[6].mxu0 %vm360_vm0, %v340_v22 }
  0x29   : > { %2835 = vmatprep.mubr.msk.f32.mxu0 %vm360_vm0, %v341_v23 }
  0x2c   : > { %2836 = vmatmul.mubr.msk.f32.gmra.mrb[8].mxu0 %vm360_vm0, %v342_v24 }
  0x2d   : > { %2838 = vmatprep.mubr.msk.f32.mxu0 %vm360_vm0, %v343_v25 }
  0x30   : > { %2839 = vmatmul.mubr.msk.f32.gmra.mrb[10].mxu0 %vm360_vm0, %v344_v26 }
  0x31   : > { %2841 = vmatprep.mubr.msk.f32.mxu0 %vm360_vm0, %v345_v27 }
  0x34   : > { %2842 = vmatmul.mubr.msk.f32.gmra.mrb[12].mxu0 %vm360_vm0, %v346_v28 }
  0x35   : > { %2844 = vmatprep.mubr.msk.f32.mxu0 %vm360_vm0, %v347_v29 }
  0x38   : > { %2845 = vmatmul.mubr.msk.f32.gmra.mrb[14].mxu0 %vm360_vm0, %v348_v30 }
  0x39   : > { %2855 = vmatprep.mubr.msk.f32.mxu0 %vm360_vm0, %v331_v31 }
  0x3c   : > { %2856 = vmatmul.mubr.msk.f32.vlgmr.msra.gmra.mrb[0].mxu0 %vm360_vm0, %v332_v34 }
  0x3d   : > { %3114 = vmatpush3.bf16.msra.mxu0 %v3111_v19  ;;  %2858 = vmatprep.mubr.msk.f32.mxu0 %vm360_vm0, %v333_v11  ;;  %v3119_v19 = vpack.c.bf16 %v1173_v16, %v1172_v15 }
  0x3e   : > { %3116 = vmatprep.subr.bf16.mxu0 %v3115_v35 }
  0x3f   : > { %3120 = vmatprep.subr.bf16.mxu1 %v3119_v19 }
  0x40   : > { %2859 = vmatmul.mubr.msk.f32.gmra.mrb[2].mxu0 %vm360_vm0, %v334_v12  ;;  %3122 = vmatpush3.bf16.msra.mxu1 %v3119_v19 }
  0x41   : > { %2861 = vmatprep.mubr.msk.f32.mxu0 %vm360_vm0, %v335_v13  ;;  %3118 = vmatpush3.bf16.msra.mxu0 %v3115_v35 }
  0x44   : > { %2862 = vmatmul.mubr.msk.f32.gmra.mrb[4].mxu0 %vm360_vm0, %v336_v17 }
  0x45   : > { %2864 = vmatprep.mubr.msk.f32.mxu0 %vm360_vm0, %v337_v18 }
  0x48   : > { %2865 = vmatmul.mubr.msk.f32.gmra.mrb[6].mxu0 %vm360_vm0, %v338_v20 }
  0x49   : > { %2867 = vmatprep.mubr.msk.f32.mxu0 %vm360_vm0, %v339_v21 }
  0x4c   : > { %2868 = vmatmul.mubr.msk.f32.gmra.mrb[8].mxu0 %vm360_vm0, %v340_v22 }
  0x4d   : > { %2870 = vmatprep.mubr.msk.f32.mxu0 %vm360_vm0, %v341_v23 }
  0x50   : > { %2871 = vmatmul.mubr.msk.f32.gmra.mrb[10].mxu0 %vm360_vm0, %v342_v24 }
  0x51   : > { %2873 = vmatprep.mubr.msk.f32.mxu0 %vm360_vm0, %v343_v25 }
  0x54   : > { %2874 = vmatmul.mubr.msk.f32.gmra.mrb[12].mxu0 %vm360_vm0, %v344_v26 }
  0x55   : > { %2876 = vmatprep.mubr.msk.f32.mxu0 %vm360_vm0, %v345_v27 }
  0x58   : > { %2877 = vmatmul.mubr.msk.f32.gmra.mrb[14].mxu0 %vm360_vm0, %v346_v28 }
  0x59   : > { %2887 = vmatprep.mubr.msk.f32.mxu0 %vm360_vm0, %v335_v13 }
  0x5c   : > { %2888 = vmatmul.mubr.msk.f32.vlgmr.msra.gmra.mrb[0].mxu0 %vm360_vm0, %v336_v17 }
  0x5d   : > { %2890 = vmatprep.mubr.msk.f32.mxu0 %vm360_vm0, %v337_v18 }
  0x60   : > { %2891 = vmatmul.mubr.msk.f32.gmra.mrb[2].mxu0 %vm360_vm0, %v338_v20 }
  0x61   : > { %2893 = vmatprep.mubr.msk.f32.mxu0 %vm360_vm0, %v339_v21 }
  0x64   : > { %2894 = vmatmul.mubr.msk.f32.gmra.mrb[4].mxu0 %vm360_vm0, %v340_v22 }
  0x65   : > { %2896 = vmatprep.mubr.msk.f32.mxu0 %vm360_vm0, %v341_v23 }
  0x68   : > { %2897 = vmatmul.mubr.msk.f32.gmra.mrb[6].mxu0 %vm360_vm0, %v342_v24 }
  0x69   : > { %2899 = vmatprep.mubr.msk.f32.mxu0 %vm360_vm0, %v343_v25 }
  0x6c   : > { %2900 = vmatmul.mubr.msk.f32.gmra.mrb[8].mxu0 %vm360_vm0, %v344_v26 }
  0x6d   : > { %2902 = vmatprep.mubr.msk.f32.mxu0 %vm360_vm0, %v345_v27  ;;  %v1174_v27 = vld [vmem:[%s4326_s5 + $0x10] sm:$0xff] }
  0x70   : > { %2903 = vmatmul.mubr.msk.f32.gmra.mrb[10].mxu0 %vm360_vm0, %v346_v28  ;;  %v1175_v28 = vld [vmem:[%s4326_s5 + $0x18] sm:$0xff] }
  0x71   : > { %2905 = vmatprep.mubr.msk.f32.mxu0 %vm360_vm0, %v347_v29  ;;  %v3123_v31 = vpack.c.bf16 %v1175_v28, %v1174_v27 }
  0x73   : > { %3124 = vmatprep.subr.bf16.mxu1 %v3123_v31 }
  0x74   : > { %2906 = vmatmul.mubr.msk.f32.gmra.mrb[12].mxu0 %vm360_vm0, %v348_v30  ;;  %3126 = vmatpush3.bf16.msra.mxu1 %v3123_v31 }
  0x75   : > { %2908 = vmatprep.mubr.msk.f32.mxu0 %vm360_vm0, %v349_v36 }
  0x78   : > { %2909 = vmatmul.mubr.msk.f32.gmra.mrb[14].mxu0 %vm360_vm0, %v350_v37 }
 0x12f   : > { %v2889_v39 = vpop.f32.mrb[0].mxu0 }
 0x130   : > { %v3705_v40 = vadd.f32 %v2889_v39, %v3702_v38  ;;  %v782_v41 = vpop.f32.mrb[1].mxu0 }
 0x131   : > { %v3708_v42 = vadd.f32 %v3702_v38, %v782_v41 }
 0x132   : > { %v2536_v43 = vmul.f32 -1.442695, %v3705_v40  ;;  %1094 = vrot.lane.b32.xlu1 %v3705_v40, %s3484_s14 }
 0x133   : > { %v2535_v44 = vmul.f32 -1.442695, %v3708_v42  ;;  %v2892_v45 = vpop.f32.mrb[2].mxu0 }
 0x134   : > { %3292 = vpow2.f32 %v2536_v43  ;;  %v3715_v46 = vadd.f32 %v2892_v45, %v3702_v38  ;;  %v792_v47 = vpop.f32.mrb[3].mxu0 }
 0x135   : > { %3294 = vpow2.f32 %v2535_v44  ;;  %v3718_v48 = vadd.f32 %v3702_v38, %v792_v47 }
 0x136   : > { %v2538_v49 = vmul.f32 -1.442695, %v3715_v46  ;;  %1092 = vrot.lane.b32.xlu1 %v3708_v42, %s3484_s14 }
 0x137   : > { %v2537_v50 = vmul.f32 -1.442695, %v3718_v48  ;;  %1096 = vrot.lane.b32.xlu0 %v3718_v48, %s3484_s14  ;;  %v2895_v51 = vpop.f32.mrb[4].mxu0 }
 0x138   : > { %3296 = vpow2.f32 %v2538_v49  ;;  %v3727_v52 = vadd.f32 %v2895_v51, %v3702_v38  ;;  %v802_v53 = vpop.f32.mrb[5].mxu0 }
 0x139   : > { %3298 = vpow2.f32 %v2537_v50  ;;  %v3730_v54 = vadd.f32 %v3702_v38, %v802_v53 }
 0x13a   : > { %v2540_v55 = vmul.f32 -1.442695, %v3727_v52  ;;  %1098 = vrot.lane.b32.xlu1 %v3715_v46, %s3484_s14 }
 0x13b   : > { %v2539_v56 = vmul.f32 -1.442695, %v3730_v54  ;;  %1100 = vrot.lane.b32.xlu0 %v3730_v54, %s3484_s14  ;;  %v2898_v57 = vpop.f32.mrb[6].mxu0 }
 0x13c   : > { %3300 = vpow2.f32 %v2540_v55  ;;  %v3739_v58 = vadd.f32 %v2898_v57, %v3702_v38  ;;  %v812_v59 = vpop.f32.mrb[7].mxu0 }
 0x13d   : > { %v3742_v60 = vadd.f32 %v3702_v38, %v812_v59  ;;  %3302 = vpow2.f32 %v2539_v56 }
 0x13e   : > { %v3293_v61 = vpop.eup %3292  ;;  %v2542_v62 = vmul.f32 -1.442695, %v3739_v58  ;;  %1102 = vrot.lane.b32.xlu1 %v3727_v52, %s3484_s14 }
 0x13f   : > { %v3295_v63 = vpop.eup %3294  ;;  %v949_v0 = vadd.f32 1.0, %v3293_v61  ;;  %v2541_v1 = vmul.f32 -1.442695, %v3742_v60  ;;  %1104 = vrot.lane.b32.xlu0 %v3742_v60, %s3484_s14  ;;  %v2901_v2 = vpop.f32.mrb[8].mxu0 }
 0x140   : > { %3304 = vpow2.f32 %v2542_v62  ;;  %v3751_v3 = vadd.f32 %v2901_v2, %v3702_v38  ;;  %v822_v4 = vpop.f32.mrb[9].mxu0  ;;  %v948_v5 = vadd.f32 1.0, %v3295_v63 }
 0x141   : > { %v3754_v6 = vadd.f32 %v3702_v38, %v822_v4  ;;  %3306 = vrcp.f32 %v949_v0 }
 0x142   : > { %v3297_v7 = vpop.eup %3296  ;;  %v2544_v8 = vmul.f32 -1.442695, %v3751_v3  ;;  %1106 = vrot.lane.b32.xlu1 %v3739_v58, %s3484_s14  ;;  %3308 = vpow2.f32 %v2541_v1 }
 0x143   : > { %v3299_v9 = vpop.eup %3298  ;;  %v951_v10 = vadd.f32 1.0, %v3297_v7  ;;  %v2543_v11 = vmul.f32 -1.442695, %v3754_v6  ;;  %1108 = vrot.lane.b32.xlu0 %v3754_v6, %s3484_s14  ;;  %v2904_v12 = vpop.f32.mrb[10].mxu0 }
 0x144   : > { %3310 = vpow2.f32 %v2544_v8  ;;  %v3763_v13 = vadd.f32 %v2904_v12, %v3702_v38  ;;  %v832_v14 = vpop.f32.mrb[11].mxu0  ;;  %v950_v17 = vadd.f32 1.0, %v3299_v9 }
 0x145   : > { %3312 = vrcp.f32 %v948_v5  ;;  %v3772_v18 = vadd.f32 %v3702_v38, %v832_v14 }
 0x146   : > { %v3301_v20 = vpop.eup %3300  ;;  %3314 = vrcp.f32 %v951_v10  ;;  %v2546_v21 = vmul.f32 -1.442695, %v3763_v13  ;;  %1110 = vrot.lane.b32.xlu1 %v3751_v3, %s3484_s14 }
 0x147   : > { %v953_v22 = vadd.f32 1.0, %v3301_v20  ;;  %3316 = vpow2.f32 %v2543_v11  ;;  %v2545_v23 = vmul.f32 -1.442695, %v3772_v18  ;;  %1112 = vrot.lane.b32.xlu0 %v3772_v18, %s3484_s14  ;;  %v2907_v24 = vpop.f32.mrb[12].mxu0  ;;  %v3303_v29 = vpop.eup %3302 }
 0x148   : > { %3318 = vpow2.f32 %v2546_v21  ;;  %v3781_v25 = vadd.f32 %v2907_v24, %v3702_v38  ;;  %v842_v26 = vpop.f32.mrb[13].mxu0  ;;  %v952_v39 = vadd.f32 1.0, %v3303_v29 }
 0x149   : > { %3320 = vrcp.f32 %v950_v17  ;;  %v3790_v30 = vadd.f32 %v3702_v38, %v842_v26 }
 0x14a   : > { %v3305_v32 = vpop.eup %3304  ;;  %3322 = vrcp.f32 %v953_v22  ;;  %v2548_v33 = vmul.f32 -1.442695, %v3781_v25  ;;  %1114 = vrot.lane.b32.xlu1 %v3763_v13, %s3484_s14 }
 0x14b   : > { %v955_v34 = vadd.f32 1.0, %v3305_v32  ;;  %3324 = vpow2.f32 %v2545_v23  ;;  %v2547_v35 = vmul.f32 -1.442695, %v3790_v30  ;;  %1116 = vrot.lane.b32.xlu0 %v3790_v30, %s3484_s14  ;;  %v2910_v36 = vpop.f32.mrb[14].mxu0  ;;  %v3307_v37 = vpop.eup %3306 }
 0x14c   : > { %3326 = vpow2.f32 %v2548_v33  ;;  %v3799_v41 = vadd.f32 %v2910_v36, %v3702_v38  ;;  %v852_v43 = vpop.f32.mrb[15].mxu0  ;;  %v3309_v44 = vpop.eup %3308 }
 0x14d   : > { %v3802_v45 = vadd.f32 %v3702_v38, %v852_v43  ;;  %3328 = vrcp.f32 %v955_v34  ;;  %v954_v56 = vadd.f32 1.0, %v3309_v44 }
 0x14e   : > { %v3311_v47 = vpop.eup %3310  ;;  %v2550_v49 = vmul.f32 -1.442695, %v3799_v41  ;;  %1118 = vrot.lane.b32.xlu1 %v3781_v25, %s3484_s14  ;;  %3330 = vpow2.f32 %v2547_v35 }
 0x14f   : > { %v3313_v50 = vpop.eup %3312  ;;  %v957_v51 = vadd.f32 1.0, %v3311_v47  ;;  %v2549_v53 = vmul.f32 -1.442695, %v3802_v45  ;;  %1014 = vrot.lane.b32.xlu0 %v3307_v37, %s3485_s26  ;;  %3332 = vrcp.f32 %v952_v39 }
 0x150   : > { %v3315_v55 = vpop.eup %3314 }
 0x151   : > { %v3317_v38 = vpop.eup %3316  ;;  %3334 = vrcp.f32 %v957_v51 }
 0x152   : > { %v3319_v57 = vpop.eup %3318  ;;  %3336 = vpow2.f32 %v2550_v49  ;;  %1018 = vrot.lane.b32.xlu1 %v3315_v55, %s3485_s26  ;;  %v956_v63 = vadd.f32 1.0, %v3317_v38 }
 0x153   : > { %v3321_v59 = vpop.eup %3320  ;;  %v959_v61 = vadd.f32 1.0, %v3319_v57  ;;  %3338 = vpow2.f32 %v2549_v53  ;;  %1012 = vrot.lane.b32.xlu0 %v3313_v50, %s3485_s26 }
 0x154   : > { %v3323_v62 = vpop.eup %3322  ;;  %3340 = vrcp.f32 %v954_v56 }
 0x155   : > { %v3325_v0 = vpop.eup %3324  ;;  %3342 = vrcp.f32 %v959_v61 }
 0x156   : > { %v3327_v1 = vpop.eup %3326  ;;  %1022 = vrot.lane.b32.xlu1 %v3323_v62, %s3485_s26  ;;  %3344 = vrcp.f32 %v956_v63  ;;  %v958_v5 = vadd.f32 1.0, %v3325_v0 }
 0x157   : > { %v961_v2 = vadd.f32 1.0, %v3327_v1  ;;  %1016 = vrot.lane.b32.xlu0 %v3321_v59, %s3485_s26  ;;  %v3329_v4 = vpop.eup %3328 }
 0x158   : > { %v3331_v7 = vpop.eup %3330 }
 0x159   : > { %v3333_v8 = vpop.eup %3332  ;;  %3346 = vrcp.f32 %v961_v2  ;;  %v960_v11 = vadd.f32 1.0, %v3331_v7 }
 0x15a   : > { %1026 = vrot.lane.b32.xlu1 %v3329_v4, %s3485_s26  ;;  %3348 = vrcp.f32 %v958_v5 }
 0x15b   : > { %v3335_v9 = vpop.eup %3334  ;;  %1020 = vrot.lane.b32.xlu0 %v3333_v8, %s3485_s26 }
 0x15c   : > { %v3337_v10 = vpop.eup %3336 }
 0x15d   : > { %v3339_v12 = vpop.eup %3338  ;;  %v963_v14 = vadd.f32 1.0, %v3337_v10 }
 0x15e   : > { %v3341_v15 = vpop.eup %3340  ;;  %1030 = vrot.lane.b32.xlu1 %v3335_v9, %s3485_s26  ;;  %v962_v16 = vadd.f32 1.0, %v3339_v12 }
 0x15f   : > { %3350 = vrcp.f32 %v963_v14  ;;  %1024 = vrot.lane.b32.xlu0 %v3341_v15, %s3485_s26  ;;  %v3343_v17 = vpop.eup %3342 }
 0x160   : > { %3352 = vrcp.f32 %v960_v11  ;;  %v3345_v19 = vpop.eup %3344 }
 0x161   : > { %3354 = vrcp.f32 %v962_v16 }
 0x162   : > { %1034 = vrot.lane.b32.xlu1 %v3343_v17, %s3485_s26 }
 0x163   : > { %1028 = vrot.lane.b32.xlu0 %v3345_v19, %s3485_s26  ;;  %v3347_v20 = vpop.eup %3346 }
 0x164   : > { %v3349_v21 = vpop.eup %3348 }
 0x166   : > { %1038 = vrot.lane.b32.xlu1 %v3347_v20, %s3485_s26 }
 0x167   : > { %1032 = vrot.lane.b32.xlu0 %v3349_v21, %s3485_s26 }
 0x169   : > { %v3351_v22 = vpop.eup %3350 }
 0x16a   : > { %v3353_v23 = vpop.eup %3352  ;;  %1042 = vrot.lane.b32.xlu1 %v3351_v22, %s3485_s26 }
 0x16b   : > { %1036 = vrot.lane.b32.xlu0 %v3353_v23, %s3485_s26  ;;  %v3355_v24 = vpop.eup %3354 }
 0x16e   : > { %1122 = vrot.lane.b32.xlu1 %v3799_v41, %s3484_s14 }
 0x16f   : > { %1040 = vrot.lane.b32.xlu0 %v3355_v24, %s3485_s26 }
 0x173   : > { %1120 = vrot.lane.b32.xlu0 %v3802_v45, %s3484_s14 }
 0x1a4   : > { %v1095_v26 = vpop.permute.xlu1 %1094 }
 0x1a8   : > { %v1093_v27 = vpop.permute.xlu1 %1092 }
 0x1a9   : > { %v1097_v28 = vpop.permute.xlu0 %1096 }
 0x1ac   : > { %v1099_v29 = vpop.permute.xlu1 %1098 }
 0x1ad   : > { %v1101_v31 = vpop.permute.xlu0 %1100 }
 0x1b0   : > { %v1103_v32 = vpop.permute.xlu1 %1102 }
 0x1b1   : > { %v1105_v33 = vpop.permute.xlu0 %1104 }
 0x1b4   : > { %v1107_v34 = vpop.permute.xlu1 %1106 }
 0x1b5   : > { %v1109_v35 = vpop.permute.xlu0 %1108 }
 0x1b8   : > { %v1111_v36 = vpop.permute.xlu1 %1110 }
 0x1b9   : > { %v1113_v37 = vpop.permute.xlu0 %1112 }
 0x1bc   : > { %v1115_v39 = vpop.permute.xlu1 %1114 }
 0x1bd   : > { %v3828_v43 = vpop.permute.xlu0 %1116 }
 0x1c0   : > { %v3830_v44 = vpop.permute.xlu1 %1118 }
 0x1c1   : > { %v1015_v47 = vpop.permute.xlu0 %1014 }
 0x1c2   : > { %v1061_v49 = vmul.f32 %v1015_v47, %v3705_v40 }
 0x1c4   : > { %v1019_v50 = vpop.permute.xlu1 %1018  ;;  %v1141_v55 = vadd.f32 %v1095_v26, %v1061_v49 }
 0x1c5   : > { %v1013_v51 = vpop.permute.xlu0 %1012  ;;  %v1063_v56 = vmul.f32 %v1019_v50, %v3715_v46 }
 0x1c6   : > { %v1060_v53 = vmul.f32 %v1013_v51, %v3708_v42  ;;  %v1157_v63 = vmax.f32 %v1141_v55, 0.0  ;;  %v2570_v55 = vld [vmem:[%s4328_s7 + $0x30] sm:$0xff] }
 0x1c7   : > { %v1143_v0 = vadd.f32 %v1099_v29, %v1063_v56 }
 0x1c8   : > { %v1023_v38 = vpop.permute.xlu1 %1022  ;;  %v1140_v57 = vadd.f32 %v1093_v27, %v1060_v53  ;;  %v1376_v53 = vld [vmem:[%s4324_s3] sm:$0xff] }
 0x1c9   : > { %v1017_v59 = vpop.permute.xlu0 %1016  ;;  %v1065_v1 = vmul.f32 %v1023_v38, %v3727_v52  ;;  %v1159_v5 = vmax.f32 %v1143_v0, 0.0  ;;  %2975 = vmatprep.mubr.f32.mxu0 %v1376_v53  ;;  %v2571_v38 = vld [vmem:[%s4328_s7 + $0x38] sm:$0xff]  ;;  %v1570_v53 = vld [vmem:[%s4328_s7 + $0x8] sm:$0xff] }
 0x1ca   : > { %v1062_v61 = vmul.f32 %v1017_v59, %v3718_v48  ;;  %v1156_v62 = vmax.f32 %v1140_v57, 0.0  ;;  %v3163_v57 = vpack.c.bf16 %v2571_v38, %v2570_v55  ;;  %v2551_v59 = vld [vmem:[%s4327_s6] ss:$0 sm:$0xff] }
 0x1cb   : > { %v1145_v7 = vadd.f32 %v1103_v32, %v1065_v1  ;;  %v1392_v55 = vld [vmem:[%s4325_s4] sm:$0xff] }
 0x1cc   : > { %v1142_v2 = vadd.f32 %v1097_v28, %v1062_v61  ;;  %v1027_v4 = vpop.permute.xlu1 %1026  ;;  %2919 = vmatprep.mubr.msk.f32.mxu1 %vm360_vm0, %v1156_v62 }
 0x1cd   : > { %2920 = vmatmul.mubr.msk.f32.vlgmr.msra.gmra.mrb[0].mxu1 %vm360_vm0, %v1157_v63  ;;  %v1021_v40 = vpop.permute.xlu0 %1020  ;;  %v1067_v8 = vmul.f32 %v1027_v4, %v3739_v58  ;;  %v1161_v12 = vmax.f32 %v1145_v7, 0.0 }
 0x1ce   : > { %v1158_v42 = vmax.f32 %v1142_v2, 0.0  ;;  %v1064_v46 = vmul.f32 %v1021_v40, %v3730_v54 }
 0x1cf   : > { %v1147_v14 = vadd.f32 %v1107_v34, %v1067_v8 }
 0x1d0   : > { %v1144_v48 = vadd.f32 %v1101_v31, %v1064_v46  ;;  %v1031_v9 = vpop.permute.xlu1 %1030  ;;  %2922 = vmatprep.mubr.msk.f32.mxu1 %vm360_vm0, %v1158_v42 }
 0x1d1   : > { %2923 = vmatmul.mubr.msk.f32.gmra.mrb[2].mxu1 %vm360_vm0, %v1159_v5  ;;  %v1025_v52 = vpop.permute.xlu0 %1024  ;;  %v1069_v15 = vmul.f32 %v1031_v9, %v3751_v3  ;;  %v1163_v20 = vmax.f32 %v1147_v14, 0.0 }
 0x1d2   : > { %v1160_v10 = vmax.f32 %v1144_v48, 0.0  ;;  %v1066_v11 = vmul.f32 %v1025_v52, %v3742_v60 }
 0x1d3   : > { %v1149_v21 = vadd.f32 %v1111_v36, %v1069_v15 }
 0x1d4   : > { %v1146_v16 = vadd.f32 %v1105_v33, %v1066_v11  ;;  %v1035_v54 = vpop.permute.xlu1 %1034  ;;  %2925 = vmatprep.mubr.msk.f32.mxu1 %vm360_vm0, %v1160_v10 }
 0x1d5   : > { %2926 = vmatmul.mubr.msk.f32.gmra.mrb[4].mxu1 %vm360_vm0, %v1161_v12  ;;  %v1029_v58 = vpop.permute.xlu0 %1028  ;;  %v1071_v22 = vmul.f32 %v1035_v54, %v3763_v13  ;;  %v1165_v27 = vmax.f32 %v1149_v21, 0.0 }
 0x1d6   : > { %v1162_v17 = vmax.f32 %v1146_v16, 0.0  ;;  %v1068_v19 = vmul.f32 %v1029_v58, %v3754_v6 }
 0x1d7   : > { %v1151_v28 = vadd.f32 %v1115_v39, %v1071_v22 }
 0x1d8   : > { %v1148_v23 = vadd.f32 %v1109_v35, %v1068_v19  ;;  %v1039_v60 = vpop.permute.xlu1 %1038  ;;  %2928 = vmatprep.mubr.msk.f32.mxu1 %vm360_vm0, %v1162_v17 }
 0x1d9   : > { %2929 = vmatmul.mubr.msk.f32.gmra.mrb[6].mxu1 %vm360_vm0, %v1163_v20  ;;  %v1033_v3 = vpop.permute.xlu0 %1032  ;;  %v1073_v29 = vmul.f32 %v1039_v60, %v3781_v25  ;;  %v1167_v34 = vmax.f32 %v1151_v28, 0.0 }
 0x1da   : > { %v1164_v24 = vmax.f32 %v1148_v23, 0.0  ;;  %v1070_v26 = vmul.f32 %v1033_v3, %v3772_v18 }
 0x1db   : > { %v1153_v35 = vadd.f32 %v3830_v44, %v1073_v29 }
 0x1dc   : > { %v1150_v31 = vadd.f32 %v1113_v37, %v1070_v26  ;;  %2931 = vmatprep.mubr.msk.f32.mxu1 %vm360_vm0, %v1164_v24  ;;  %v1043_v6 = vpop.permute.xlu1 %1042 }
 0x1dd   : > { %2932 = vmatmul.mubr.msk.f32.gmra.mrb[8].mxu1 %vm360_vm0, %v1165_v27  ;;  %v1037_v13 = vpop.permute.xlu0 %1036  ;;  %v1169_v39 = vmax.f32 %v1153_v35, 0.0  ;;  %v1075_v47 = vmul.f32 %v1043_v6, %v3799_v41  ;;  %v2568_v41 = vld [vmem:[%s4328_s7 + $0x20] sm:$0xff] }
 0x1de   : > { %v1166_v32 = vmax.f32 %v1150_v31, 0.0  ;;  %v1072_v33 = vmul.f32 %v1037_v13, %v3790_v30  ;;  %v1380_v35 = vld [vmem:[%s4324_s3 + $0x20] sm:$0xff] }
 0x1e0   : > { %v1152_v36 = vadd.f32 %v3828_v43, %v1072_v33  ;;  %2934 = vmatprep.mubr.msk.f32.mxu1 %vm360_vm0, %v1166_v32  ;;  %v1123_v37 = vpop.permute.xlu1 %1122  ;;  %v1377_v32 = vld [vmem:[%s4324_s3 + $0x8] sm:$0xff]  ;;  %v1378_v33 = vld [vmem:[%s4324_s3 + $0x10] sm:$0xff] }
 0x1e1   : > { %2935 = vmatmul.mubr.msk.f32.gmra.mrb[10].mxu1 %vm360_vm0, %v1167_v34  ;;  %v1041_v18 = vpop.permute.xlu0 %1040  ;;  %v1155_v30 = vadd.f32 %v1123_v37, %v1075_v47  ;;  %v1379_v34 = vld [vmem:[%s4324_s3 + $0x18] sm:$0xff]  ;;  %v1384_v37 = vld [vmem:[%s4324_s3 + $0x40] sm:$0xff]  ;;  %v1386_v47 = vld [vmem:[%s4324_s3 + $0x50] sm:$0xff] }
 0x1e2   : > { %v1168_v25 = vmax.f32 %v1152_v36, 0.0  ;;  %v1074_v49 = vmul.f32 %v1041_v18, %v3802_v45  ;;  %v2569_v45 = vld [vmem:[%s4328_s7 + $0x28] sm:$0xff]  ;;  %v1382_v18 = vld [vmem:[%s4324_s3 + $0x30] sm:$0xff] }
 0x1e3   : > { %v1171_v51 = vmax.f32 %v1155_v30, 0.0  ;;  %v3159_v56 = vpack.c.bf16 %v2569_v45, %v2568_v41  ;;  %v1381_v36 = vld [vmem:[%s4324_s3 + $0x28] sm:$0xff]  ;;  %v1388_v30 = vld [vmem:[%s4324_s3 + $0x60] sm:$0xff] }
 0x1e4   : > { %2937 = vmatprep.mubr.msk.f32.mxu1 %vm360_vm0, %v1168_v25  ;;  %v1383_v25 = vld [vmem:[%s4324_s3 + $0x38] sm:$0xff]  ;;  %v1393_v45 = vld [vmem:[%s4325_s4 + $0x8] sm:$0xff] }
 0x1e5   : > { %2938 = vmatmul.mubr.msk.f32.gmra.mrb[12].mxu1 %vm360_vm0, %v1169_v39  ;;  %v1121_v44 = vpop.permute.xlu0 %1120  ;;  %3160 = vmatprep.subr.bf16.mxu1 %v3159_v56  ;;  %v1385_v39 = vld [vmem:[%s4324_s3 + $0x48] sm:$0xff] }
 0x1e6   : > { %v1154_v50 = vadd.f32 %v1121_v44, %v1074_v49  ;;  %3162 = vmatpush3.bf16.msra.mxu1 %v3159_v56  ;;  %v1387_v49 = vld [vmem:[%s4324_s3 + $0x58] sm:$0xff]  ;;  %v1389_v44 = vld [vmem:[%s4324_s3 + $0x68] sm:$0xff] }
 0x1e7   : > { %3164 = vmatprep.subr.bf16.mxu1 %v3163_v57 }
 0x1e8   : > { %v1170_v43 = vmax.f32 %v1154_v50, 0.0  ;;  %v1390_v50 = vld [vmem:[%s4324_s3 + $0x70] sm:$0xff] }
 0x1ea   : > { %2940 = vmatprep.mubr.msk.f32.mxu1 %vm360_vm0, %v1170_v43  ;;  %3166 = vmatpush3.bf16.msra.mxu1 %v3163_v57  ;;  %v1391_v43 = vld [vmem:[%s4324_s3 + $0x78] sm:$0xff] }
 0x1eb   : > { %2941 = vmatmul.mubr.msk.f32.gmra.mrb[14].mxu1 %vm360_vm0, %v1171_v51  ;;  %v1569_v51 = vld [vmem:[%s4328_s7] sm:$0xff] }
 0x1ec   : > { %v3167_v41 = vpack.c.bf16 %v1570_v53, %v1569_v51  ;;  %v1406_v51 = vld [vmem:[%s4325_s4 + $0x70] sm:$0xff] }
 0x1ee   : > { %3168 = vmatprep.subr.bf16.mxu1 %v3167_v41 }
 0x2a0   : > { %v2921_v61 = vpop.f32.mrb[0].mxu1 }
 0x2a1   : > { %v1303_v62 = vadd.f32 %v2921_v61, %v2551_v59  ;;  %v1297_v63 = vpop.f32.mrb[1].mxu1  ;;  %v1395_v61 = vld [vmem:[%s4325_s4 + $0x18] sm:$0xff] }
 0x2a2   : > { %v1298_v0 = vadd.f32 %v2551_v59, %v1297_v63  ;;  %v1572_v63 = vld [vmem:[%s4328_s7 + $0x18] sm:$0xff] }
 0x2a4   : > { %v3127_v1 = vpack.c.bf16 %v1303_v62, %v1298_v0  ;;  %v2924_v2 = vpop.f32.mrb[2].mxu1  ;;  %v1571_v62 = vld [vmem:[%s4328_s7 + $0x10] sm:$0xff] }
 0x2a5   : > { %v1313_v4 = vadd.f32 %v2924_v2, %v2551_v59  ;;  %v1307_v40 = vpop.f32.mrb[3].mxu1  ;;  %v1394_v0 = vld [vmem:[%s4325_s4 + $0x10] sm:$0xff] }
 0x2a6   : > { %v1308_v42 = vadd.f32 %v2551_v59, %v1307_v40  ;;  %3128 = vmatprep.subr.bf16.mxu0 %v3127_v1 }
 0x2a7   : > { %3130 = vmatpush3.bf16.msra.mxu0 %v3127_v1 }
 0x2a8   : > { %v3131_v46 = vpack.c.bf16 %v1313_v4, %v1308_v42  ;;  %v2927_v5 = vpop.f32.mrb[4].mxu1 }
 0x2a9   : > { %v1323_v7 = vadd.f32 %v2927_v5, %v2551_v59  ;;  %v1317_v8 = vpop.f32.mrb[5].mxu1 }
 0x2aa   : > { %v1318_v48 = vadd.f32 %v2551_v59, %v1317_v8  ;;  %3132 = vmatprep.subr.bf16.mxu0 %v3131_v46  ;;  %v2602_v8 = vld [vmem:[%s4328_s7 + $0x40] sm:$0xff] }
 0x2ab   : > { %3134 = vmatpush3.bf16.msra.mxu0 %v3131_v46  ;;  %v3171_v46 = vpack.c.bf16 %v1572_v63, %v1571_v62  ;;  %v2604_v63 = vld [vmem:[%s4328_s7 + $0x50] sm:$0xff] }
 0x2ac   : > { %v3135_v9 = vpack.c.bf16 %v1323_v7, %v1318_v48  ;;  %v2930_v52 = vpop.f32.mrb[6].mxu1  ;;  %v1397_v7 = vld [vmem:[%s4325_s4 + $0x28] sm:$0xff] }
 0x2ad   : > { %v1333_v10 = vadd.f32 %v2930_v52, %v2551_v59  ;;  %v1327_v11 = vpop.f32.mrb[7].mxu1  ;;  %v2603_v48 = vld [vmem:[%s4328_s7 + $0x48] sm:$0xff] }
 0x2ae   : > { %v1328_v12 = vadd.f32 %v2551_v59, %v1327_v11  ;;  %3136 = vmatprep.subr.bf16.mxu0 %v3135_v9 }
 0x2af   : > { %3138 = vmatpush3.bf16.msra.mxu0 %v3135_v9  ;;  %v1396_v9 = vld [vmem:[%s4325_s4 + $0x20] sm:$0xff] }
 0x2b0   : > { %v3139_v14 = vpack.c.bf16 %v1333_v10, %v1328_v12  ;;  %v2933_v15 = vpop.f32.mrb[8].mxu1 }
 0x2b1   : > { %v1343_v16 = vadd.f32 %v2933_v15, %v2551_v59  ;;  %v1337_v54 = vpop.f32.mrb[9].mxu1  ;;  %v3981_v15 = vpack.c.bf16 %v2603_v48, %v2602_v8 }
 0x2b2   : > { %v1338_v58 = vadd.f32 %v2551_v59, %v1337_v54  ;;  %3140 = vmatprep.subr.bf16.mxu0 %v3139_v14  ;;  %v1399_v54 = vld [vmem:[%s4325_s4 + $0x38] sm:$0xff] }
 0x2b3   : > { %3142 = vmatpush3.bf16.msra.mxu0 %v3139_v14 }
 0x2b4   : > { %v3143_v17 = vpack.c.bf16 %v1343_v16, %v1338_v58  ;;  %v2936_v19 = vpop.f32.mrb[10].mxu1  ;;  %v1398_v58 = vld [vmem:[%s4325_s4 + $0x30] sm:$0xff] }
 0x2b5   : > { %v1353_v20 = vadd.f32 %v2936_v19, %v2551_v59  ;;  %v1347_v21 = vpop.f32.mrb[11].mxu1 }
 0x2b6   : > { %v1348_v22 = vadd.f32 %v2551_v59, %v1347_v21  ;;  %3144 = vmatprep.subr.bf16.mxu0 %v3143_v17 }
 0x2b7   : > { %3146 = vmatpush3.bf16.msra.mxu0 %v3143_v17 }
 0x2b8   : > { %v3147_v23 = vpack.c.bf16 %v1353_v20, %v1348_v22  ;;  %v2939_v60 = vpop.f32.mrb[12].mxu1 }
 0x2b9   : > { %v1363_v3 = vadd.f32 %v2939_v60, %v2551_v59  ;;  %v1357_v24 = vpop.f32.mrb[13].mxu1  ;;  %v1401_v60 = vld [vmem:[%s4325_s4 + $0x48] sm:$0xff] }
 0x2ba   : > { %v1358_v26 = vadd.f32 %v2551_v59, %v1357_v24  ;;  %3148 = vmatprep.subr.bf16.mxu0 %v3147_v23 }
 0x2bb   : > { %3150 = vmatpush3.bf16.msra.mxu0 %v3147_v23 }
 0x2bc   : > { %v3151_v27 = vpack.c.bf16 %v1363_v3, %v1358_v26  ;;  %v1400_v3 = vld [vmem:[%s4325_s4 + $0x40] sm:$0xff] }
 0x2be   : > { %v2942_v28 = vpop.f32.mrb[14].mxu1  ;;  %3152 = vmatprep.subr.bf16.mxu0 %v3151_v27 }
 0x2bf   : > { %v1373_v29 = vadd.f32 %v2942_v28, %v2551_v59  ;;  %v1367_v31 = vpop.f32.mrb[15].mxu1  ;;  %3154 = vmatpush3.bf16.msra.mxu0 %v3151_v27 }
 0x2c0   : > { %v1368_v6 = vadd.f32 %v2551_v59, %v1367_v31 }
 0x2c2   : > { %v3155_v13 = vpack.c.bf16 %v1373_v29, %v1368_v6  ;;  %v1403_v6 = vld [vmem:[%s4325_s4 + $0x58] sm:$0xff] }
 0x2c4   : > { %3156 = vmatprep.subr.bf16.mxu0 %v3155_v13 }
 0x2c5   : > { %3158 = vmatpush3.bf16.msra.mxu0 %v3155_v13  ;;  %v1402_v13 = vld [vmem:[%s4325_s4 + $0x50] sm:$0xff] }
 0x2c8   : > { %2976 = vmatmul.mubr.f32.vlgmr.msra.gmra.mrb[16].mxu0 %v1377_v32 }
 0x2c9   : > { %2978 = vmatprep.mubr.f32.mxu0 %v1378_v33 }
 0x2cc   : > { %2979 = vmatmul.mubr.f32.gmra.mrb[18].mxu0 %v1379_v34 }
 0x2cd   : > { %2981 = vmatprep.mubr.f32.mxu0 %v1380_v35 }
 0x2d0   : > { %2982 = vmatmul.mubr.f32.gmra.mrb[20].mxu0 %v1381_v36 }
 0x2d1   : > { %2984 = vmatprep.mubr.f32.mxu0 %v1382_v18 }
 0x2d4   : > { %2985 = vmatmul.mubr.f32.gmra.mrb[22].mxu0 %v1383_v25  ;;  %v1405_v25 = vld [vmem:[%s4325_s4 + $0x68] sm:$0xff] }
 0x2d5   : > { %2987 = vmatprep.mubr.f32.mxu0 %v1384_v37  ;;  %v1404_v37 = vld [vmem:[%s4325_s4 + $0x60] sm:$0xff] }
 0x2d8   : > { %2988 = vmatmul.mubr.f32.gmra.mrb[24].mxu0 %v1385_v39 }
 0x2d9   : > { %2990 = vmatprep.mubr.f32.mxu0 %v1386_v47 }
 0x2dc   : > { %2991 = vmatmul.mubr.f32.gmra.mrb[26].mxu0 %v1387_v49 }
 0x2dd   : > { %2993 = vmatprep.mubr.f32.mxu0 %v1388_v30 }
 0x2e0   : > { %2994 = vmatmul.mubr.f32.gmra.mrb[28].mxu0 %v1389_v44 }
 0x2e1   : > { %2996 = vmatprep.mubr.f32.mxu0 %v1390_v50 }
 0x2e4   : > { %2997 = vmatmul.mubr.f32.gmra.mrb[30].mxu0 %v1391_v43  ;;  %v1407_v43 = vld [vmem:[%s4325_s4 + $0x78] sm:$0xff] }
 0x39b   : > { %v2977_v56 = vpop.f32.mrb[16].mxu0 }
 0x39c   : > { %v3941_v38 = vadd.f32 %v2977_v56, %v1393_v45  ;;  %v1474_v57 = vpop.f32.mrb[17].mxu0 }
 0x39d   : > { %v3943_v59 = vadd.f32 %v1474_v57, %v1392_v55 }
 0x39e   : > { %v1554_v4 = vmax.f32 %v3941_v38, 0.0  ;;  %v4096_v38 = vld [vmem:[%s4329_s8] ss:$0 sm:$0xff] }
 0x39f   : > { %v1553_v1 = vmax.f32 %v3943_v59, 0.0  ;;  %v2980_v2 = vpop.f32.mrb[18].mxu0 }
 0x3a0   : > { %v1490_v40 = vadd.f32 %v2980_v2, %v1395_v61  ;;  %v1484_v42 = vpop.f32.mrb[19].mxu0  ;;  %v3486_v2 = vmov 0.0  }
 0x3a1   : > { %v1485_v5 = vadd.f32 %v1484_v42, %v1394_v0  ;;  %3007 = vmatprep.mubr.msk.f32.mxu1 %vm360_vm0, %v1553_v1  ;;  %v2605_v0 = vld [vmem:[%s4328_s7 + $0x58] sm:$0xff] }
 0x3a2   : > { %3008 = vmatmul.mubr.msk.f32.vlgmr.msra.gmra.mrb[16].mxu1 %vm360_vm0, %v1554_v4  ;;  %v3979_v11 = vmax.f32 %v1490_v40, 0.0  ;;  %v3179_v40 = vpack.c.bf16 %v2605_v0, %v2604_v63 }
 0x3a3   : > { %v3977_v52 = vmax.f32 %v1485_v5, 0.0  ;;  %v2983_v10 = vpop.f32.mrb[20].mxu0  ;;  %3170 = vmatpush3.bf16.msra.mxu1 %v3167_v41 }
 0x3a4   : > { %v1500_v12 = vadd.f32 %v2983_v10, %v1397_v7  ;;  %v1494_v14 = vpop.f32.mrb[21].mxu0  ;;  %3172 = vmatprep.subr.bf16.mxu1 %v3171_v46 }
 0x3a5   : > { %v1495_v16 = vadd.f32 %v1494_v14, %v1396_v9  ;;  %3010 = vmatprep.mubr.msk.f32.mxu1 %vm360_vm0, %v3977_v52 }
 0x3a6   : > { %3011 = vmatmul.mubr.msk.f32.gmra.mrb[18].mxu1 %vm360_vm0, %v3979_v11  ;;  %v3995_v20 = vmax.f32 %v1500_v12, 0.0 }
 0x3a7   : > { %v3993_v17 = vmax.f32 %v1495_v16, 0.0  ;;  %v2986_v19 = vpop.f32.mrb[22].mxu0  ;;  %3174 = vmatpush3.bf16.msra.mxu1 %v3171_v46 }
 0x3a8   : > { %v1510_v21 = vadd.f32 %v2986_v19, %v1399_v54  ;;  %v1504_v22 = vpop.f32.mrb[23].mxu0  ;;  %3176 = vmatprep.subr.bf16.mxu1 %v3981_v15 }
 0x3a9   : > { %v1505_v23 = vadd.f32 %v1504_v22, %v1398_v58  ;;  %3013 = vmatprep.mubr.msk.f32.mxu1 %vm360_vm0, %v3993_v17 }
 0x3aa   : > { %3014 = vmatmul.mubr.msk.f32.gmra.mrb[20].mxu1 %vm360_vm0, %v3995_v20  ;;  %v4010_v27 = vmax.f32 %v1510_v21, 0.0 }
 0x3ab   : > { %v4008_v24 = vmax.f32 %v1505_v23, 0.0  ;;  %v2989_v26 = vpop.f32.mrb[24].mxu0 }
 0x3ac   : > { %v1520_v28 = vadd.f32 %v2989_v26, %v1401_v60  ;;  %v1514_v29 = vpop.f32.mrb[25].mxu0 }
 0x3ad   : > { %v1515_v31 = vadd.f32 %v1514_v29, %v1400_v3  ;;  %3016 = vmatprep.mubr.msk.f32.mxu1 %vm360_vm0, %v4008_v24 }
 0x3ae   : > { %3017 = vmatmul.mubr.msk.f32.gmra.mrb[22].mxu1 %vm360_vm0, %v4010_v27  ;;  %v1562_v34 = vmax.f32 %v1520_v28, 0.0 }
 0x3af   : > { %v1561_v32 = vmax.f32 %v1515_v31, 0.0  ;;  %v2992_v33 = vpop.f32.mrb[26].mxu0 }
 0x3b0   : > { %v1530_v35 = vadd.f32 %v2992_v33, %v1403_v6  ;;  %v1524_v36 = vpop.f32.mrb[27].mxu0 }
 0x3b1   : > { %v1525_v18 = vadd.f32 %v1524_v36, %v1402_v13  ;;  %3019 = vmatprep.mubr.msk.f32.mxu1 %vm360_vm0, %v1561_v32 }
 0x3b2   : > { %3020 = vmatmul.mubr.msk.f32.gmra.mrb[24].mxu1 %vm360_vm0, %v1562_v34  ;;  %v1564_v49 = vmax.f32 %v1530_v35, 0.0 }
 0x3b3   : > { %v1563_v39 = vmax.f32 %v1525_v18, 0.0  ;;  %v2995_v47 = vpop.f32.mrb[28].mxu0 }
 0x3b4   : > { %v1540_v30 = vadd.f32 %v2995_v47, %v1405_v25  ;;  %v1534_v44 = vpop.f32.mrb[29].mxu0 }
 0x3b5   : > { %v1535_v50 = vadd.f32 %v1534_v44, %v1404_v37  ;;  %3022 = vmatprep.mubr.msk.f32.mxu1 %vm360_vm0, %v1563_v39 }
 0x3b6   : > { %3023 = vmatmul.mubr.msk.f32.gmra.mrb[26].mxu1 %vm360_vm0, %v1564_v49  ;;  %v1566_v45 = vmax.f32 %v1540_v30, 0.0 }
 0x3b7   : > { %v1565_v53 = vmax.f32 %v1535_v50, 0.0  ;;  %v2998_v41 = vpop.f32.mrb[30].mxu0 }
 0x3b8   : > { %v1550_v55 = vadd.f32 %v2998_v41, %v1407_v43  ;;  %v1544_v56 = vpop.f32.mrb[31].mxu0 }
 0x3b9   : > { %v1545_v57 = vadd.f32 %v1544_v56, %v1406_v51  ;;  %3025 = vmatprep.mubr.msk.f32.mxu1 %vm360_vm0, %v1565_v53 }
 0x3ba   : > { %3026 = vmatmul.mubr.msk.f32.gmra.mrb[28].mxu1 %vm360_vm0, %v1566_v45  ;;  %v1568_v62 = vmax.f32 %v1550_v55, 0.0 }
 0x3bb   : > { %v1567_v61 = vmax.f32 %v1545_v57, 0.0 }
 0x3bd   : > { %3028 = vmatprep.mubr.msk.f32.mxu1 %vm360_vm0, %v1567_v61 }
 0x3be   : > { %3029 = vmatmul.mubr.msk.f32.gmra.mrb[30].mxu1 %vm360_vm0, %v1568_v62 }
 0x3bf   : > { %3039 = vmatprep.mubr.f32.mxu1 %v3486_v2 }
 0x3c2   : > { %3040 = vmatmul.mubr.f32.vlgmr.msra.gmra.mrb[16].mxu1 %v3486_v2 }
 0x3c3   : > { %3042 = vmatprep.mubr.msk.f32.mxu1 %vm360_vm0, %v1553_v1  ;;  %3178 = vmatpush3.bf16.msra.mxu1 %v3981_v15 }
 0x3c4   : > { %3180 = vmatprep.subr.bf16.mxu1 %v3179_v40 }
 0x3c6   : > { %3043 = vmatmul.mubr.msk.f32.gmra.mrb[18].mxu1 %vm360_vm0, %v1554_v4 }
 0x3c7   : > { %3045 = vmatprep.mubr.msk.f32.mxu1 %vm360_vm0, %v3977_v52  ;;  %3182 = vmatpush3.bf16.msra.mxu1 %v3179_v40 }
 0x3ca   : > { %3046 = vmatmul.mubr.msk.f32.gmra.mrb[20].mxu1 %vm360_vm0, %v3979_v11 }
 0x3cb   : > { %3048 = vmatprep.mubr.msk.f32.mxu1 %vm360_vm0, %v3993_v17 }
 0x3ce   : > { %3049 = vmatmul.mubr.msk.f32.gmra.mrb[22].mxu1 %vm360_vm0, %v3995_v20 }
 0x3cf   : > { %3051 = vmatprep.mubr.msk.f32.mxu1 %vm360_vm0, %v4008_v24 }
 0x3d2   : > { %3052 = vmatmul.mubr.msk.f32.gmra.mrb[24].mxu1 %vm360_vm0, %v4010_v27 }
 0x3d3   : > { %3054 = vmatprep.mubr.msk.f32.mxu1 %vm360_vm0, %v1561_v32 }
 0x3d6   : > { %3055 = vmatmul.mubr.msk.f32.gmra.mrb[26].mxu1 %vm360_vm0, %v1562_v34 }
 0x3d7   : > { %3057 = vmatprep.mubr.msk.f32.mxu1 %vm360_vm0, %v1563_v39 }
 0x3da   : > { %3058 = vmatmul.mubr.msk.f32.gmra.mrb[28].mxu1 %vm360_vm0, %v1564_v49 }
 0x3db   : > { %3060 = vmatprep.mubr.msk.f32.mxu1 %vm360_vm0, %v1565_v53 }
 0x3de   : > { %3061 = vmatmul.mubr.msk.f32.gmra.mrb[30].mxu1 %vm360_vm0, %v1566_v45 }
 0x3df   : > { %3071 = vmatprep.mubr.msk.f32.mxu1 %vm360_vm0, %v3977_v52 }
 0x3e2   : > { %3072 = vmatmul.mubr.msk.f32.vlgmr.msra.gmra.mrb[16].mxu1 %vm360_vm0, %v3979_v11 }
 0x3e3   : > { %3074 = vmatprep.mubr.msk.f32.mxu1 %vm360_vm0, %v3993_v17 }
 0x3e6   : > { %3075 = vmatmul.mubr.msk.f32.gmra.mrb[18].mxu1 %vm360_vm0, %v3995_v20 }
 0x3e7   : > { %3077 = vmatprep.mubr.msk.f32.mxu1 %vm360_vm0, %v4008_v24 }
 0x3ea   : > { %3078 = vmatmul.mubr.msk.f32.gmra.mrb[20].mxu1 %vm360_vm0, %v4010_v27 }
 0x3eb   : > { %3080 = vmatprep.mubr.msk.f32.mxu1 %vm360_vm0, %v1561_v32 }
 0x3ee   : > { %3081 = vmatmul.mubr.msk.f32.gmra.mrb[22].mxu1 %vm360_vm0, %v1562_v34 }
 0x3ef   : > { %3083 = vmatprep.mubr.msk.f32.mxu1 %vm360_vm0, %v1563_v39 }
 0x3f2   : > { %3084 = vmatmul.mubr.msk.f32.gmra.mrb[24].mxu1 %vm360_vm0, %v1564_v49 }
 0x3f3   : > { %3086 = vmatprep.mubr.msk.f32.mxu1 %vm360_vm0, %v1565_v53 }
 0x3f6   : > { %3087 = vmatmul.mubr.msk.f32.gmra.mrb[26].mxu1 %vm360_vm0, %v1566_v45 }
 0x3f7   : > { %3089 = vmatprep.mubr.msk.f32.mxu1 %vm360_vm0, %v1567_v61 }
 0x3fa   : > { %3090 = vmatmul.mubr.msk.f32.gmra.mrb[28].mxu1 %vm360_vm0, %v1568_v62 }
 0x3fb   : > { %3092 = vmatprep.mubr.f32.mxu1 %v3486_v2 }
 0x3fe   : > { %3093 = vmatmul.mubr.f32.gmra.mrb[30].mxu1 %v3486_v2 }
 0x4b5   : > { %v3073_v59 = vpop.f32.mrb[16].mxu1 }
 0x4b6   : > { %v4099_v1 = vadd.f32 %v3073_v59, %v4096_v38  ;;  %v1990_v4 = vpop.f32.mrb[17].mxu1 }
 0x4b7   : > { %v4102_v42 = vadd.f32 %v4096_v38, %v1990_v4 }
 0x4b8   : > { %v2622_v46 = vmul.f32 -1.442695, %v4099_v1  ;;  %2302 = vrot.lane.b32.xlu1 %v4099_v1, %s3484_s14 }
 0x4b9   : > { %v2621_v5 = vmul.f32 -1.442695, %v4102_v42  ;;  %2300 = vrot.lane.b32.xlu0 %v4102_v42, %s3484_s14  ;;  %v3076_v7 = vpop.f32.mrb[18].mxu1 }
 0x4ba   : > { %3356 = vpow2.f32 %v2622_v46  ;;  %v4111_v8 = vadd.f32 %v3076_v7, %v4096_v38  ;;  %v2000_v48 = vpop.f32.mrb[19].mxu1 }
 0x4bb   : > { %3358 = vpow2.f32 %v2621_v5  ;;  %v4114_v9 = vadd.f32 %v4096_v38, %v2000_v48 }
 0x4bc   : > { %v2624_v52 = vmul.f32 -1.442695, %v4111_v8  ;;  %2306 = vrot.lane.b32.xlu1 %v4111_v8, %s3484_s14 }
 0x4bd   : > { %v2623_v10 = vmul.f32 -1.442695, %v4114_v9  ;;  %2304 = vrot.lane.b32.xlu0 %v4114_v9, %s3484_s14  ;;  %v3079_v11 = vpop.f32.mrb[20].mxu1 }
 0x4be   : > { %3360 = vpow2.f32 %v2624_v52  ;;  %v4123_v12 = vadd.f32 %v3079_v11, %v4096_v38  ;;  %v2010_v14 = vpop.f32.mrb[21].mxu1 }
 0x4bf   : > { %3362 = vpow2.f32 %v2623_v10  ;;  %v4126_v15 = vadd.f32 %v4096_v38, %v2010_v14 }
 0x4c0   : > { %v2626_v16 = vmul.f32 -1.442695, %v4123_v12  ;;  %2310 = vrot.lane.b32.xlu1 %v4123_v12, %s3484_s14 }
 0x4c1   : > { %v2625_v54 = vmul.f32 -1.442695, %v4126_v15  ;;  %2308 = vrot.lane.b32.xlu0 %v4126_v15, %s3484_s14  ;;  %v3082_v58 = vpop.f32.mrb[22].mxu1 }
 0x4c2   : > { %3364 = vpow2.f32 %v2626_v16  ;;  %v4135_v17 = vadd.f32 %v3082_v58, %v4096_v38  ;;  %v2020_v19 = vpop.f32.mrb[23].mxu1 }
 0x4c3   : > { %3366 = vpow2.f32 %v2625_v54  ;;  %v4138_v20 = vadd.f32 %v4096_v38, %v2020_v19 }
 0x4c4   : > { %v3357_v21 = vpop.eup %3356  ;;  %v2628_v22 = vmul.f32 -1.442695, %v4135_v17  ;;  %2314 = vrot.lane.b32.xlu1 %v4135_v17, %s3484_s14 }
 0x4c5   : > { %v3359_v23 = vpop.eup %3358  ;;  %v2157_v60 = vadd.f32 1.0, %v3357_v21  ;;  %v2627_v3 = vmul.f32 -1.442695, %v4138_v20  ;;  %2312 = vrot.lane.b32.xlu0 %v4138_v20, %s3484_s14  ;;  %v3085_v24 = vpop.f32.mrb[24].mxu1 }
 0x4c6   : > { %v2156_v26 = vadd.f32 1.0, %v3359_v23  ;;  %3368 = vpow2.f32 %v2628_v22  ;;  %v4147_v27 = vadd.f32 %v3085_v24, %v4096_v38  ;;  %v2030_v28 = vpop.f32.mrb[25].mxu1 }
 0x4c7   : > { %3370 = vrcp.f32 %v2157_v60  ;;  %v4150_v29 = vadd.f32 %v4096_v38, %v2030_v28 }
 0x4c8   : > { %v3361_v31 = vpop.eup %3360  ;;  %3372 = vrcp.f32 %v2156_v26  ;;  %v2630_v6 = vmul.f32 -1.442695, %v4147_v27  ;;  %2318 = vrot.lane.b32.xlu1 %v4147_v27, %s3484_s14 }
 0x4c9   : > { %v3363_v13 = vpop.eup %3362  ;;  %v2159_v32 = vadd.f32 1.0, %v3361_v31  ;;  %3374 = vpow2.f32 %v2627_v3  ;;  %v2629_v33 = vmul.f32 -1.442695, %v4150_v29  ;;  %2316 = vrot.lane.b32.xlu0 %v4150_v29, %s3484_s14  ;;  %v3088_v34 = vpop.f32.mrb[26].mxu1 }
 0x4ca   : > { %v2158_v35 = vadd.f32 1.0, %v3363_v13  ;;  %3376 = vpow2.f32 %v2630_v6  ;;  %v4159_v36 = vadd.f32 %v3088_v34, %v4096_v38  ;;  %v2040_v18 = vpop.f32.mrb[27].mxu1 }
 0x4cb   : > { %3378 = vrcp.f32 %v2159_v32  ;;  %v4162_v25 = vadd.f32 %v4096_v38, %v2040_v18 }
 0x4cc   : > { %v3365_v37 = vpop.eup %3364  ;;  %3380 = vrcp.f32 %v2158_v35  ;;  %v2632_v39 = vmul.f32 -1.442695, %v4159_v36  ;;  %2322 = vrot.lane.b32.xlu1 %v4159_v36, %s3484_s14 }
 0x4cd   : > { %v3367_v47 = vpop.eup %3366  ;;  %v2161_v49 = vadd.f32 1.0, %v3365_v37  ;;  %3382 = vpow2.f32 %v2629_v33  ;;  %v2631_v30 = vmul.f32 -1.442695, %v4162_v25  ;;  %2320 = vrot.lane.b32.xlu0 %v4162_v25, %s3484_s14  ;;  %v3091_v44 = vpop.f32.mrb[28].mxu1 }
 0x4ce   : > { %v2160_v50 = vadd.f32 1.0, %v3367_v47  ;;  %3384 = vpow2.f32 %v2632_v39  ;;  %v4171_v43 = vadd.f32 %v3091_v44, %v4096_v38  ;;  %v2050_v51 = vpop.f32.mrb[29].mxu1 }
 0x4cf   : > { %3386 = vrcp.f32 %v2161_v49  ;;  %v4174_v53 = vadd.f32 %v4096_v38, %v2050_v51 }
 0x4d0   : > { %v3369_v41 = vpop.eup %3368  ;;  %3388 = vrcp.f32 %v2160_v50  ;;  %v2634_v45 = vmul.f32 -1.442695, %v4171_v43  ;;  %2326 = vrot.lane.b32.xlu1 %v4171_v43, %s3484_s14 }
 0x4d1   : > { %v3371_v55 = vpop.eup %3370  ;;  %v2163_v56 = vadd.f32 1.0, %v3369_v41  ;;  %3390 = vpow2.f32 %v2631_v30  ;;  %v2633_v57 = vmul.f32 -1.442695, %v4174_v53  ;;  %2324 = vrot.lane.b32.xlu0 %v4174_v53, %s3484_s14  ;;  %v3094_v61 = vpop.f32.mrb[30].mxu1 }
 0x4d2   : > { %v3373_v62 = vpop.eup %3372  ;;  %3392 = vpow2.f32 %v2634_v45  ;;  %v4183_v63 = vadd.f32 %v3094_v61, %v4096_v38  ;;  %v2060_v0 = vpop.f32.mrb[31].mxu1 }
 0x4d3   : > { %v3375_v2 = vpop.eup %3374  ;;  %v4186_v40 = vadd.f32 %v4096_v38, %v2060_v0  ;;  %3394 = vpow2.f32 %v2633_v57 }
 0x4d4   : > { %v3377_v59 = vpop.eup %3376  ;;  %v2162_v4 = vadd.f32 1.0, %v3375_v2  ;;  %v2636_v46 = vmul.f32 -1.442695, %v4183_v63  ;;  %2222 = vrot.lane.b32.xlu1 %v3371_v55, %s3485_s26  ;;  %3396 = vrcp.f32 %v2163_v56 }
 0x4d5   : > { %v3379_v5 = vpop.eup %3378  ;;  %v2165_v7 = vadd.f32 1.0, %v3377_v59  ;;  %v2635_v48 = vmul.f32 -1.442695, %v4186_v40  ;;  %2220 = vrot.lane.b32.xlu0 %v3373_v62, %s3485_s26 }
 0x4d6   : > { %v3381_v52 = vpop.eup %3380  ;;  %3398 = vrcp.f32 %v2162_v4 }
 0x4d7   : > { %v3383_v10 = vpop.eup %3382  ;;  %3400 = vrcp.f32 %v2165_v7 }
 0x4d8   : > { %v3385_v38 = vpop.eup %3384  ;;  %v2164_v11 = vadd.f32 1.0, %v3383_v10  ;;  %3402 = vpow2.f32 %v2636_v46  ;;  %2226 = vrot.lane.b32.xlu1 %v3379_v5, %s3485_s26 }
 0x4d9   : > { %v3387_v14 = vpop.eup %3386  ;;  %v2167_v16 = vadd.f32 1.0, %v3385_v38  ;;  %3404 = vpow2.f32 %v2635_v48  ;;  %2224 = vrot.lane.b32.xlu0 %v3381_v52, %s3485_s26 }
 0x4da   : > { %v3389_v54 = vpop.eup %3388  ;;  %3406 = vrcp.f32 %v2164_v11 }
 0x4db   : > { %v3391_v58 = vpop.eup %3390  ;;  %3408 = vrcp.f32 %v2167_v16 }
 0x4dc   : > { %v3393_v19 = vpop.eup %3392  ;;  %v2166_v21 = vadd.f32 1.0, %v3391_v58  ;;  %2230 = vrot.lane.b32.xlu1 %v3387_v14, %s3485_s26 }
 0x4dd   : > { %v2169_v22 = vadd.f32 1.0, %v3393_v19  ;;  %2228 = vrot.lane.b32.xlu0 %v3389_v54, %s3485_s26  ;;  %v3395_v23 = vpop.eup %3394 }
 0x4de   : > { %3410 = vrcp.f32 %v2166_v21  ;;  %v3397_v60 = vpop.eup %3396  ;;  %v2168_v3 = vadd.f32 1.0, %v3395_v23 }
 0x4df   : > { %3412 = vrcp.f32 %v2169_v22 }
 0x4e0   : > { %v3399_v24 = vpop.eup %3398  ;;  %2234 = vrot.lane.b32.xlu1 %v3397_v60, %s3485_s26  ;;  %3414 = vrcp.f32 %v2168_v3 }
 0x4e1   : > { %v3401_v26 = vpop.eup %3400  ;;  %2232 = vrot.lane.b32.xlu0 %v3399_v24, %s3485_s26 }
 0x4e2   : > { %v3403_v28 = vpop.eup %3402 }
 0x4e3   : > { %v3405_v31 = vpop.eup %3404  ;;  %v2171_v6 = vadd.f32 1.0, %v3403_v28 }
 0x4e4   : > { %v3407_v13 = vpop.eup %3406  ;;  %v2170_v32 = vadd.f32 1.0, %v3405_v31  ;;  %2238 = vrot.lane.b32.xlu1 %v3401_v26, %s3485_s26 }
 0x4e5   : > { %3416 = vrcp.f32 %v2171_v6  ;;  %2236 = vrot.lane.b32.xlu0 %v3407_v13, %s3485_s26  ;;  %v3409_v33 = vpop.eup %3408 }
 0x4e6   : > { %3418 = vrcp.f32 %v2170_v32 }
 0x4e8   : > { %v3411_v34 = vpop.eup %3410  ;;  %2242 = vrot.lane.b32.xlu1 %v3409_v33, %s3485_s26 }
 0x4e9   : > { %2240 = vrot.lane.b32.xlu0 %v3411_v34, %s3485_s26  ;;  %v3413_v35 = vpop.eup %3412 }
 0x4ea   : > { %v3415_v18 = vpop.eup %3414 }
 0x4ec   : > { %2246 = vrot.lane.b32.xlu1 %v3413_v35, %s3485_s26 }
 0x4ed   : > { %2244 = vrot.lane.b32.xlu0 %v3415_v18, %s3485_s26 }
 0x4ef   : > { %v3417_v37 = vpop.eup %3416 }
 0x4f0   : > { %v3419_v39 = vpop.eup %3418  ;;  %2250 = vrot.lane.b32.xlu1 %v3417_v37, %s3485_s26 }
 0x4f1   : > { %2248 = vrot.lane.b32.xlu0 %v3419_v39, %s3485_s26  ;;  %s323_s26 = sand.u32 1, %s3474_s10  }
 0x4f2   : > { %s4280_s13 = scalar_lea.sflag [#allocation3], %s323_s26 }
 0x4f4   : > { %2330 = vrot.lane.b32.xlu1 %v4183_v63, %s3484_s14 }
 0x4f5   : > { %2328 = vrot.lane.b32.xlu0 %v4186_v40, %s3484_s14  ;;  %s2476_s14 = sshll.u32 %s323_s26, 7 }
 0x4f6   : > { %s4221_s25 = scalar_lea.vmem [#allocation2], %s2476_s14 }
 0x4f7   : > { %s2410_s16 = sshll.u32 %s4221_s25, 4  ;;  %s4272_s16 = int_to_ptr.vmem [resolvable:$true] %s2410_s16 }
 0x4f8   : > { %s3420_s23 = scalar_lea.vmem %s4272_s16, 2048  ;;  %p3427_p0 = scmp.lt.s32.totalorder %s4272_s16, %s3425_s27 }
 0x4f9   : > { %p3421_p11 = scmp.ne.s32.totalorder %s4272_s16, %s3420_s23  ;;  %p3428_p1 = scmp.lt.s32.totalorder %s3426_s28, %s3420_s23 }
 0x4fb   : > { %p3422_p12 = pnand %p3421_p11, %p3578_p5  ;;  %p3429_p2 = por %p3428_p1, %p3427_p0 }
 0x4fd   : > { %p3423_p13 = pneg %p3422_p12 }
 0x4ff   : > { %p3430_p3 = pnand %p3429_p2, %p3423_p13 }
 0x52a   : > { %v2303_v47 = vpop.permute.xlu1 %2302 }
 0x52b   : > { %v2301_v49 = vpop.permute.xlu0 %2300 }
 0x52e   : > { %v2307_v30 = vpop.permute.xlu1 %2306 }
 0x52f   : > { %v2305_v44 = vpop.permute.xlu0 %2304 }
 0x532   : > { %v2311_v50 = vpop.permute.xlu1 %2310 }
 0x533   : > { %v2309_v51 = vpop.permute.xlu0 %2308 }
 0x536   : > { %v2315_v41 = vpop.permute.xlu1 %2314 }
 0x537   : > { %v2313_v45 = vpop.permute.xlu0 %2312 }
 0x53a   : > { %v2319_v55 = vpop.permute.xlu1 %2318 }
 0x53b   : > { %v2317_v56 = vpop.permute.xlu0 %2316 }
 0x53e   : > { %v2323_v57 = vpop.permute.xlu1 %2322 }
 0x53f   : > { %v2321_v61 = vpop.permute.xlu0 %2320 }
 0x542   : > { %v4210_v62 = vpop.permute.xlu1 %2326 }
 0x543   : > { %v4212_v0 = vpop.permute.xlu0 %2324 }
 0x546   : > { %v2223_v2 = vpop.permute.xlu1 %2222 }
 0x547   : > { %v2269_v59 = vmul.f32 %v2223_v2, %v4099_v1  ;;  %v2221_v4 = vpop.permute.xlu0 %2220 }
 0x548   : > { %v2268_v46 = vmul.f32 %v2221_v4, %v4102_v42 }
 0x549   : > { %v2349_v5 = vadd.f32 %v2303_v47, %v2269_v59 }
 0x54a   : > { %v2348_v7 = vadd.f32 %v2301_v49, %v2268_v46  ;;  %v2227_v48 = vpop.permute.xlu1 %2226 }
 0x54b   : > { %v2365_v52 = vmax.f32 %v2349_v5, 0.0  ;;  %v2271_v10 = vmul.f32 %v2227_v48, %v4111_v8  ;;  %v2225_v38 = vpop.permute.xlu0 %2224 }
 0x54c   : > { %v2364_v11 = vmax.f32 %v2348_v7, 0.0  ;;  %v2270_v14 = vmul.f32 %v2225_v38, %v4114_v9 }
 0x54d   : > { %2381 = vst.msk [vmem:[%s4221_s25 + $0x8] sm:$0xff] %vm360_vm0, %v2365_v52  ;;  %v2351_v1 = vadd.f32 %v2307_v30, %v2271_v10 }
 0x54e   : > { %2380 = vst.msk [vmem:[%s4221_s25] sm:$0xff] %vm360_vm0, %v2364_v11  ;;  %v2350_v42 = vadd.f32 %v2305_v44, %v2270_v14  ;;  %v2231_v16 = vpop.permute.xlu1 %2230 }
 0x54f   : > { %v2367_v54 = vmax.f32 %v2351_v1, 0.0  ;;  %v2273_v8 = vmul.f32 %v2231_v16, %v4123_v12  ;;  %v2229_v58 = vpop.permute.xlu0 %2228 }
 0x550   : > { %v2366_v9 = vmax.f32 %v2350_v42, 0.0  ;;  %v2272_v19 = vmul.f32 %v2229_v58, %v4126_v15 }
 0x551   : > { %2383 = vst.msk [vmem:[%s4221_s25 + $0x18] sm:$0xff] %vm360_vm0, %v2367_v54  ;;  %v2353_v21 = vadd.f32 %v2311_v50, %v2273_v8 }
 0x552   : > { %2382 = vst.msk [vmem:[%s4221_s25 + $0x10] sm:$0xff] %vm360_vm0, %v2366_v9  ;;  %v2352_v22 = vadd.f32 %v2309_v51, %v2272_v19  ;;  %v2235_v23 = vpop.permute.xlu1 %2234 }
 0x553   : > { %v2369_v60 = vmax.f32 %v2353_v21, 0.0  ;;  %v2275_v3 = vmul.f32 %v2235_v23, %v4135_v17  ;;  %v2233_v24 = vpop.permute.xlu0 %2232 }
 0x554   : > { %v2368_v26 = vmax.f32 %v2352_v22, 0.0  ;;  %v2274_v12 = vmul.f32 %v2233_v24, %v4138_v20 }
 0x555   : > { %2385 = vst.msk [vmem:[%s4221_s25 + $0x28] sm:$0xff] %vm360_vm0, %v2369_v60  ;;  %v2355_v28 = vadd.f32 %v2315_v41, %v2275_v3 }
 0x556   : > { %2384 = vst.msk [vmem:[%s4221_s25 + $0x20] sm:$0xff] %vm360_vm0, %v2368_v26  ;;  %v2354_v15 = vadd.f32 %v2313_v45, %v2274_v12  ;;  %v2239_v31 = vpop.permute.xlu1 %2238 }
 0x557   : > { %v2371_v6 = vmax.f32 %v2355_v28, 0.0  ;;  %v2277_v13 = vmul.f32 %v2239_v31, %v4147_v27  ;;  %v2237_v32 = vpop.permute.xlu0 %2236 }
 0x558   : > { %v2370_v33 = vmax.f32 %v2354_v15, 0.0  ;;  %v2276_v17 = vmul.f32 %v2237_v32, %v4150_v29 }
 0x559   : > { %2387 = vst.msk [vmem:[%s4221_s25 + $0x38] sm:$0xff] %vm360_vm0, %v2371_v6  ;;  %v2357_v34 = vadd.f32 %v2319_v55, %v2277_v13 }
 0x55a   : > { %2386 = vst.msk [vmem:[%s4221_s25 + $0x30] sm:$0xff] %vm360_vm0, %v2370_v33  ;;  %v2356_v20 = vadd.f32 %v2317_v56, %v2276_v17  ;;  %v2243_v35 = vpop.permute.xlu1 %2242 }
 0x55b   : > { %v2373_v18 = vmax.f32 %v2357_v34, 0.0  ;;  %v2279_v37 = vmul.f32 %v2243_v35, %v4159_v36  ;;  %v2241_v39 = vpop.permute.xlu0 %2240 }
 0x55c   : > { %v2372_v47 = vmax.f32 %v2356_v20, 0.0  ;;  %v2278_v27 = vmul.f32 %v2241_v39, %v4162_v25 }
 0x55d   : > { %2389 = vst.msk [vmem:[%s4221_s25 + $0x48] sm:$0xff] %vm360_vm0, %v2373_v18  ;;  %v2359_v49 = vadd.f32 %v2323_v57, %v2279_v37 }
 0x55e   : > { %2388 = vst.msk [vmem:[%s4221_s25 + $0x40] sm:$0xff] %vm360_vm0, %v2372_v47  ;;  %v2358_v29 = vadd.f32 %v2321_v61, %v2278_v27  ;;  %v2247_v30 = vpop.permute.xlu1 %2246 }
 0x55f   : > { %v2375_v44 = vmax.f32 %v2359_v49, 0.0  ;;  %v2281_v50 = vmul.f32 %v2247_v30, %v4171_v43  ;;  %v2245_v51 = vpop.permute.xlu0 %2244 }
 0x560   : > { %v2374_v36 = vmax.f32 %v2358_v29, 0.0  ;;  %v2280_v41 = vmul.f32 %v2245_v51, %v4174_v53 }
 0x561   : > { %2391 = vst.msk [vmem:[%s4221_s25 + $0x58] sm:$0xff] %vm360_vm0, %v2375_v44  ;;  %v2361_v25 = vadd.f32 %v4210_v62, %v2281_v50 }
 0x562   : > { %2390 = vst.msk [vmem:[%s4221_s25 + $0x50] sm:$0xff] %vm360_vm0, %v2374_v36  ;;  %v2360_v45 = vadd.f32 %v4212_v0, %v2280_v41  ;;  %v2251_v55 = vpop.permute.xlu1 %2250 }
 0x563   : > { %v2377_v56 = vmax.f32 %v2361_v25, 0.0  ;;  %v2249_v57 = vpop.permute.xlu0 %2248  ;;  %v2283_v43 = vmul.f32 %v2251_v55, %v4183_v63 }
 0x564   : > { %v2376_v61 = vmax.f32 %v2360_v45, 0.0  ;;  %v2282_v53 = vmul.f32 %v2249_v57, %v4186_v40 }
 0x565   : > { %2393 = vst.msk [vmem:[%s4221_s25 + $0x68] sm:$0xff] %vm360_vm0, %v2377_v56 }
 0x566   : > { %2392 = vst.msk [vmem:[%s4221_s25 + $0x60] sm:$0xff] %vm360_vm0, %v2376_v61  ;;  %v2331_v62 = vpop.permute.xlu1 %2330 }
 0x567   : > { %v2363_v0 = vadd.f32 %v2331_v62, %v2283_v43  ;;  %v2329_v2 = vpop.permute.xlu0 %2328 }
 0x568   : > { %v2362_v59 = vadd.f32 %v2329_v2, %v2282_v53 }
 0x569   : > { %v2379_v4 = vmax.f32 %v2363_v0, 0.0 }
 0x56a   : > { %v2378_v63 = vmax.f32 %v2362_v59, 0.0 }
 0x56b   : > { %2395 = vst.msk [vmem:[%s4221_s25 + $0x78] sm:$0xff] %vm360_vm0, %v2379_v4 }
 0x56c   : > { %2394 = vst.msk [vmem:[%s4221_s25 + $0x70] sm:$0xff] %vm360_vm0, %v2378_v63 }
 0x56d   : > { %3433 = shalt.err (!%p3430_p3)
}
 0x56e   : > { %s3434_s26 = scalar_lea.hbm %s4270_s22, 2048  ;;  %s3438_s29 = scalar_lea.hbm %s4330_s9, 4096 }
 0x56f   : > { %p3435_p4 = scmp.ne.s32.totalorder %s4270_s22, %s3434_s26  ;;  %p3439_p9 = scmp.lt.u32.totalorder %s4270_s22, %s4330_s9 }
 0x570   : > { %p3440_p10 = scmp.lt.u32.totalorder %s3438_s29, %s3434_s26  ;;  %p3442_p12 = scmp.lt.u32.totalorder %s3434_s26, %s4270_s22 }
 0x571   : > { %p3436_p7 = pnand %p3435_p4, %p3578_p5 }
 0x572   : > { %p3441_p11 = por %p3440_p10, %p3439_p9 }
 0x573   : > { %p3437_p8 = pneg %p3436_p7 }
 0x574   : > { %p3443_p13 = por %p3442_p12, %p3441_p11 }
 0x576   : > { %p3444_p0 = pnand %p3443_p13, %p3437_p8 }
 0x578   : > { %3447 = shalt.err (!%p3444_p0)
}
 0x579   : > { %s3488_s23 = smov 128   ;;  %s3489_s24 = smov 8  }
 0x57a   : > { %3248 = dma.vmem_to_hbm [thread:$0]  (%p3578_p5), %s4272_s16, 2048, %s4270_s22, %s4280_s13, %s3488_s23, %s3488_s23, %s3489_s24  }
 0x57b PF: > { %p3254_p1 = scmp.ge.s32.totalorder %s3482_s12, 2  ;;  %s2425_s27 = sand.u32 1, %s3470_s30  }
 0x57c   : > { %s2426_s28 = scalar_lea.sflag [#allocation3], %s2425_s27 }
 0x57d   : > { %p3251_p2 = pnand %p3254_p1, %p3582_p6 }
 0x57f   : > { %3465 = dma.done.wait (!%p3251_p2), %s2426_s28, 2048  }
 0x580   : > { %3467 = vsyncadd (!%p3251_p2), %s2426_s28, 4294965248  ;;  %p19_p3 = scmp.ge.s32.totalorder %s3565_s15, 4   ;;  %s4333_s30 = smov %s3474_s10 }
 0x581   : > { %s4334_s10 = smov %s3478_s11  ;;  %s4335_s11 = smov %s3576_s18 }
 0x582   : > { %s4336_s12 = smov %s3565_s15  ;;  %21 = sbr.rel (!%p19_p3) target bundleno = 3 (0x3), region = 95 }
 0x589   :  { %2431 = vsyncpa [#allocation3], 1 }
 0x58a   :  { %2433 = vsyncpa [#allocation3 + $0x1], 1 }

</bundles_post_ra>
